<compile_context>
chip_gen: v6e
topology: v6e:2x2x1
jax: 0.10.0
libtpu: 0.0.40
codegen_flags: <defaults>
</compile_context>

<pallas_src>
import math

import jax
import jax.numpy as jnp
from jax.experimental import pallas as pl
from jax.experimental.pallas import tpu as pltpu

INPUT_DIM = 72
OUT_PAD = 128            # decoded output padded to a lane-dense 128-wide slab
EMBED_DIM = 12
NUM_HEADS = 2
HEAD_DIM = EMBED_DIM // NUM_HEADS
LATENT_DIM = EMBED_DIM * 2
FF_DIM = 2048            # nn.TransformerEncoderLayer / DecoderLayer default dim_feedforward
FF_CHUNK = 512           # FF hidden dim processed in 512-wide slices (no big intermediate)
LN_EPS = 1e-5

# packed / fused kernel parameter order
PACKED_ORDER = [
    "emb_w", "emb_b",
    "enc_q_w", "enc_q_b", "enc_k_w", "enc_k_b", "enc_v_w", "enc_v_b",
    "enc_out_w", "enc_out_b",
    "enc_ln1_w", "enc_ln1_b",
    "enc_f1_w", "enc_f1_b", "enc_f2_w", "enc_f2_b",
    "enc_ln2_w", "enc_ln2_b",
    "mulv_w", "mulv_b", "lat_w", "lat_b",
    "dsa_v_w", "dsa_v_b", "dsa_out_w", "dsa_out_b",
    "d_ln1_w", "d_ln1_b",
    "dca_v_w", "dca_v_b", "dca_out_w", "dca_out_b",
    "d_ln2_w", "d_ln2_b",
    "d_f1_w", "d_f1_b", "d_f2_w", "d_f2_b",
    "d_ln3_w", "d_ln3_b",
    "out_w", "out_b",
]


# ---------------------------------------------------------------------------
# pure-JAX reference (original, unfused, unsimplified math) -- golden check
# ---------------------------------------------------------------------------
def _linear(x, w, b):
    # x: (S, in), w: (in, out), b: (1, out)
    return jnp.dot(x, w, preferred_element_type=jnp.float32) + b


def _layer_norm(x, w, b):
    mu = jnp.mean(x, axis=-1, keepdims=True)
    var = jnp.mean(jnp.square(x - mu), axis=-1, keepdims=True)
    return (x - mu) * jax.lax.rsqrt(var + LN_EPS) * w + b


def _softmax(x):
    m = jnp.max(x, axis=-1, keepdims=True)
    e = jnp.exp(x - m)
    return e / jnp.sum(e, axis=-1, keepdims=True)


def _mha(q_in, kv_in, in_w, in_b, out_w, out_b):
    """nn.MultiheadAttention (batch_first, no mask), one batch element."""
    E = EMBED_DIM
    q = _linear(q_in, in_w[:, 0 * E:1 * E], in_b[:, 0 * E:1 * E])
    k = _linear(kv_in, in_w[:, 1 * E:2 * E], in_b[:, 1 * E:2 * E])
    v = _linear(kv_in, in_w[:, 2 * E:3 * E], in_b[:, 2 * E:3 * E])
    scale = 1.0 / math.sqrt(HEAD_DIM)
    heads = []
    for h in range(NUM_HEADS):
        qh = q[:, h * HEAD_DIM:(h + 1) * HEAD_DIM]
        kh = k[:, h * HEAD_DIM:(h + 1) * HEAD_DIM]
        vh = v[:, h * HEAD_DIM:(h + 1) * HEAD_DIM]
        s = jax.lax.dot_general(qh, kh, (((1,), (1,)), ((), ())),
                                preferred_element_type=jnp.float32) * scale
        p = _softmax(s)
        heads.append(jnp.dot(p, vh, preferred_element_type=jnp.float32))
    attn = jnp.concatenate(heads, axis=-1)
    return _linear(attn, out_w, out_b)


def _forward_one(x_b, pe, eps_b, p):
    """Full TransformerVAE forward for one batch element (reference)."""
    S = x_b.shape[0]
    x = _linear(x_b, p["emb_w"], p["emb_b"]) + pe

    # encoder layer (post-norm, relu, dropout == identity)
    sa = _mha(x, x, p["enc_in_w"], p["enc_in_b"], p["enc_out_w"], p["enc_out_b"])
    x = _layer_norm(x + sa, p["enc_ln1_w"], p["enc_ln1_b"])
    ff = _linear(jnp.maximum(_linear(x, p["enc_f1_w"], p["enc_f1_b"]), 0.0),
                 p["enc_f2_w"], p["enc_f2_b"])
    x = _layer_norm(x + ff, p["enc_ln2_w"], p["enc_ln2_b"])

    enc = jnp.mean(x, axis=0, keepdims=True)
    mu = _linear(enc, p["mu_w"], p["mu_b"])
    log_var = _linear(enc, p["lv_w"], p["lv_b"])
    z = mu + eps_b * jnp.exp(0.5 * log_var)
    z = _linear(z, p["lat_w"], p["lat_b"])
    z_seq = jnp.broadcast_to(z, (S, EMBED_DIM))

    sa = _mha(z_seq, z_seq, p["dsa_in_w"], p["dsa_in_b"],
              p["dsa_out_w"], p["dsa_out_b"])
    y = _layer_norm(z_seq + sa, p["d_ln1_w"], p["d_ln1_b"])
    ca = _mha(y, z_seq, p["dca_in_w"], p["dca_in_b"],
              p["dca_out_w"], p["dca_out_b"])
    y = _layer_norm(y + ca, p["d_ln2_w"], p["d_ln2_b"])
    ff = _linear(jnp.maximum(_linear(y, p["d_f1_w"], p["d_f1_b"]), 0.0),
                 p["d_f2_w"], p["d_f2_b"])
    y = _layer_norm(y + ff, p["d_ln3_w"], p["d_ln3_b"])

    decoded = _linear(y, p["out_w"], p["out_b"])
    return decoded, mu, log_var


# ---------------------------------------------------------------------------
# Pallas kernel: one grid step == one batch tile (Bt elements), all in VMEM.
# ---------------------------------------------------------------------------
def _vae_kernel(*refs):
    n_p = len(PACKED_ORDER)
    x_ref, pe_ref, eps_ref = refs[0], refs[1], refs[2]
    pr = dict(zip(PACKED_ORDER, refs[3:3 + n_p]))       # refs, read at use sites
    dec_ref, mulv_ref = refs[3 + n_p], refs[4 + n_p]

    Bt, S, F = x_ref.shape
    E = EMBED_DIM
    rows = Bt * S

    def lin(a, wname, bname):
        return jnp.dot(a, pr[wname][...],
                       preferred_element_type=jnp.float32) + pr[bname][...]

    def ln(a, wname, bname):
        mu = jnp.mean(a, axis=-1, keepdims=True)
        var = jnp.mean(jnp.square(a - mu), axis=-1, keepdims=True)
        return (a - mu) * jax.lax.rsqrt(var + LN_EPS) * pr[wname][...] + pr[bname][...]

    def ff(a, w1n, b1n, w2n, b2n):
        # chunk the 2048-wide hidden dim; never materialize the full (rows, 2048) relu.
        w1, b1, w2, b2 = pr[w1n], pr[b1n], pr[w2n], pr[b2n]
        acc = jnp.zeros((a.shape[0], E), jnp.float32)
        for c in range(0, FF_DIM, FF_CHUNK):
            t = jnp.dot(a, w1[:, c:c + FF_CHUNK], preferred_element_type=jnp.float32)
            t = jnp.maximum(t + b1[:, c:c + FF_CHUNK], 0.0)
            acc = acc + jnp.dot(t, w2[c:c + FF_CHUNK, :],
                                preferred_element_type=jnp.float32)
        return acc + b2[...]

    # ---- embedding + positional encoding (row-wise over Bt*S rows, 72-wide input) ----
    x2 = x_ref[...].reshape(rows, F)
    h = lin(x2, "emb_w", "emb_b")                                  # (rows, E)
    h = (h.reshape(Bt, S, E) + pe_ref[...][None]).reshape(rows, E)

    # ---- encoder layer: 2-head self-attention; heads via lane masks (no concat,
    #      no lane-offset slicing), separate Q/K/V projections ----
    q3 = lin(h, "enc_q_w", "enc_q_b").reshape(Bt, S, E)
    k3 = lin(h, "enc_k_w", "enc_k_b").reshape(Bt, S, E)
    v3 = lin(h, "enc_v_w", "enc_v_b").reshape(Bt, S, E)
    scale = 1.0 / math.sqrt(HEAD_DIM)
    lane = jax.lax.broadcasted_iota(jnp.int32, (1, 1, E), 2)
    attn = jnp.zeros((Bt, S, E), jnp.float32)
    for hh in range(NUM_HEADS):
        m = jnp.where((lane >= hh * HEAD_DIM) & (lane < (hh + 1) * HEAD_DIM), 1.0, 0.0)
        s = jnp.einsum("bqd,bkd->bqk", q3, k3 * m,
                       preferred_element_type=jnp.float32) * scale
        s = s - jnp.max(s, axis=-1, keepdims=True)
        e = jnp.exp(s)
        p_att = e / jnp.sum(e, axis=-1, keepdims=True)
        # masked V -> per-head output already lands in its own columns; sum == concat
        attn = attn + jnp.einsum("bqk,bkd->bqd", p_att, v3 * m,
                                 preferred_element_type=jnp.float32)
    sa = lin(attn.reshape(rows, E), "enc_out_w", "enc_out_b")
    h = ln(h + sa, "enc_ln1_w", "enc_ln1_b")
    h = ln(h + ff(h, "enc_f1_w", "enc_f1_b", "enc_f2_w", "enc_f2_b"),
           "enc_ln2_w", "enc_ln2_b")

    # ---- mean pool over sequence + fused mu/log_var heads + reparameterize ----
    enc = jnp.mean(h.reshape(Bt, S, E), axis=1)                    # (Bt, E)
    mulv = lin(enc, "mulv_w", "mulv_b")                            # (Bt, 2*LATENT)
    mu = mulv[:, :LATENT_DIM]
    log_var = mulv[:, LATENT_DIM:]
    z = mu + eps_ref[...] * jnp.exp(0.5 * log_var)                 # (Bt, LATENT)
    z = lin(z, "lat_w", "lat_b")                                   # (Bt, E)

    # ---- decoder: tgt == memory == broadcast(z) => all activations are row-constant
    #      per batch element; attention collapses to out_proj(V(z)). ----
    y = ln(z + lin(lin(z, "dsa_v_w", "dsa_v_b"), "dsa_out_w", "dsa_out_b"),
           "d_ln1_w", "d_ln1_b")
    y = ln(y + lin(lin(z, "dca_v_w", "dca_v_b"), "dca_out_w", "dca_out_b"),
           "d_ln2_w", "d_ln2_b")
    y = ln(y + ff(y, "d_f1_w", "d_f1_b", "d_f2_w", "d_f2_b"),
           "d_ln3_w", "d_ln3_b")

    dec_row = lin(y, "out_w", "out_b")                             # (Bt, 128) lane-dense
    dec_ref[...] = jnp.broadcast_to(dec_row[:, None, :], dec_ref.shape)
    mulv_ref[...] = mulv


# ---------------------------------------------------------------------------
# wrapper: pack/fuse parameters and launch the kernel over batch tiles
# ---------------------------------------------------------------------------
def _pack_params(params):
    E = EMBED_DIM
    q = {}
    q["emb_w"] = params["emb_w"]                      # (72, 12) — no K padding, x stays 72-wide
    q["emb_b"] = params["emb_b"]
    # split the fused in_proj so the kernel never slices at lane offsets 12 / 24
    q["enc_q_w"] = params["enc_in_w"][:, 0 * E:1 * E]
    q["enc_q_b"] = params["enc_in_b"][:, 0 * E:1 * E]
    q["enc_k_w"] = params["enc_in_w"][:, 1 * E:2 * E]
    q["enc_k_b"] = params["enc_in_b"][:, 1 * E:2 * E]
    q["enc_v_w"] = params["enc_in_w"][:, 2 * E:3 * E]
    q["enc_v_b"] = params["enc_in_b"][:, 2 * E:3 * E]
    q["enc_out_w"], q["enc_out_b"] = params["enc_out_w"], params["enc_out_b"]
    q["enc_ln1_w"], q["enc_ln1_b"] = params["enc_ln1_w"], params["enc_ln1_b"]
    q["enc_f1_w"], q["enc_f1_b"] = params["enc_f1_w"], params["enc_f1_b"]   # (12, 2048)
    q["enc_f2_w"], q["enc_f2_b"] = params["enc_f2_w"], params["enc_f2_b"]   # (2048, 12): plain dot
    q["enc_ln2_w"], q["enc_ln2_b"] = params["enc_ln2_w"], params["enc_ln2_b"]
    q["mulv_w"] = jnp.concatenate([params["mu_w"], params["lv_w"]], axis=1)
    q["mulv_b"] = jnp.concatenate([params["mu_b"], params["lv_b"]], axis=1)
    q["lat_w"], q["lat_b"] = params["lat_w"], params["lat_b"]
    q["dsa_v_w"] = params["dsa_in_w"][:, 2 * E:3 * E]
    q["dsa_v_b"] = params["dsa_in_b"][:, 2 * E:3 * E]
    q["dsa_out_w"], q["dsa_out_b"] = params["dsa_out_w"], params["dsa_out_b"]
    q["d_ln1_w"], q["d_ln1_b"] = params["d_ln1_w"], params["d_ln1_b"]
    q["dca_v_w"] = params["dca_in_w"][:, 2 * E:3 * E]
    q["dca_v_b"] = params["dca_in_b"][:, 2 * E:3 * E]
    q["dca_out_w"], q["dca_out_b"] = params["dca_out_w"], params["dca_out_b"]
    q["d_ln2_w"], q["d_ln2_b"] = params["d_ln2_w"], params["d_ln2_b"]
    q["d_f1_w"], q["d_f1_b"] = params["d_f1_w"], params["d_f1_b"]
    q["d_f2_w"], q["d_f2_b"] = params["d_f2_w"], params["d_f2_b"]
    q["d_ln3_w"], q["d_ln3_b"] = params["d_ln3_w"], params["d_ln3_b"]
    # output projection padded to 128 lanes so the big (Bt, S, ·) store is lane-dense
    q["out_w"] = jnp.pad(params["out_w"], ((0, 0), (0, OUT_PAD - INPUT_DIM)))
    q["out_b"] = jnp.pad(params["out_b"], ((0, 0), (0, OUT_PAD - INPUT_DIM)))
    return [q[k] for k in PACKED_ORDER]


def _round_up(v, m):
    return ((v + m - 1) // m) * m


def _choose_batch_tile(B, S):
    """Batch tile: ~1024 rows/step, multiple of 8, >=2 tiles when B>8 (v7x megacore)."""
    if B <= 8:
        return B                                   # single tile; blocks equal full dims
    target = max(8, ((1024 // max(S, 1)) // 8) * 8)
    half = _round_up((B + 1) // 2, 8)              # guarantee >= 2 grid steps
    return max(8, min(128, target, half))


@jax.jit
def transformer_vae_forward(x, eps, pe, params):
    """x: (B, S, INPUT_DIM) f32, eps: (B, LATENT_DIM) f32, pe: (S, EMBED_DIM) f32."""
    B, S, F = x.shape
    Bt = _choose_batch_tile(B, S)
    n_tiles = pl.cdiv(B, Bt)
    B_pad = n_tiles * Bt

    # pad only the batch dim (no 72->128 feature padding of the input)
    x_pad = jnp.pad(x, ((0, B_pad - B), (0, 0), (0, 0)))
    eps_pad = jnp.pad(eps, ((0, B_pad - B), (0, 0)))
    packed = _pack_params(params)

    in_specs = [
        pl.BlockSpec((Bt, S, F), lambda b: (b, 0, 0)),
        pl.BlockSpec((S, EMBED_DIM), lambda b: (0, 0)),
        pl.BlockSpec((Bt, LATENT_DIM), lambda b: (b, 0)),
    ]
    # Full-array weight blocks with a constant block index: fetched once, re-DMA is
    # skipped on subsequent grid steps.
    # TODO(synk): single-buffer these (pipeline_mode=pl.Buffered(1)) to reclaim the
    # duplicate weight buffer once verified on the target jax build.
    for arr in packed:
        in_specs.append(pl.BlockSpec(arr.shape, lambda b, nd=arr.ndim: (0,) * nd))

    out_shape = (
        jax.ShapeDtypeStruct((B_pad, S, OUT_PAD), jnp.float32),
        jax.ShapeDtypeStruct((B_pad, 2 * LATENT_DIM), jnp.float32),
    )
    out_specs = [
        pl.BlockSpec((Bt, S, OUT_PAD), lambda b: (b, 0, 0)),
        pl.BlockSpec((Bt, 2 * LATENT_DIM), lambda b: (b, 0)),
    ]

    decoded_pad, mulv = pl.pallas_call(
        _vae_kernel,
        out_shape=out_shape,
        grid_spec=pltpu.PrefetchScalarGridSpec(
            num_scalar_prefetch=0,
            grid=(n_tiles,),
            in_specs=in_specs,
            out_specs=out_specs,
        ),
        compiler_params=pltpu.CompilerParams(
            dimension_semantics=("parallel",),       # independent batch tiles (v7x 2 TCs)
            vmem_limit_bytes=48 * 1024 * 1024,       # > all default scopes, < v7x physical
        ),
    )(x_pad, pe, eps_pad, *packed)

    decoded = decoded_pad[:B, :, :INPUT_DIM]
    mu = mulv[:B, :LATENT_DIM]
    log_var = mulv[:B, LATENT_DIM:]
    return decoded, mu, log_var


# ---------------------------------------------------------------------------
# deterministic parameter init (shapes from TransformerVAE.__init__)
# ---------------------------------------------------------------------------
def init_params(key):
    keys = iter(jax.random.split(key, 64))

    def uni(shape, fan_in):
        bound = 1.0 / math.sqrt(fan_in)
        return jax.random.uniform(next(keys), shape, jnp.float32, -bound, bound)

    def linear_wb(out_f, in_f):
        w = uni((out_f, in_f), in_f)            # torch layout (out, in)
        b = uni((out_f,), in_f)
        return w.T, b.reshape(1, out_f)         # kernel layout (in, out), (1, out)

    ones = lambda n: jnp.ones((1, n), jnp.float32)
    zeros = lambda n: jnp.zeros((1, n), jnp.float32)

    p = {}
    p["emb_w"], p["emb_b"] = linear_wb(EMBED_DIM, INPUT_DIM)
    # encoder layer
    p["enc_in_w"], p["enc_in_b"] = linear_wb(3 * EMBED_DIM, EMBED_DIM)
    p["enc_out_w"], p["enc_out_b"] = linear_wb(EMBED_DIM, EMBED_DIM)
    p["enc_ln1_w"], p["enc_ln1_b"] = ones(EMBED_DIM), zeros(EMBED_DIM)
    p["enc_f1_w"], p["enc_f1_b"] = linear_wb(FF_DIM, EMBED_DIM)
    p["enc_f2_w"], p["enc_f2_b"] = linear_wb(EMBED_DIM, FF_DIM)
    p["enc_ln2_w"], p["enc_ln2_b"] = ones(EMBED_DIM), zeros(EMBED_DIM)
    # latent heads
    p["mu_w"], p["mu_b"] = linear_wb(LATENT_DIM, EMBED_DIM)
    p["lv_w"], p["lv_b"] = linear_wb(LATENT_DIM, EMBED_DIM)
    p["lat_w"], p["lat_b"] = linear_wb(EMBED_DIM, LATENT_DIM)
    # decoder layer
    p["dsa_in_w"], p["dsa_in_b"] = linear_wb(3 * EMBED_DIM, EMBED_DIM)
    p["dsa_out_w"], p["dsa_out_b"] = linear_wb(EMBED_DIM, EMBED_DIM)
    p["d_ln1_w"], p["d_ln1_b"] = ones(EMBED_DIM), zeros(EMBED_DIM)
    p["dca_in_w"], p["dca_in_b"] = linear_wb(3 * EMBED_DIM, EMBED_DIM)
    p["dca_out_w"], p["dca_out_b"] = linear_wb(EMBED_DIM, EMBED_DIM)
    p["d_ln2_w"], p["d_ln2_b"] = ones(EMBED_DIM), zeros(EMBED_DIM)
    p["d_f1_w"], p["d_f1_b"] = linear_wb(FF_DIM, EMBED_DIM)
    p["d_f2_w"], p["d_f2_b"] = linear_wb(EMBED_DIM, FF_DIM)
    p["d_ln3_w"], p["d_ln3_b"] = ones(EMBED_DIM), zeros(EMBED_DIM)
    # output projection
    p["out_w"], p["out_b"] = linear_wb(INPUT_DIM, EMBED_DIM)
    return p


def make_positional_encoding(seq_len, embed_dim=EMBED_DIM, max_len=48):
    position = jnp.arange(max_len, dtype=jnp.float32)[:, None]
    div_term = jnp.exp(jnp.arange(0, embed_dim, 2, dtype=jnp.float32)
                       * (-math.log(10000.0) / embed_dim))
    pe = jnp.zeros((max_len, embed_dim), jnp.float32)
    pe = pe.at[:, 0::2].set(jnp.sin(position * div_term))
    pe = pe.at[:, 1::2].set(jnp.cos(position * div_term))
    return pe[:seq_len]


if __name__ == "__main__":
    B, S = 2, 8
    key = jax.random.PRNGKey(0)
    kx, keps, kp = jax.random.split(key, 3)

    x = jax.random.normal(kx, (B, S, INPUT_DIM), jnp.float32)
    eps = jax.random.normal(keps, (B, LATENT_DIM), jnp.float32)   # reparam noise
    params = init_params(kp)
    pe = make_positional_encoding(S)

    decoded, mu, log_var = transformer_vae_forward(x, eps, pe, params)
    jax.block_until_ready((decoded, mu, log_var))

    # pure-JAX reference (original unfused math, full decoder attention)
    ref_d, ref_m, ref_lv = [], [], []
    for b in range(B):
        d, m, lv = _forward_one(x[b], pe, eps[b:b + 1], params)
        ref_d.append(d); ref_m.append(m[0]); ref_lv.append(lv[0])
    ref_d = jnp.stack(ref_d); ref_m = jnp.stack(ref_m); ref_lv = jnp.stack(ref_lv)

    assert decoded.shape == (B, S, INPUT_DIM)
    assert mu.shape == (B, LATENT_DIM) and log_var.shape == (B, LATENT_DIM)
    assert jnp.allclose(decoded, ref_d, atol=1e-4, rtol=1e-4)
    assert jnp.allclose(mu, ref_m, atol=1e-4, rtol=1e-4)
    assert jnp.allclose(log_var, ref_lv, atol=1e-4, rtol=1e-4)

    print("KERNEL_OK")
</pallas_src>

<mosaic_0001>
module attributes {stable_mosaic.version = 11 : i64} {
  func.func @_vae_kernel(%arg0: i32, %arg1: memref<2x8x72xf32, #tpu.memory_space<vmem>>, %arg2: memref<8x12xf32, #tpu.memory_space<vmem>>, %arg3: memref<2x24xf32, #tpu.memory_space<vmem>>, %arg4: memref<72x12xf32, #tpu.memory_space<vmem>>, %arg5: memref<1x12xf32, #tpu.memory_space<vmem>>, %arg6: memref<12x12xf32, #tpu.memory_space<vmem>>, %arg7: memref<1x12xf32, #tpu.memory_space<vmem>>, %arg8: memref<12x12xf32, #tpu.memory_space<vmem>>, %arg9: memref<1x12xf32, #tpu.memory_space<vmem>>, %arg10: memref<12x12xf32, #tpu.memory_space<vmem>>, %arg11: memref<1x12xf32, #tpu.memory_space<vmem>>, %arg12: memref<12x12xf32, #tpu.memory_space<vmem>>, %arg13: memref<1x12xf32, #tpu.memory_space<vmem>>, %arg14: memref<1x12xf32, #tpu.memory_space<vmem>>, %arg15: memref<1x12xf32, #tpu.memory_space<vmem>>, %arg16: memref<12x2048xf32, #tpu.memory_space<vmem>>, %arg17: memref<1x2048xf32, #tpu.memory_space<vmem>>, %arg18: memref<2048x12xf32, #tpu.memory_space<vmem>>, %arg19: memref<1x12xf32, #tpu.memory_space<vmem>>, %arg20: memref<1x12xf32, #tpu.memory_space<vmem>>, %arg21: memref<1x12xf32, #tpu.memory_space<vmem>>, %arg22: memref<12x48xf32, #tpu.memory_space<vmem>>, %arg23: memref<1x48xf32, #tpu.memory_space<vmem>>, %arg24: memref<24x12xf32, #tpu.memory_space<vmem>>, %arg25: memref<1x12xf32, #tpu.memory_space<vmem>>, %arg26: memref<12x12xf32, #tpu.memory_space<vmem>>, %arg27: memref<1x12xf32, #tpu.memory_space<vmem>>, %arg28: memref<12x12xf32, #tpu.memory_space<vmem>>, %arg29: memref<1x12xf32, #tpu.memory_space<vmem>>, %arg30: memref<1x12xf32, #tpu.memory_space<vmem>>, %arg31: memref<1x12xf32, #tpu.memory_space<vmem>>, %arg32: memref<12x12xf32, #tpu.memory_space<vmem>>, %arg33: memref<1x12xf32, #tpu.memory_space<vmem>>, %arg34: memref<12x12xf32, #tpu.memory_space<vmem>>, %arg35: memref<1x12xf32, #tpu.memory_space<vmem>>, %arg36: memref<1x12xf32, #tpu.memory_space<vmem>>, %arg37: memref<1x12xf32, #tpu.memory_space<vmem>>, %arg38: memref<12x2048xf32, #tpu.memory_space<vmem>>, %arg39: memref<1x2048xf32, #tpu.memory_space<vmem>>, %arg40: memref<2048x12xf32, #tpu.memory_space<vmem>>, %arg41: memref<1x12xf32, #tpu.memory_space<vmem>>, %arg42: memref<1x12xf32, #tpu.memory_space<vmem>>, %arg43: memref<1x12xf32, #tpu.memory_space<vmem>>, %arg44: memref<12x128xf32, #tpu.memory_space<vmem>>, %arg45: memref<1x128xf32, #tpu.memory_space<vmem>>, %arg46: memref<2x8x128xf32, #tpu.memory_space<vmem>>, %arg47: memref<2x48xf32, #tpu.memory_space<vmem>>) attributes {dimension_semantics = [#tpu.dimension_semantics<parallel>], iteration_bounds = array<i64: 1>, scalar_prefetch = 0 : i64, scratch_operands = 0 : i64, tpu.core_type = #tpu.core_type<tc>, window_params = [{transform_indices = @transform_0, window_bounds = array<i64: 2, 8, 72>}, {pipeline_mode = #tpu.pipeline_mode<synchronous>, transform_indices = @transform_1, window_bounds = array<i64: 8, 12>}, {transform_indices = @transform_2, window_bounds = array<i64: 2, 24>}, {pipeline_mode = #tpu.pipeline_mode<synchronous>, transform_indices = @transform_3, window_bounds = array<i64: 72, 12>}, {pipeline_mode = #tpu.pipeline_mode<synchronous>, transform_indices = @transform_4, window_bounds = array<i64: 1, 12>}, {pipeline_mode = #tpu.pipeline_mode<synchronous>, transform_indices = @transform_5, window_bounds = array<i64: 12, 12>}, {pipeline_mode = #tpu.pipeline_mode<synchronous>, transform_indices = @transform_6, window_bounds = array<i64: 1, 12>}, {pipeline_mode = #tpu.pipeline_mode<synchronous>, transform_indices = @transform_7, window_bounds = array<i64: 12, 12>}, {pipeline_mode = #tpu.pipeline_mode<synchronous>, transform_indices = @transform_8, window_bounds = array<i64: 1, 12>}, {pipeline_mode = #tpu.pipeline_mode<synchronous>, transform_indices = @transform_9, window_bounds = array<i64: 12, 12>}, {pipeline_mode = #tpu.pipeline_mode<synchronous>, transform_indices = @transform_10, window_bounds = array<i64: 1, 12>}, {pipeline_mode = #tpu.pipeline_mode<synchronous>, transform_indices = @transform_11, window_bounds = array<i64: 12, 12>}, {pipeline_mode = #tpu.pipeline_mode<synchronous>, transform_indices = @transform_12, window_bounds = array<i64: 1, 12>}, {pipeline_mode = #tpu.pipeline_mode<synchronous>, transform_indices = @transform_13, window_bounds = array<i64: 1, 12>}, {pipeline_mode = #tpu.pipeline_mode<synchronous>, transform_indices = @transform_14, window_bounds = array<i64: 1, 12>}, {pipeline_mode = #tpu.pipeline_mode<synchronous>, transform_indices = @transform_15, window_bounds = array<i64: 12, 2048>}, {pipeline_mode = #tpu.pipeline_mode<synchronous>, transform_indices = @transform_16, window_bounds = array<i64: 1, 2048>}, {pipeline_mode = #tpu.pipeline_mode<synchronous>, transform_indices = @transform_17, window_bounds = array<i64: 2048, 12>}, {pipeline_mode = #tpu.pipeline_mode<synchronous>, transform_indices = @transform_18, window_bounds = array<i64: 1, 12>}, {pipeline_mode = #tpu.pipeline_mode<synchronous>, transform_indices = @transform_19, window_bounds = array<i64: 1, 12>}, {pipeline_mode = #tpu.pipeline_mode<synchronous>, transform_indices = @transform_20, window_bounds = array<i64: 1, 12>}, {pipeline_mode = #tpu.pipeline_mode<synchronous>, transform_indices = @transform_21, window_bounds = array<i64: 12, 48>}, {pipeline_mode = #tpu.pipeline_mode<synchronous>, transform_indices = @transform_22, window_bounds = array<i64: 1, 48>}, {pipeline_mode = #tpu.pipeline_mode<synchronous>, transform_indices = @transform_23, window_bounds = array<i64: 24, 12>}, {pipeline_mode = #tpu.pipeline_mode<synchronous>, transform_indices = @transform_24, window_bounds = array<i64: 1, 12>}, {pipeline_mode = #tpu.pipeline_mode<synchronous>, transform_indices = @transform_25, window_bounds = array<i64: 12, 12>}, {pipeline_mode = #tpu.pipeline_mode<synchronous>, transform_indices = @transform_26, window_bounds = array<i64: 1, 12>}, {pipeline_mode = #tpu.pipeline_mode<synchronous>, transform_indices = @transform_27, window_bounds = array<i64: 12, 12>}, {pipeline_mode = #tpu.pipeline_mode<synchronous>, transform_indices = @transform_28, window_bounds = array<i64: 1, 12>}, {pipeline_mode = #tpu.pipeline_mode<synchronous>, transform_indices = @transform_29, window_bounds = array<i64: 1, 12>}, {pipeline_mode = #tpu.pipeline_mode<synchronous>, transform_indices = @transform_30, window_bounds = array<i64: 1, 12>}, {pipeline_mode = #tpu.pipeline_mode<synchronous>, transform_indices = @transform_31, window_bounds = array<i64: 12, 12>}, {pipeline_mode = #tpu.pipeline_mode<synchronous>, transform_indices = @transform_32, window_bounds = array<i64: 1, 12>}, {pipeline_mode = #tpu.pipeline_mode<synchronous>, transform_indices = @transform_33, window_bounds = array<i64: 12, 12>}, {pipeline_mode = #tpu.pipeline_mode<synchronous>, transform_indices = @transform_34, window_bounds = array<i64: 1, 12>}, {pipeline_mode = #tpu.pipeline_mode<synchronous>, transform_indices = @transform_35, window_bounds = array<i64: 1, 12>}, {pipeline_mode = #tpu.pipeline_mode<synchronous>, transform_indices = @transform_36, window_bounds = array<i64: 1, 12>}, {pipeline_mode = #tpu.pipeline_mode<synchronous>, transform_indices = @transform_37, window_bounds = array<i64: 12, 2048>}, {pipeline_mode = #tpu.pipeline_mode<synchronous>, transform_indices = @transform_38, window_bounds = array<i64: 1, 2048>}, {pipeline_mode = #tpu.pipeline_mode<synchronous>, transform_indices = @transform_39, window_bounds = array<i64: 2048, 12>}, {pipeline_mode = #tpu.pipeline_mode<synchronous>, transform_indices = @transform_40, window_bounds = array<i64: 1, 12>}, {pipeline_mode = #tpu.pipeline_mode<synchronous>, transform_indices = @transform_41, window_bounds = array<i64: 1, 12>}, {pipeline_mode = #tpu.pipeline_mode<synchronous>, transform_indices = @transform_42, window_bounds = array<i64: 1, 12>}, {pipeline_mode = #tpu.pipeline_mode<synchronous>, transform_indices = @transform_43, window_bounds = array<i64: 12, 128>}, {pipeline_mode = #tpu.pipeline_mode<synchronous>, transform_indices = @transform_44, window_bounds = array<i64: 1, 128>}, {transform_indices = @transform_45, window_bounds = array<i64: 2, 8, 128>}, {transform_indices = @transform_46, window_bounds = array<i64: 2, 48>}]} {
    %c0 = arith.constant 0 : index
    %c0_0 = arith.constant 0 : index
    %c0_1 = arith.constant 0 : index
    %0 = vector.load %arg1[%c0, %c0_0, %c0_1] : memref<2x8x72xf32, #tpu.memory_space<vmem>>, vector<2x8x72xf32>
    %1 = vector.shape_cast %0 : vector<2x8x72xf32> to vector<16x72xf32>
    %c0_2 = arith.constant 0 : index
    %c0_3 = arith.constant 0 : index
    %2 = vector.load %arg4[%c0_2, %c0_3] : memref<72x12xf32, #tpu.memory_space<vmem>>, vector<72x12xf32>
    %cst = arith.constant dense<0.000000e+00> : vector<16x12xf32>
    %3 = tpu.matmul %1, %2, %cst {dimension_numbers = #tpu.dot_dimension_numbers<[1], [0], [0], [1], [0, 0, 1, 1], [], []>} : vector<16x72xf32>, vector<72x12xf32>, vector<16x12xf32> -> vector<16x12xf32>
    %c0_4 = arith.constant 0 : index
    %c0_5 = arith.constant 0 : index
    %4 = vector.load %arg5[%c0_4, %c0_5] : memref<1x12xf32, #tpu.memory_space<vmem>>, vector<1x12xf32>
    %5 = vector.broadcast %4 : vector<1x12xf32> to vector<16x12xf32>
    %6 = arith.addf %3, %5 : vector<16x12xf32>
    %7 = vector.shape_cast %6 : vector<16x12xf32> to vector<2x8x12xf32>
    %c0_6 = arith.constant 0 : index
    %c0_7 = arith.constant 0 : index
    %8 = vector.load %arg2[%c0_6, %c0_7] : memref<8x12xf32, #tpu.memory_space<vmem>>, vector<8x12xf32>
    %9 = vector.shape_cast %8 : vector<8x12xf32> to vector<1x8x12xf32>
    %10 = vector.broadcast %9 : vector<1x8x12xf32> to vector<2x8x12xf32>
    %11 = arith.addf %7, %10 : vector<2x8x12xf32>
    %12 = vector.shape_cast %11 : vector<2x8x12xf32> to vector<16x12xf32>
    %c0_8 = arith.constant 0 : index
    %c0_9 = arith.constant 0 : index
    %13 = vector.load %arg6[%c0_8, %c0_9] : memref<12x12xf32, #tpu.memory_space<vmem>>, vector<12x12xf32>
    %cst_10 = arith.constant dense<0.000000e+00> : vector<16x12xf32>
    %14 = tpu.matmul %12, %13, %cst_10 {dimension_numbers = #tpu.dot_dimension_numbers<[1], [0], [0], [1], [0, 0, 1, 1], [], []>} : vector<16x12xf32>, vector<12x12xf32>, vector<16x12xf32> -> vector<16x12xf32>
    %c0_11 = arith.constant 0 : index
    %c0_12 = arith.constant 0 : index
    %15 = vector.load %arg7[%c0_11, %c0_12] : memref<1x12xf32, #tpu.memory_space<vmem>>, vector<1x12xf32>
    %16 = vector.broadcast %15 : vector<1x12xf32> to vector<16x12xf32>
    %17 = arith.addf %14, %16 : vector<16x12xf32>
    %18 = vector.shape_cast %17 : vector<16x12xf32> to vector<2x8x12xf32>
    %c0_13 = arith.constant 0 : index
    %c0_14 = arith.constant 0 : index
    %19 = vector.load %arg8[%c0_13, %c0_14] : memref<12x12xf32, #tpu.memory_space<vmem>>, vector<12x12xf32>
    %cst_15 = arith.constant dense<0.000000e+00> : vector<16x12xf32>
    %20 = tpu.matmul %12, %19, %cst_15 {dimension_numbers = #tpu.dot_dimension_numbers<[1], [0], [0], [1], [0, 0, 1, 1], [], []>} : vector<16x12xf32>, vector<12x12xf32>, vector<16x12xf32> -> vector<16x12xf32>
    %c0_16 = arith.constant 0 : index
    %c0_17 = arith.constant 0 : index
    %21 = vector.load %arg9[%c0_16, %c0_17] : memref<1x12xf32, #tpu.memory_space<vmem>>, vector<1x12xf32>
    %22 = vector.broadcast %21 : vector<1x12xf32> to vector<16x12xf32>
    %23 = arith.addf %20, %22 : vector<16x12xf32>
    %24 = vector.shape_cast %23 : vector<16x12xf32> to vector<2x8x12xf32>
    %c0_18 = arith.constant 0 : index
    %c0_19 = arith.constant 0 : index
    %25 = vector.load %arg10[%c0_18, %c0_19] : memref<12x12xf32, #tpu.memory_space<vmem>>, vector<12x12xf32>
    %cst_20 = arith.constant dense<0.000000e+00> : vector<16x12xf32>
    %26 = tpu.matmul %12, %25, %cst_20 {dimension_numbers = #tpu.dot_dimension_numbers<[1], [0], [0], [1], [0, 0, 1, 1], [], []>} : vector<16x12xf32>, vector<12x12xf32>, vector<16x12xf32> -> vector<16x12xf32>
    %c0_21 = arith.constant 0 : index
    %c0_22 = arith.constant 0 : index
    %27 = vector.load %arg11[%c0_21, %c0_22] : memref<1x12xf32, #tpu.memory_space<vmem>>, vector<1x12xf32>
    %28 = vector.broadcast %27 : vector<1x12xf32> to vector<16x12xf32>
    %29 = arith.addf %26, %28 : vector<16x12xf32>
    %30 = vector.shape_cast %29 : vector<16x12xf32> to vector<2x8x12xf32>
    %31 = tpu.iota {dimensions = array<i32: 2>} : vector<1x1x12xi32>
    %cst_23 = arith.constant 0.000000e+00 : f32
    %32 = vector.broadcast %cst_23 : f32 to vector<2x8x12xf32>
    %c0_i32 = arith.constant 0 : i32
    %33 = vector.broadcast %c0_i32 : i32 to vector<1x1x12xi32>
    %34 = arith.cmpi sge, %31, %33 : vector<1x1x12xi32>
    %c6_i32 = arith.constant 6 : i32
    %35 = vector.broadcast %c6_i32 : i32 to vector<1x1x12xi32>
    %36 = arith.cmpi slt, %31, %35 : vector<1x1x12xi32>
    %37 = arith.andi %34, %36 : vector<1x1x12xi1>
    %cst_24 = arith.constant 1.000000e+00 : f32
    %cst_25 = arith.constant 0.000000e+00 : f32
    %38 = vector.broadcast %cst_24 : f32 to vector<1x1x12xf32>
    %39 = vector.broadcast %cst_25 : f32 to vector<1x1x12xf32>
    %40 = arith.select %37, %38, %39 : vector<1x1x12xi1>, vector<1x1x12xf32>
    %41 = vector.broadcast %40 : vector<1x1x12xf32> to vector<2x8x12xf32>
    %42 = arith.mulf %24, %41 : vector<2x8x12xf32>
    "tpu.trace_start"() <{level = 10 : i32, message = "bqd,bkd->bqk"}> : () -> ()
    %cst_26 = arith.constant dense<0.000000e+00> : vector<2x8x8xf32>
    %43 = tpu.matmul %18, %42, %cst_26 {dimension_numbers = #tpu.dot_dimension_numbers<[2], [2], [1], [1], [0, 0, 0, 1, 1, 1], [0], [0]>} : vector<2x8x12xf32>, vector<2x8x12xf32>, vector<2x8x8xf32> -> vector<2x8x8xf32>
    "tpu.trace_stop"() : () -> ()
    %cst_27 = arith.constant 0.408248305 : f32
    %44 = vector.broadcast %cst_27 : f32 to vector<2x8x8xf32>
    %45 = arith.mulf %43, %44 : vector<2x8x8xf32>
    %cst_28 = arith.constant dense<0xFF800000> : vector<2x8xf32>
    %46 = vector.multi_reduction <maximumf>, %45, %cst_28 [2] : vector<2x8x8xf32> to vector<2x8xf32>
    %47 = vector.shape_cast %46 : vector<2x8xf32> to vector<2x8x1xf32>
    %48 = vector.broadcast %47 : vector<2x8x1xf32> to vector<2x8x8xf32>
    %49 = arith.subf %45, %48 : vector<2x8x8xf32>
    %50 = math.exp %49 : vector<2x8x8xf32>
    %cst_29 = arith.constant dense<0.000000e+00> : vector<2x8xf32>
    %51 = vector.multi_reduction <add>, %50, %cst_29 [2] : vector<2x8x8xf32> to vector<2x8xf32>
    %52 = vector.shape_cast %51 : vector<2x8xf32> to vector<2x8x1xf32>
    %53 = vector.broadcast %52 : vector<2x8x1xf32> to vector<2x8x8xf32>
    %54 = arith.divf %50, %53 : vector<2x8x8xf32>
    %55 = vector.broadcast %40 : vector<1x1x12xf32> to vector<2x8x12xf32>
    %56 = arith.mulf %30, %55 : vector<2x8x12xf32>
    "tpu.trace_start"() <{level = 10 : i32, message = "bqk,bkd->bqd"}> : () -> ()
    %cst_30 = arith.constant dense<0.000000e+00> : vector<2x8x12xf32>
    %57 = tpu.matmul %54, %56, %cst_30 {dimension_numbers = #tpu.dot_dimension_numbers<[2], [1], [1], [2], [0, 0, 0, 1, 1, 2], [0], [0]>} : vector<2x8x8xf32>, vector<2x8x12xf32>, vector<2x8x12xf32> -> vector<2x8x12xf32>
    "tpu.trace_stop"() : () -> ()
    %58 = arith.addf %32, %57 : vector<2x8x12xf32>
    %c6_i32_31 = arith.constant 6 : i32
    %59 = vector.broadcast %c6_i32_31 : i32 to vector<1x1x12xi32>
    %60 = arith.cmpi sge, %31, %59 : vector<1x1x12xi32>
    %c12_i32 = arith.constant 12 : i32
    %61 = vector.broadcast %c12_i32 : i32 to vector<1x1x12xi32>
    %62 = arith.cmpi slt, %31, %61 : vector<1x1x12xi32>
    %63 = arith.andi %60, %62 : vector<1x1x12xi1>
    %cst_32 = arith.constant 1.000000e+00 : f32
    %cst_33 = arith.constant 0.000000e+00 : f32
    %64 = vector.broadcast %cst_32 : f32 to vector<1x1x12xf32>
    %65 = vector.broadcast %cst_33 : f32 to vector<1x1x12xf32>
    %66 = arith.select %63, %64, %65 : vector<1x1x12xi1>, vector<1x1x12xf32>
    %67 = vector.broadcast %66 : vector<1x1x12xf32> to vector<2x8x12xf32>
    %68 = arith.mulf %24, %67 : vector<2x8x12xf32>
    "tpu.trace_start"() <{level = 10 : i32, message = "bqd,bkd->bqk"}> : () -> ()
    %cst_34 = arith.constant dense<0.000000e+00> : vector<2x8x8xf32>
    %69 = tpu.matmul %18, %68, %cst_34 {dimension_numbers = #tpu.dot_dimension_numbers<[2], [2], [1], [1], [0, 0, 0, 1, 1, 1], [0], [0]>} : vector<2x8x12xf32>, vector<2x8x12xf32>, vector<2x8x8xf32> -> vector<2x8x8xf32>
    "tpu.trace_stop"() : () -> ()
    %cst_35 = arith.constant 0.408248305 : f32
    %70 = vector.broadcast %cst_35 : f32 to vector<2x8x8xf32>
    %71 = arith.mulf %69, %70 : vector<2x8x8xf32>
    %cst_36 = arith.constant dense<0xFF800000> : vector<2x8xf32>
    %72 = vector.multi_reduction <maximumf>, %71, %cst_36 [2] : vector<2x8x8xf32> to vector<2x8xf32>
    %73 = vector.shape_cast %72 : vector<2x8xf32> to vector<2x8x1xf32>
    %74 = vector.broadcast %73 : vector<2x8x1xf32> to vector<2x8x8xf32>
    %75 = arith.subf %71, %74 : vector<2x8x8xf32>
    %76 = math.exp %75 : vector<2x8x8xf32>
    %cst_37 = arith.constant dense<0.000000e+00> : vector<2x8xf32>
    %77 = vector.multi_reduction <add>, %76, %cst_37 [2] : vector<2x8x8xf32> to vector<2x8xf32>
    %78 = vector.shape_cast %77 : vector<2x8xf32> to vector<2x8x1xf32>
    %79 = vector.broadcast %78 : vector<2x8x1xf32> to vector<2x8x8xf32>
    %80 = arith.divf %76, %79 : vector<2x8x8xf32>
    %81 = vector.broadcast %66 : vector<1x1x12xf32> to vector<2x8x12xf32>
    %82 = arith.mulf %30, %81 : vector<2x8x12xf32>
    "tpu.trace_start"() <{level = 10 : i32, message = "bqk,bkd->bqd"}> : () -> ()
    %cst_38 = arith.constant dense<0.000000e+00> : vector<2x8x12xf32>
    %83 = tpu.matmul %80, %82, %cst_38 {dimension_numbers = #tpu.dot_dimension_numbers<[2], [1], [1], [2], [0, 0, 0, 1, 1, 2], [0], [0]>} : vector<2x8x8xf32>, vector<2x8x12xf32>, vector<2x8x12xf32> -> vector<2x8x12xf32>
    "tpu.trace_stop"() : () -> ()
    %84 = arith.addf %58, %83 : vector<2x8x12xf32>
    %85 = vector.shape_cast %84 : vector<2x8x12xf32> to vector<16x12xf32>
    %c0_39 = arith.constant 0 : index
    %c0_40 = arith.constant 0 : index
    %86 = vector.load %arg12[%c0_39, %c0_40] : memref<12x12xf32, #tpu.memory_space<vmem>>, vector<12x12xf32>
    %cst_41 = arith.constant dense<0.000000e+00> : vector<16x12xf32>
    %87 = tpu.matmul %85, %86, %cst_41 {dimension_numbers = #tpu.dot_dimension_numbers<[1], [0], [0], [1], [0, 0, 1, 1], [], []>} : vector<16x12xf32>, vector<12x12xf32>, vector<16x12xf32> -> vector<16x12xf32>
    %c0_42 = arith.constant 0 : index
    %c0_43 = arith.constant 0 : index
    %88 = vector.load %arg13[%c0_42, %c0_43] : memref<1x12xf32, #tpu.memory_space<vmem>>, vector<1x12xf32>
    %89 = vector.broadcast %88 : vector<1x12xf32> to vector<16x12xf32>
    %90 = arith.addf %87, %89 : vector<16x12xf32>
    %91 = arith.addf %12, %90 : vector<16x12xf32>
    %cst_44 = arith.constant dense<0.000000e+00> : vector<16xf32>
    %92 = vector.multi_reduction <add>, %91, %cst_44 [1] : vector<16x12xf32> to vector<16xf32>
    %93 = vector.shape_cast %92 : vector<16xf32> to vector<16x1xf32>
    %cst_45 = arith.constant 1.200000e+01 : f32
    %94 = vector.broadcast %cst_45 : f32 to vector<16x1xf32>
    %95 = arith.divf %93, %94 : vector<16x1xf32>
    %96 = vector.broadcast %95 : vector<16x1xf32> to vector<16x12xf32>
    %97 = arith.subf %91, %96 : vector<16x12xf32>
    %98 = arith.mulf %97, %97 : vector<16x12xf32>
    %cst_46 = arith.constant dense<0.000000e+00> : vector<16xf32>
    %99 = vector.multi_reduction <add>, %98, %cst_46 [1] : vector<16x12xf32> to vector<16xf32>
    %100 = vector.shape_cast %99 : vector<16xf32> to vector<16x1xf32>
    %cst_47 = arith.constant 1.200000e+01 : f32
    %101 = vector.broadcast %cst_47 : f32 to vector<16x1xf32>
    %102 = arith.divf %100, %101 : vector<16x1xf32>
    %103 = vector.broadcast %95 : vector<16x1xf32> to vector<16x12xf32>
    %104 = arith.subf %91, %103 : vector<16x12xf32>
    %cst_48 = arith.constant 9.99999974E-6 : f32
    %105 = vector.broadcast %cst_48 : f32 to vector<16x1xf32>
    %106 = arith.addf %102, %105 : vector<16x1xf32>
    %107 = math.rsqrt %106 : vector<16x1xf32>
    %108 = vector.broadcast %107 : vector<16x1xf32> to vector<16x12xf32>
    %109 = arith.mulf %104, %108 : vector<16x12xf32>
    %c0_49 = arith.constant 0 : index
    %c0_50 = arith.constant 0 : index
    %110 = vector.load %arg14[%c0_49, %c0_50] : memref<1x12xf32, #tpu.memory_space<vmem>>, vector<1x12xf32>
    %111 = vector.broadcast %110 : vector<1x12xf32> to vector<16x12xf32>
    %112 = arith.mulf %109, %111 : vector<16x12xf32>
    %c0_51 = arith.constant 0 : index
    %c0_52 = arith.constant 0 : index
    %113 = vector.load %arg15[%c0_51, %c0_52] : memref<1x12xf32, #tpu.memory_space<vmem>>, vector<1x12xf32>
    %114 = vector.broadcast %113 : vector<1x12xf32> to vector<16x12xf32>
    %115 = arith.addf %112, %114 : vector<16x12xf32>
    %cst_53 = arith.constant 0.000000e+00 : f32
    %116 = vector.broadcast %cst_53 : f32 to vector<16x12xf32>
    %c0_54 = arith.constant 0 : index
    %c0_55 = arith.constant 0 : index
    %117 = vector.load %arg16[%c0_54, %c0_55] : memref<12x2048xf32, #tpu.memory_space<vmem>>, vector<12x512xf32>
    %cst_56 = arith.constant dense<0.000000e+00> : vector<16x512xf32>
    %118 = tpu.matmul %115, %117, %cst_56 {dimension_numbers = #tpu.dot_dimension_numbers<[1], [0], [0], [1], [0, 0, 1, 1], [], []>} : vector<16x12xf32>, vector<12x512xf32>, vector<16x512xf32> -> vector<16x512xf32>
    %c0_57 = arith.constant 0 : index
    %c0_58 = arith.constant 0 : index
    %119 = vector.load %arg17[%c0_57, %c0_58] : memref<1x2048xf32, #tpu.memory_space<vmem>>, vector<1x512xf32>
    %120 = vector.broadcast %119 : vector<1x512xf32> to vector<16x512xf32>
    %121 = arith.addf %118, %120 : vector<16x512xf32>
    %cst_59 = arith.constant 0.000000e+00 : f32
    %122 = vector.broadcast %cst_59 : f32 to vector<16x512xf32>
    %123 = arith.maximumf %121, %122 : vector<16x512xf32>
    %c0_60 = arith.constant 0 : index
    %c0_61 = arith.constant 0 : index
    %124 = vector.load %arg18[%c0_60, %c0_61] : memref<2048x12xf32, #tpu.memory_space<vmem>>, vector<512x12xf32>
    %cst_62 = arith.constant dense<0.000000e+00> : vector<16x12xf32>
    %125 = tpu.matmul %123, %124, %cst_62 {dimension_numbers = #tpu.dot_dimension_numbers<[1], [0], [0], [1], [0, 0, 1, 1], [], []>} : vector<16x512xf32>, vector<512x12xf32>, vector<16x12xf32> -> vector<16x12xf32>
    %126 = arith.addf %116, %125 : vector<16x12xf32>
    %c0_63 = arith.constant 0 : index
    %c512 = arith.constant 512 : index
    %127 = vector.load %arg16[%c0_63, %c512] : memref<12x2048xf32, #tpu.memory_space<vmem>>, vector<12x512xf32>
    %cst_64 = arith.constant dense<0.000000e+00> : vector<16x512xf32>
    %128 = tpu.matmul %115, %127, %cst_64 {dimension_numbers = #tpu.dot_dimension_numbers<[1], [0], [0], [1], [0, 0, 1, 1], [], []>} : vector<16x12xf32>, vector<12x512xf32>, vector<16x512xf32> -> vector<16x512xf32>
    %c0_65 = arith.constant 0 : index
    %c512_66 = arith.constant 512 : index
    %129 = vector.load %arg17[%c0_65, %c512_66] : memref<1x2048xf32, #tpu.memory_space<vmem>>, vector<1x512xf32>
    %130 = vector.broadcast %129 : vector<1x512xf32> to vector<16x512xf32>
    %131 = arith.addf %128, %130 : vector<16x512xf32>
    %cst_67 = arith.constant 0.000000e+00 : f32
    %132 = vector.broadcast %cst_67 : f32 to vector<16x512xf32>
    %133 = arith.maximumf %131, %132 : vector<16x512xf32>
    %c512_68 = arith.constant 512 : index
    %c0_69 = arith.constant 0 : index
    %134 = vector.load %arg18[%c512_68, %c0_69] : memref<2048x12xf32, #tpu.memory_space<vmem>>, vector<512x12xf32>
    %cst_70 = arith.constant dense<0.000000e+00> : vector<16x12xf32>
    %135 = tpu.matmul %133, %134, %cst_70 {dimension_numbers = #tpu.dot_dimension_numbers<[1], [0], [0], [1], [0, 0, 1, 1], [], []>} : vector<16x512xf32>, vector<512x12xf32>, vector<16x12xf32> -> vector<16x12xf32>
    %136 = arith.addf %126, %135 : vector<16x12xf32>
    %c0_71 = arith.constant 0 : index
    %c1024 = arith.constant 1024 : index
    %137 = vector.load %arg16[%c0_71, %c1024] : memref<12x2048xf32, #tpu.memory_space<vmem>>, vector<12x512xf32>
    %cst_72 = arith.constant dense<0.000000e+00> : vector<16x512xf32>
    %138 = tpu.matmul %115, %137, %cst_72 {dimension_numbers = #tpu.dot_dimension_numbers<[1], [0], [0], [1], [0, 0, 1, 1], [], []>} : vector<16x12xf32>, vector<12x512xf32>, vector<16x512xf32> -> vector<16x512xf32>
    %c0_73 = arith.constant 0 : index
    %c1024_74 = arith.constant 1024 : index
    %139 = vector.load %arg17[%c0_73, %c1024_74] : memref<1x2048xf32, #tpu.memory_space<vmem>>, vector<1x512xf32>
    %140 = vector.broadcast %139 : vector<1x512xf32> to vector<16x512xf32>
    %141 = arith.addf %138, %140 : vector<16x512xf32>
    %cst_75 = arith.constant 0.000000e+00 : f32
    %142 = vector.broadcast %cst_75 : f32 to vector<16x512xf32>
    %143 = arith.maximumf %141, %142 : vector<16x512xf32>
    %c1024_76 = arith.constant 1024 : index
    %c0_77 = arith.constant 0 : index
    %144 = vector.load %arg18[%c1024_76, %c0_77] : memref<2048x12xf32, #tpu.memory_space<vmem>>, vector<512x12xf32>
    %cst_78 = arith.constant dense<0.000000e+00> : vector<16x12xf32>
    %145 = tpu.matmul %143, %144, %cst_78 {dimension_numbers = #tpu.dot_dimension_numbers<[1], [0], [0], [1], [0, 0, 1, 1], [], []>} : vector<16x512xf32>, vector<512x12xf32>, vector<16x12xf32> -> vector<16x12xf32>
    %146 = arith.addf %136, %145 : vector<16x12xf32>
    %c0_79 = arith.constant 0 : index
    %c1536 = arith.constant 1536 : index
    %147 = vector.load %arg16[%c0_79, %c1536] : memref<12x2048xf32, #tpu.memory_space<vmem>>, vector<12x512xf32>
    %cst_80 = arith.constant dense<0.000000e+00> : vector<16x512xf32>
    %148 = tpu.matmul %115, %147, %cst_80 {dimension_numbers = #tpu.dot_dimension_numbers<[1], [0], [0], [1], [0, 0, 1, 1], [], []>} : vector<16x12xf32>, vector<12x512xf32>, vector<16x512xf32> -> vector<16x512xf32>
    %c0_81 = arith.constant 0 : index
    %c1536_82 = arith.constant 1536 : index
    %149 = vector.load %arg17[%c0_81, %c1536_82] : memref<1x2048xf32, #tpu.memory_space<vmem>>, vector<1x512xf32>
    %150 = vector.broadcast %149 : vector<1x512xf32> to vector<16x512xf32>
    %151 = arith.addf %148, %150 : vector<16x512xf32>
    %cst_83 = arith.constant 0.000000e+00 : f32
    %152 = vector.broadcast %cst_83 : f32 to vector<16x512xf32>
    %153 = arith.maximumf %151, %152 : vector<16x512xf32>
    %c1536_84 = arith.constant 1536 : index
    %c0_85 = arith.constant 0 : index
    %154 = vector.load %arg18[%c1536_84, %c0_85] : memref<2048x12xf32, #tpu.memory_space<vmem>>, vector<512x12xf32>
    %cst_86 = arith.constant dense<0.000000e+00> : vector<16x12xf32>
    %155 = tpu.matmul %153, %154, %cst_86 {dimension_numbers = #tpu.dot_dimension_numbers<[1], [0], [0], [1], [0, 0, 1, 1], [], []>} : vector<16x512xf32>, vector<512x12xf32>, vector<16x12xf32> -> vector<16x12xf32>
    %156 = arith.addf %146, %155 : vector<16x12xf32>
    %c0_87 = arith.constant 0 : index
    %c0_88 = arith.constant 0 : index
    %157 = vector.load %arg19[%c0_87, %c0_88] : memref<1x12xf32, #tpu.memory_space<vmem>>, vector<1x12xf32>
    %158 = vector.broadcast %157 : vector<1x12xf32> to vector<16x12xf32>
    %159 = arith.addf %156, %158 : vector<16x12xf32>
    %160 = arith.addf %115, %159 : vector<16x12xf32>
    %cst_89 = arith.constant dense<0.000000e+00> : vector<16xf32>
    %161 = vector.multi_reduction <add>, %160, %cst_89 [1] : vector<16x12xf32> to vector<16xf32>
    %162 = vector.shape_cast %161 : vector<16xf32> to vector<16x1xf32>
    %cst_90 = arith.constant 1.200000e+01 : f32
    %163 = vector.broadcast %cst_90 : f32 to vector<16x1xf32>
    %164 = arith.divf %162, %163 : vector<16x1xf32>
    %165 = vector.broadcast %164 : vector<16x1xf32> to vector<16x12xf32>
    %166 = arith.subf %160, %165 : vector<16x12xf32>
    %167 = arith.mulf %166, %166 : vector<16x12xf32>
    %cst_91 = arith.constant dense<0.000000e+00> : vector<16xf32>
    %168 = vector.multi_reduction <add>, %167, %cst_91 [1] : vector<16x12xf32> to vector<16xf32>
    %169 = vector.shape_cast %168 : vector<16xf32> to vector<16x1xf32>
    %cst_92 = arith.constant 1.200000e+01 : f32
    %170 = vector.broadcast %cst_92 : f32 to vector<16x1xf32>
    %171 = arith.divf %169, %170 : vector<16x1xf32>
    %172 = vector.broadcast %164 : vector<16x1xf32> to vector<16x12xf32>
    %173 = arith.subf %160, %172 : vector<16x12xf32>
    %cst_93 = arith.constant 9.99999974E-6 : f32
    %174 = vector.broadcast %cst_93 : f32 to vector<16x1xf32>
    %175 = arith.addf %171, %174 : vector<16x1xf32>
    %176 = math.rsqrt %175 : vector<16x1xf32>
    %177 = vector.broadcast %176 : vector<16x1xf32> to vector<16x12xf32>
    %178 = arith.mulf %173, %177 : vector<16x12xf32>
    %c0_94 = arith.constant 0 : index
    %c0_95 = arith.constant 0 : index
    %179 = vector.load %arg20[%c0_94, %c0_95] : memref<1x12xf32, #tpu.memory_space<vmem>>, vector<1x12xf32>
    %180 = vector.broadcast %179 : vector<1x12xf32> to vector<16x12xf32>
    %181 = arith.mulf %178, %180 : vector<16x12xf32>
    %c0_96 = arith.constant 0 : index
    %c0_97 = arith.constant 0 : index
    %182 = vector.load %arg21[%c0_96, %c0_97] : memref<1x12xf32, #tpu.memory_space<vmem>>, vector<1x12xf32>
    %183 = vector.broadcast %182 : vector<1x12xf32> to vector<16x12xf32>
    %184 = arith.addf %181, %183 : vector<16x12xf32>
    %185 = vector.shape_cast %184 : vector<16x12xf32> to vector<2x8x12xf32>
    %cst_98 = arith.constant dense<0.000000e+00> : vector<2x12xf32>
    %186 = vector.multi_reduction <add>, %185, %cst_98 [1] : vector<2x8x12xf32> to vector<2x12xf32>
    %cst_99 = arith.constant 8.000000e+00 : f32
    %187 = vector.broadcast %cst_99 : f32 to vector<2x12xf32>
    %188 = arith.divf %186, %187 : vector<2x12xf32>
    %c0_100 = arith.constant 0 : index
    %c0_101 = arith.constant 0 : index
    %189 = vector.load %arg22[%c0_100, %c0_101] : memref<12x48xf32, #tpu.memory_space<vmem>>, vector<12x48xf32>
    %cst_102 = arith.constant dense<0.000000e+00> : vector<2x48xf32>
    %190 = tpu.matmul %188, %189, %cst_102 {dimension_numbers = #tpu.dot_dimension_numbers<[1], [0], [0], [1], [0, 0, 1, 1], [], []>} : vector<2x12xf32>, vector<12x48xf32>, vector<2x48xf32> -> vector<2x48xf32>
    %c0_103 = arith.constant 0 : index
    %c0_104 = arith.constant 0 : index
    %191 = vector.load %arg23[%c0_103, %c0_104] : memref<1x48xf32, #tpu.memory_space<vmem>>, vector<1x48xf32>
    %192 = vector.broadcast %191 : vector<1x48xf32> to vector<2x48xf32>
    %193 = arith.addf %190, %192 : vector<2x48xf32>
    %194 = vector.extract_strided_slice %193 {offsets = [0, 0], sizes = [2, 24], strides = [1, 1]} : vector<2x48xf32> to vector<2x24xf32>
    %195 = vector.extract_strided_slice %193 {offsets = [0, 24], sizes = [2, 24], strides = [1, 1]} : vector<2x48xf32> to vector<2x24xf32>
    %c0_105 = arith.constant 0 : index
    %c0_106 = arith.constant 0 : index
    %196 = vector.load %arg3[%c0_105, %c0_106] : memref<2x24xf32, #tpu.memory_space<vmem>>, vector<2x24xf32>
    %cst_107 = arith.constant 5.000000e-01 : f32
    %197 = vector.broadcast %cst_107 : f32 to vector<2x24xf32>
    %198 = arith.mulf %197, %195 : vector<2x24xf32>
    %199 = math.exp %198 : vector<2x24xf32>
    %200 = arith.mulf %196, %199 : vector<2x24xf32>
    %201 = arith.addf %194, %200 : vector<2x24xf32>
    %c0_108 = arith.constant 0 : index
    %c0_109 = arith.constant 0 : index
    %202 = vector.load %arg24[%c0_108, %c0_109] : memref<24x12xf32, #tpu.memory_space<vmem>>, vector<24x12xf32>
    %cst_110 = arith.constant dense<0.000000e+00> : vector<2x12xf32>
    %203 = tpu.matmul %201, %202, %cst_110 {dimension_numbers = #tpu.dot_dimension_numbers<[1], [0], [0], [1], [0, 0, 1, 1], [], []>} : vector<2x24xf32>, vector<24x12xf32>, vector<2x12xf32> -> vector<2x12xf32>
    %c0_111 = arith.constant 0 : index
    %c0_112 = arith.constant 0 : index
    %204 = vector.load %arg25[%c0_111, %c0_112] : memref<1x12xf32, #tpu.memory_space<vmem>>, vector<1x12xf32>
    %205 = vector.broadcast %204 : vector<1x12xf32> to vector<2x12xf32>
    %206 = arith.addf %203, %205 : vector<2x12xf32>
    %c0_113 = arith.constant 0 : index
    %c0_114 = arith.constant 0 : index
    %207 = vector.load %arg26[%c0_113, %c0_114] : memref<12x12xf32, #tpu.memory_space<vmem>>, vector<12x12xf32>
    %cst_115 = arith.constant dense<0.000000e+00> : vector<2x12xf32>
    %208 = tpu.matmul %206, %207, %cst_115 {dimension_numbers = #tpu.dot_dimension_numbers<[1], [0], [0], [1], [0, 0, 1, 1], [], []>} : vector<2x12xf32>, vector<12x12xf32>, vector<2x12xf32> -> vector<2x12xf32>
    %c0_116 = arith.constant 0 : index
    %c0_117 = arith.constant 0 : index
    %209 = vector.load %arg27[%c0_116, %c0_117] : memref<1x12xf32, #tpu.memory_space<vmem>>, vector<1x12xf32>
    %210 = vector.broadcast %209 : vector<1x12xf32> to vector<2x12xf32>
    %211 = arith.addf %208, %210 : vector<2x12xf32>
    %c0_118 = arith.constant 0 : index
    %c0_119 = arith.constant 0 : index
    %212 = vector.load %arg28[%c0_118, %c0_119] : memref<12x12xf32, #tpu.memory_space<vmem>>, vector<12x12xf32>
    %cst_120 = arith.constant dense<0.000000e+00> : vector<2x12xf32>
    %213 = tpu.matmul %211, %212, %cst_120 {dimension_numbers = #tpu.dot_dimension_numbers<[1], [0], [0], [1], [0, 0, 1, 1], [], []>} : vector<2x12xf32>, vector<12x12xf32>, vector<2x12xf32> -> vector<2x12xf32>
    %c0_121 = arith.constant 0 : index
    %c0_122 = arith.constant 0 : index
    %214 = vector.load %arg29[%c0_121, %c0_122] : memref<1x12xf32, #tpu.memory_space<vmem>>, vector<1x12xf32>
    %215 = vector.broadcast %214 : vector<1x12xf32> to vector<2x12xf32>
    %216 = arith.addf %213, %215 : vector<2x12xf32>
    %217 = arith.addf %206, %216 : vector<2x12xf32>
    %cst_123 = arith.constant dense<0.000000e+00> : vector<2xf32>
    %218 = vector.multi_reduction <add>, %217, %cst_123 [1] : vector<2x12xf32> to vector<2xf32>
    %219 = vector.shape_cast %218 : vector<2xf32> to vector<2x1xf32>
    %cst_124 = arith.constant 1.200000e+01 : f32
    %220 = vector.broadcast %cst_124 : f32 to vector<2x1xf32>
    %221 = arith.divf %219, %220 : vector<2x1xf32>
    %222 = vector.broadcast %221 : vector<2x1xf32> to vector<2x12xf32>
    %223 = arith.subf %217, %222 : vector<2x12xf32>
    %224 = arith.mulf %223, %223 : vector<2x12xf32>
    %cst_125 = arith.constant dense<0.000000e+00> : vector<2xf32>
    %225 = vector.multi_reduction <add>, %224, %cst_125 [1] : vector<2x12xf32> to vector<2xf32>
    %226 = vector.shape_cast %225 : vector<2xf32> to vector<2x1xf32>
    %cst_126 = arith.constant 1.200000e+01 : f32
    %227 = vector.broadcast %cst_126 : f32 to vector<2x1xf32>
    %228 = arith.divf %226, %227 : vector<2x1xf32>
    %229 = vector.broadcast %221 : vector<2x1xf32> to vector<2x12xf32>
    %230 = arith.subf %217, %229 : vector<2x12xf32>
    %cst_127 = arith.constant 9.99999974E-6 : f32
    %231 = vector.broadcast %cst_127 : f32 to vector<2x1xf32>
    %232 = arith.addf %228, %231 : vector<2x1xf32>
    %233 = math.rsqrt %232 : vector<2x1xf32>
    %234 = vector.broadcast %233 : vector<2x1xf32> to vector<2x12xf32>
    %235 = arith.mulf %230, %234 : vector<2x12xf32>
    %c0_128 = arith.constant 0 : index
    %c0_129 = arith.constant 0 : index
    %236 = vector.load %arg30[%c0_128, %c0_129] : memref<1x12xf32, #tpu.memory_space<vmem>>, vector<1x12xf32>
    %237 = vector.broadcast %236 : vector<1x12xf32> to vector<2x12xf32>
    %238 = arith.mulf %235, %237 : vector<2x12xf32>
    %c0_130 = arith.constant 0 : index
    %c0_131 = arith.constant 0 : index
    %239 = vector.load %arg31[%c0_130, %c0_131] : memref<1x12xf32, #tpu.memory_space<vmem>>, vector<1x12xf32>
    %240 = vector.broadcast %239 : vector<1x12xf32> to vector<2x12xf32>
    %241 = arith.addf %238, %240 : vector<2x12xf32>
    %c0_132 = arith.constant 0 : index
    %c0_133 = arith.constant 0 : index
    %242 = vector.load %arg32[%c0_132, %c0_133] : memref<12x12xf32, #tpu.memory_space<vmem>>, vector<12x12xf32>
    %cst_134 = arith.constant dense<0.000000e+00> : vector<2x12xf32>
    %243 = tpu.matmul %206, %242, %cst_134 {dimension_numbers = #tpu.dot_dimension_numbers<[1], [0], [0], [1], [0, 0, 1, 1], [], []>} : vector<2x12xf32>, vector<12x12xf32>, vector<2x12xf32> -> vector<2x12xf32>
    %c0_135 = arith.constant 0 : index
    %c0_136 = arith.constant 0 : index
    %244 = vector.load %arg33[%c0_135, %c0_136] : memref<1x12xf32, #tpu.memory_space<vmem>>, vector<1x12xf32>
    %245 = vector.broadcast %244 : vector<1x12xf32> to vector<2x12xf32>
    %246 = arith.addf %243, %245 : vector<2x12xf32>
    %c0_137 = arith.constant 0 : index
    %c0_138 = arith.constant 0 : index
    %247 = vector.load %arg34[%c0_137, %c0_138] : memref<12x12xf32, #tpu.memory_space<vmem>>, vector<12x12xf32>
    %cst_139 = arith.constant dense<0.000000e+00> : vector<2x12xf32>
    %248 = tpu.matmul %246, %247, %cst_139 {dimension_numbers = #tpu.dot_dimension_numbers<[1], [0], [0], [1], [0, 0, 1, 1], [], []>} : vector<2x12xf32>, vector<12x12xf32>, vector<2x12xf32> -> vector<2x12xf32>
    %c0_140 = arith.constant 0 : index
    %c0_141 = arith.constant 0 : index
    %249 = vector.load %arg35[%c0_140, %c0_141] : memref<1x12xf32, #tpu.memory_space<vmem>>, vector<1x12xf32>
    %250 = vector.broadcast %249 : vector<1x12xf32> to vector<2x12xf32>
    %251 = arith.addf %248, %250 : vector<2x12xf32>
    %252 = arith.addf %241, %251 : vector<2x12xf32>
    %cst_142 = arith.constant dense<0.000000e+00> : vector<2xf32>
    %253 = vector.multi_reduction <add>, %252, %cst_142 [1] : vector<2x12xf32> to vector<2xf32>
    %254 = vector.shape_cast %253 : vector<2xf32> to vector<2x1xf32>
    %cst_143 = arith.constant 1.200000e+01 : f32
    %255 = vector.broadcast %cst_143 : f32 to vector<2x1xf32>
    %256 = arith.divf %254, %255 : vector<2x1xf32>
    %257 = vector.broadcast %256 : vector<2x1xf32> to vector<2x12xf32>
    %258 = arith.subf %252, %257 : vector<2x12xf32>
    %259 = arith.mulf %258, %258 : vector<2x12xf32>
    %cst_144 = arith.constant dense<0.000000e+00> : vector<2xf32>
    %260 = vector.multi_reduction <add>, %259, %cst_144 [1] : vector<2x12xf32> to vector<2xf32>
    %261 = vector.shape_cast %260 : vector<2xf32> to vector<2x1xf32>
    %cst_145 = arith.constant 1.200000e+01 : f32
    %262 = vector.broadcast %cst_145 : f32 to vector<2x1xf32>
    %263 = arith.divf %261, %262 : vector<2x1xf32>
    %264 = vector.broadcast %256 : vector<2x1xf32> to vector<2x12xf32>
    %265 = arith.subf %252, %264 : vector<2x12xf32>
    %cst_146 = arith.constant 9.99999974E-6 : f32
    %266 = vector.broadcast %cst_146 : f32 to vector<2x1xf32>
    %267 = arith.addf %263, %266 : vector<2x1xf32>
    %268 = math.rsqrt %267 : vector<2x1xf32>
    %269 = vector.broadcast %268 : vector<2x1xf32> to vector<2x12xf32>
    %270 = arith.mulf %265, %269 : vector<2x12xf32>
    %c0_147 = arith.constant 0 : index
    %c0_148 = arith.constant 0 : index
    %271 = vector.load %arg36[%c0_147, %c0_148] : memref<1x12xf32, #tpu.memory_space<vmem>>, vector<1x12xf32>
    %272 = vector.broadcast %271 : vector<1x12xf32> to vector<2x12xf32>
    %273 = arith.mulf %270, %272 : vector<2x12xf32>
    %c0_149 = arith.constant 0 : index
    %c0_150 = arith.constant 0 : index
    %274 = vector.load %arg37[%c0_149, %c0_150] : memref<1x12xf32, #tpu.memory_space<vmem>>, vector<1x12xf32>
    %275 = vector.broadcast %274 : vector<1x12xf32> to vector<2x12xf32>
    %276 = arith.addf %273, %275 : vector<2x12xf32>
    %cst_151 = arith.constant 0.000000e+00 : f32
    %277 = vector.broadcast %cst_151 : f32 to vector<2x12xf32>
    %c0_152 = arith.constant 0 : index
    %c0_153 = arith.constant 0 : index
    %278 = vector.load %arg38[%c0_152, %c0_153] : memref<12x2048xf32, #tpu.memory_space<vmem>>, vector<12x512xf32>
    %cst_154 = arith.constant dense<0.000000e+00> : vector<2x512xf32>
    %279 = tpu.matmul %276, %278, %cst_154 {dimension_numbers = #tpu.dot_dimension_numbers<[1], [0], [0], [1], [0, 0, 1, 1], [], []>} : vector<2x12xf32>, vector<12x512xf32>, vector<2x512xf32> -> vector<2x512xf32>
    %c0_155 = arith.constant 0 : index
    %c0_156 = arith.constant 0 : index
    %280 = vector.load %arg39[%c0_155, %c0_156] : memref<1x2048xf32, #tpu.memory_space<vmem>>, vector<1x512xf32>
    %281 = vector.broadcast %280 : vector<1x512xf32> to vector<2x512xf32>
    %282 = arith.addf %279, %281 : vector<2x512xf32>
    %cst_157 = arith.constant 0.000000e+00 : f32
    %283 = vector.broadcast %cst_157 : f32 to vector<2x512xf32>
    %284 = arith.maximumf %282, %283 : vector<2x512xf32>
    %c0_158 = arith.constant 0 : index
    %c0_159 = arith.constant 0 : index
    %285 = vector.load %arg40[%c0_158, %c0_159] : memref<2048x12xf32, #tpu.memory_space<vmem>>, vector<512x12xf32>
    %cst_160 = arith.constant dense<0.000000e+00> : vector<2x12xf32>
    %286 = tpu.matmul %284, %285, %cst_160 {dimension_numbers = #tpu.dot_dimension_numbers<[1], [0], [0], [1], [0, 0, 1, 1], [], []>} : vector<2x512xf32>, vector<512x12xf32>, vector<2x12xf32> -> vector<2x12xf32>
    %287 = arith.addf %277, %286 : vector<2x12xf32>
    %c0_161 = arith.constant 0 : index
    %c512_162 = arith.constant 512 : index
    %288 = vector.load %arg38[%c0_161, %c512_162] : memref<12x2048xf32, #tpu.memory_space<vmem>>, vector<12x512xf32>
    %cst_163 = arith.constant dense<0.000000e+00> : vector<2x512xf32>
    %289 = tpu.matmul %276, %288, %cst_163 {dimension_numbers = #tpu.dot_dimension_numbers<[1], [0], [0], [1], [0, 0, 1, 1], [], []>} : vector<2x12xf32>, vector<12x512xf32>, vector<2x512xf32> -> vector<2x512xf32>
    %c0_164 = arith.constant 0 : index
    %c512_165 = arith.constant 512 : index
    %290 = vector.load %arg39[%c0_164, %c512_165] : memref<1x2048xf32, #tpu.memory_space<vmem>>, vector<1x512xf32>
    %291 = vector.broadcast %290 : vector<1x512xf32> to vector<2x512xf32>
    %292 = arith.addf %289, %291 : vector<2x512xf32>
    %cst_166 = arith.constant 0.000000e+00 : f32
    %293 = vector.broadcast %cst_166 : f32 to vector<2x512xf32>
    %294 = arith.maximumf %292, %293 : vector<2x512xf32>
    %c512_167 = arith.constant 512 : index
    %c0_168 = arith.constant 0 : index
    %295 = vector.load %arg40[%c512_167, %c0_168] : memref<2048x12xf32, #tpu.memory_space<vmem>>, vector<512x12xf32>
    %cst_169 = arith.constant dense<0.000000e+00> : vector<2x12xf32>
    %296 = tpu.matmul %294, %295, %cst_169 {dimension_numbers = #tpu.dot_dimension_numbers<[1], [0], [0], [1], [0, 0, 1, 1], [], []>} : vector<2x512xf32>, vector<512x12xf32>, vector<2x12xf32> -> vector<2x12xf32>
    %297 = arith.addf %287, %296 : vector<2x12xf32>
    %c0_170 = arith.constant 0 : index
    %c1024_171 = arith.constant 1024 : index
    %298 = vector.load %arg38[%c0_170, %c1024_171] : memref<12x2048xf32, #tpu.memory_space<vmem>>, vector<12x512xf32>
    %cst_172 = arith.constant dense<0.000000e+00> : vector<2x512xf32>
    %299 = tpu.matmul %276, %298, %cst_172 {dimension_numbers = #tpu.dot_dimension_numbers<[1], [0], [0], [1], [0, 0, 1, 1], [], []>} : vector<2x12xf32>, vector<12x512xf32>, vector<2x512xf32> -> vector<2x512xf32>
    %c0_173 = arith.constant 0 : index
    %c1024_174 = arith.constant 1024 : index
    %300 = vector.load %arg39[%c0_173, %c1024_174] : memref<1x2048xf32, #tpu.memory_space<vmem>>, vector<1x512xf32>
    %301 = vector.broadcast %300 : vector<1x512xf32> to vector<2x512xf32>
    %302 = arith.addf %299, %301 : vector<2x512xf32>
    %cst_175 = arith.constant 0.000000e+00 : f32
    %303 = vector.broadcast %cst_175 : f32 to vector<2x512xf32>
    %304 = arith.maximumf %302, %303 : vector<2x512xf32>
    %c1024_176 = arith.constant 1024 : index
    %c0_177 = arith.constant 0 : index
    %305 = vector.load %arg40[%c1024_176, %c0_177] : memref<2048x12xf32, #tpu.memory_space<vmem>>, vector<512x12xf32>
    %cst_178 = arith.constant dense<0.000000e+00> : vector<2x12xf32>
    %306 = tpu.matmul %304, %305, %cst_178 {dimension_numbers = #tpu.dot_dimension_numbers<[1], [0], [0], [1], [0, 0, 1, 1], [], []>} : vector<2x512xf32>, vector<512x12xf32>, vector<2x12xf32> -> vector<2x12xf32>
    %307 = arith.addf %297, %306 : vector<2x12xf32>
    %c0_179 = arith.constant 0 : index
    %c1536_180 = arith.constant 1536 : index
    %308 = vector.load %arg38[%c0_179, %c1536_180] : memref<12x2048xf32, #tpu.memory_space<vmem>>, vector<12x512xf32>
    %cst_181 = arith.constant dense<0.000000e+00> : vector<2x512xf32>
    %309 = tpu.matmul %276, %308, %cst_181 {dimension_numbers = #tpu.dot_dimension_numbers<[1], [0], [0], [1], [0, 0, 1, 1], [], []>} : vector<2x12xf32>, vector<12x512xf32>, vector<2x512xf32> -> vector<2x512xf32>
    %c0_182 = arith.constant 0 : index
    %c1536_183 = arith.constant 1536 : index
    %310 = vector.load %arg39[%c0_182, %c1536_183] : memref<1x2048xf32, #tpu.memory_space<vmem>>, vector<1x512xf32>
    %311 = vector.broadcast %310 : vector<1x512xf32> to vector<2x512xf32>
    %312 = arith.addf %309, %311 : vector<2x512xf32>
    %cst_184 = arith.constant 0.000000e+00 : f32
    %313 = vector.broadcast %cst_184 : f32 to vector<2x512xf32>
    %314 = arith.maximumf %312, %313 : vector<2x512xf32>
    %c1536_185 = arith.constant 1536 : index
    %c0_186 = arith.constant 0 : index
    %315 = vector.load %arg40[%c1536_185, %c0_186] : memref<2048x12xf32, #tpu.memory_space<vmem>>, vector<512x12xf32>
    %cst_187 = arith.constant dense<0.000000e+00> : vector<2x12xf32>
    %316 = tpu.matmul %314, %315, %cst_187 {dimension_numbers = #tpu.dot_dimension_numbers<[1], [0], [0], [1], [0, 0, 1, 1], [], []>} : vector<2x512xf32>, vector<512x12xf32>, vector<2x12xf32> -> vector<2x12xf32>
    %317 = arith.addf %307, %316 : vector<2x12xf32>
    %c0_188 = arith.constant 0 : index
    %c0_189 = arith.constant 0 : index
    %318 = vector.load %arg41[%c0_188, %c0_189] : memref<1x12xf32, #tpu.memory_space<vmem>>, vector<1x12xf32>
    %319 = vector.broadcast %318 : vector<1x12xf32> to vector<2x12xf32>
    %320 = arith.addf %317, %319 : vector<2x12xf32>
    %321 = arith.addf %276, %320 : vector<2x12xf32>
    %cst_190 = arith.constant dense<0.000000e+00> : vector<2xf32>
    %322 = vector.multi_reduction <add>, %321, %cst_190 [1] : vector<2x12xf32> to vector<2xf32>
    %323 = vector.shape_cast %322 : vector<2xf32> to vector<2x1xf32>
    %cst_191 = arith.constant 1.200000e+01 : f32
    %324 = vector.broadcast %cst_191 : f32 to vector<2x1xf32>
    %325 = arith.divf %323, %324 : vector<2x1xf32>
    %326 = vector.broadcast %325 : vector<2x1xf32> to vector<2x12xf32>
    %327 = arith.subf %321, %326 : vector<2x12xf32>
    %328 = arith.mulf %327, %327 : vector<2x12xf32>
    %cst_192 = arith.constant dense<0.000000e+00> : vector<2xf32>
    %329 = vector.multi_reduction <add>, %328, %cst_192 [1] : vector<2x12xf32> to vector<2xf32>
    %330 = vector.shape_cast %329 : vector<2xf32> to vector<2x1xf32>
    %cst_193 = arith.constant 1.200000e+01 : f32
    %331 = vector.broadcast %cst_193 : f32 to vector<2x1xf32>
    %332 = arith.divf %330, %331 : vector<2x1xf32>
    %333 = vector.broadcast %325 : vector<2x1xf32> to vector<2x12xf32>
    %334 = arith.subf %321, %333 : vector<2x12xf32>
    %cst_194 = arith.constant 9.99999974E-6 : f32
    %335 = vector.broadcast %cst_194 : f32 to vector<2x1xf32>
    %336 = arith.addf %332, %335 : vector<2x1xf32>
    %337 = math.rsqrt %336 : vector<2x1xf32>
    %338 = vector.broadcast %337 : vector<2x1xf32> to vector<2x12xf32>
    %339 = arith.mulf %334, %338 : vector<2x12xf32>
    %c0_195 = arith.constant 0 : index
    %c0_196 = arith.constant 0 : index
    %340 = vector.load %arg42[%c0_195, %c0_196] : memref<1x12xf32, #tpu.memory_space<vmem>>, vector<1x12xf32>
    %341 = vector.broadcast %340 : vector<1x12xf32> to vector<2x12xf32>
    %342 = arith.mulf %339, %341 : vector<2x12xf32>
    %c0_197 = arith.constant 0 : index
    %c0_198 = arith.constant 0 : index
    %343 = vector.load %arg43[%c0_197, %c0_198] : memref<1x12xf32, #tpu.memory_space<vmem>>, vector<1x12xf32>
    %344 = vector.broadcast %343 : vector<1x12xf32> to vector<2x12xf32>
    %345 = arith.addf %342, %344 : vector<2x12xf32>
    %c0_199 = arith.constant 0 : index
    %c0_200 = arith.constant 0 : index
    %346 = vector.load %arg44[%c0_199, %c0_200] : memref<12x128xf32, #tpu.memory_space<vmem>>, vector<12x128xf32>
    %cst_201 = arith.constant dense<0.000000e+00> : vector<2x128xf32>
    %347 = tpu.matmul %345, %346, %cst_201 {dimension_numbers = #tpu.dot_dimension_numbers<[1], [0], [0], [1], [0, 0, 1, 1], [], []>} : vector<2x12xf32>, vector<12x128xf32>, vector<2x128xf32> -> vector<2x128xf32>
    %c0_202 = arith.constant 0 : index
    %c0_203 = arith.constant 0 : index
    %348 = vector.load %arg45[%c0_202, %c0_203] : memref<1x128xf32, #tpu.memory_space<vmem>>, vector<1x128xf32>
    %349 = vector.broadcast %348 : vector<1x128xf32> to vector<2x128xf32>
    %350 = arith.addf %347, %349 : vector<2x128xf32>
    %351 = vector.shape_cast %350 : vector<2x128xf32> to vector<2x1x128xf32>
    %352 = vector.shape_cast %351 : vector<2x1x128xf32> to vector<2x1x128xf32>
    %353 = vector.broadcast %352 : vector<2x1x128xf32> to vector<2x8x128xf32>
    %c0_204 = arith.constant 0 : index
    %c0_205 = arith.constant 0 : index
    %c0_206 = arith.constant 0 : index
    %354 = vector.load %arg46[%c0_204, %c0_205, %c0_206] : memref<2x8x128xf32, #tpu.memory_space<vmem>>, vector<2x8x128xf32>
    tpu.vector_store %arg46[%c0_204, %c0_205, %c0_206], %353 {strides = array<i32>} : memref<2x8x128xf32, #tpu.memory_space<vmem>>, vector<2x8x128xf32>,
    %c0_207 = arith.constant 0 : index
    %c0_208 = arith.constant 0 : index
    %355 = vector.load %arg47[%c0_207, %c0_208] : memref<2x48xf32, #tpu.memory_space<vmem>>, vector<2x48xf32>
    tpu.vector_store %arg47[%c0_207, %c0_208], %193 {strides = array<i32>} : memref<2x48xf32, #tpu.memory_space<vmem>>, vector<2x48xf32>,
    return
  }
  func.func @transform_0(%arg0: i32) -> (i32, i32, i32) {
    %c0_i32 = arith.constant 0 : i32
    %c0_i32_0 = arith.constant 0 : i32
    %c0_i32_1 = arith.constant 0 : i32
    return %arg0, %c0_i32, %c0_i32_0 : i32, i32, i32
  }
  func.func @transform_1(%arg0: i32) -> (i32, i32) {
    %c0_i32 = arith.constant 0 : i32
    %c0_i32_0 = arith.constant 0 : i32
    %c0_i32_1 = arith.constant 0 : i32
    return %c0_i32, %c0_i32_0 : i32, i32
  }
  func.func @transform_2(%arg0: i32) -> (i32, i32) {
    %c0_i32 = arith.constant 0 : i32
    %c0_i32_0 = arith.constant 0 : i32
    return %arg0, %c0_i32 : i32, i32
  }
  func.func @transform_3(%arg0: i32) -> (i32, i32) {
    %c0_i32 = arith.constant 0 : i32
    %c0_i32_0 = arith.constant 0 : i32
    %c0_i32_1 = arith.constant 0 : i32
    return %c0_i32, %c0_i32_0 : i32, i32
  }
  func.func @transform_4(%arg0: i32) -> (i32, i32) {
    %c0_i32 = arith.constant 0 : i32
    %c0_i32_0 = arith.constant 0 : i32
    %c0_i32_1 = arith.constant 0 : i32
    return %c0_i32, %c0_i32_0 : i32, i32
  }
  func.func @transform_5(%arg0: i32) -> (i32, i32) {
    %c0_i32 = arith.constant 0 : i32
    %c0_i32_0 = arith.constant 0 : i32
    %c0_i32_1 = arith.constant 0 : i32
    return %c0_i32, %c0_i32_0 : i32, i32
  }
  func.func @transform_6(%arg0: i32) -> (i32, i32) {
    %c0_i32 = arith.constant 0 : i32
    %c0_i32_0 = arith.constant 0 : i32
    %c0_i32_1 = arith.constant 0 : i32
    return %c0_i32, %c0_i32_0 : i32, i32
  }
  func.func @transform_7(%arg0: i32) -> (i32, i32) {
    %c0_i32 = arith.constant 0 : i32
    %c0_i32_0 = arith.constant 0 : i32
    %c0_i32_1 = arith.constant 0 : i32
    return %c0_i32, %c0_i32_0 : i32, i32
  }
  func.func @transform_8(%arg0: i32) -> (i32, i32) {
    %c0_i32 = arith.constant 0 : i32
    %c0_i32_0 = arith.constant 0 : i32
    %c0_i32_1 = arith.constant 0 : i32
    return %c0_i32, %c0_i32_0 : i32, i32
  }
  func.func @transform_9(%arg0: i32) -> (i32, i32) {
    %c0_i32 = arith.constant 0 : i32
    %c0_i32_0 = arith.constant 0 : i32
    %c0_i32_1 = arith.constant 0 : i32
    return %c0_i32, %c0_i32_0 : i32, i32
  }
  func.func @transform_10(%arg0: i32) -> (i32, i32) {
    %c0_i32 = arith.constant 0 : i32
    %c0_i32_0 = arith.constant 0 : i32
    %c0_i32_1 = arith.constant 0 : i32
    return %c0_i32, %c0_i32_0 : i32, i32
  }
  func.func @transform_11(%arg0: i32) -> (i32, i32) {
    %c0_i32 = arith.constant 0 : i32
    %c0_i32_0 = arith.constant 0 : i32
    %c0_i32_1 = arith.constant 0 : i32
    return %c0_i32, %c0_i32_0 : i32, i32
  }
  func.func @transform_12(%arg0: i32) -> (i32, i32) {
    %c0_i32 = arith.constant 0 : i32
    %c0_i32_0 = arith.constant 0 : i32
    %c0_i32_1 = arith.constant 0 : i32
    return %c0_i32, %c0_i32_0 : i32, i32
  }
  func.func @transform_13(%arg0: i32) -> (i32, i32) {
    %c0_i32 = arith.constant 0 : i32
    %c0_i32_0 = arith.constant 0 : i32
    %c0_i32_1 = arith.constant 0 : i32
    return %c0_i32, %c0_i32_0 : i32, i32
  }
  func.func @transform_14(%arg0: i32) -> (i32, i32) {
    %c0_i32 = arith.constant 0 : i32
    %c0_i32_0 = arith.constant 0 : i32
    %c0_i32_1 = arith.constant 0 : i32
    return %c0_i32, %c0_i32_0 : i32, i32
  }
  func.func @transform_15(%arg0: i32) -> (i32, i32) {
    %c0_i32 = arith.constant 0 : i32
    %c0_i32_0 = arith.constant 0 : i32
    %c0_i32_1 = arith.constant 0 : i32
    return %c0_i32, %c0_i32_0 : i32, i32
  }
  func.func @transform_16(%arg0: i32) -> (i32, i32) {
    %c0_i32 = arith.constant 0 : i32
    %c0_i32_0 = arith.constant 0 : i32
    %c0_i32_1 = arith.constant 0 : i32
    return %c0_i32, %c0_i32_0 : i32, i32
  }
  func.func @transform_17(%arg0: i32) -> (i32, i32) {
    %c0_i32 = arith.constant 0 : i32
    %c0_i32_0 = arith.constant 0 : i32
    %c0_i32_1 = arith.constant 0 : i32
    return %c0_i32, %c0_i32_0 : i32, i32
  }
  func.func @transform_18(%arg0: i32) -> (i32, i32) {
    %c0_i32 = arith.constant 0 : i32
    %c0_i32_0 = arith.constant 0 : i32
    %c0_i32_1 = arith.constant 0 : i32
    return %c0_i32, %c0_i32_0 : i32, i32
  }
  func.func @transform_19(%arg0: i32) -> (i32, i32) {
    %c0_i32 = arith.constant 0 : i32
    %c0_i32_0 = arith.constant 0 : i32
    %c0_i32_1 = arith.constant 0 : i32
    return %c0_i32, %c0_i32_0 : i32, i32
  }
  func.func @transform_20(%arg0: i32) -> (i32, i32) {
    %c0_i32 = arith.constant 0 : i32
    %c0_i32_0 = arith.constant 0 : i32
    %c0_i32_1 = arith.constant 0 : i32
    return %c0_i32, %c0_i32_0 : i32, i32
  }
  func.func @transform_21(%arg0: i32) -> (i32, i32) {
    %c0_i32 = arith.constant 0 : i32
    %c0_i32_0 = arith.constant 0 : i32
    %c0_i32_1 = arith.constant 0 : i32
    return %c0_i32, %c0_i32_0 : i32, i32
  }
  func.func @transform_22(%arg0: i32) -> (i32, i32) {
    %c0_i32 = arith.constant 0 : i32
    %c0_i32_0 = arith.constant 0 : i32
    %c0_i32_1 = arith.constant 0 : i32
    return %c0_i32, %c0_i32_0 : i32, i32
  }
  func.func @transform_23(%arg0: i32) -> (i32, i32) {
    %c0_i32 = arith.constant 0 : i32
    %c0_i32_0 = arith.constant 0 : i32
    %c0_i32_1 = arith.constant 0 : i32
    return %c0_i32, %c0_i32_0 : i32, i32
  }
  func.func @transform_24(%arg0: i32) -> (i32, i32) {
    %c0_i32 = arith.constant 0 : i32
    %c0_i32_0 = arith.constant 0 : i32
    %c0_i32_1 = arith.constant 0 : i32
    return %c0_i32, %c0_i32_0 : i32, i32
  }
  func.func @transform_25(%arg0: i32) -> (i32, i32) {
    %c0_i32 = arith.constant 0 : i32
    %c0_i32_0 = arith.constant 0 : i32
    %c0_i32_1 = arith.constant 0 : i32
    return %c0_i32, %c0_i32_0 : i32, i32
  }
  func.func @transform_26(%arg0: i32) -> (i32, i32) {
    %c0_i32 = arith.constant 0 : i32
    %c0_i32_0 = arith.constant 0 : i32
    %c0_i32_1 = arith.constant 0 : i32
    return %c0_i32, %c0_i32_0 : i32, i32
  }
  func.func @transform_27(%arg0: i32) -> (i32, i32) {
    %c0_i32 = arith.constant 0 : i32
    %c0_i32_0 = arith.constant 0 : i32
    %c0_i32_1 = arith.constant 0 : i32
    return %c0_i32, %c0_i32_0 : i32, i32
  }
  func.func @transform_28(%arg0: i32) -> (i32, i32) {
    %c0_i32 = arith.constant 0 : i32
    %c0_i32_0 = arith.constant 0 : i32
    %c0_i32_1 = arith.constant 0 : i32
    return %c0_i32, %c0_i32_0 : i32, i32
  }
  func.func @transform_29(%arg0: i32) -> (i32, i32) {
    %c0_i32 = arith.constant 0 : i32
    %c0_i32_0 = arith.constant 0 : i32
    %c0_i32_1 = arith.constant 0 : i32
    return %c0_i32, %c0_i32_0 : i32, i32
  }
  func.func @transform_30(%arg0: i32) -> (i32, i32) {
    %c0_i32 = arith.constant 0 : i32
    %c0_i32_0 = arith.constant 0 : i32
    %c0_i32_1 = arith.constant 0 : i32
    return %c0_i32, %c0_i32_0 : i32, i32
  }
  func.func @transform_31(%arg0: i32) -> (i32, i32) {
    %c0_i32 = arith.constant 0 : i32
    %c0_i32_0 = arith.constant 0 : i32
    %c0_i32_1 = arith.constant 0 : i32
    return %c0_i32, %c0_i32_0 : i32, i32
  }
  func.func @transform_32(%arg0: i32) -> (i32, i32) {
    %c0_i32 = arith.constant 0 : i32
    %c0_i32_0 = arith.constant 0 : i32
    %c0_i32_1 = arith.constant 0 : i32
    return %c0_i32, %c0_i32_0 : i32, i32
  }
  func.func @transform_33(%arg0: i32) -> (i32, i32) {
    %c0_i32 = arith.constant 0 : i32
    %c0_i32_0 = arith.constant 0 : i32
    %c0_i32_1 = arith.constant 0 : i32
    return %c0_i32, %c0_i32_0 : i32, i32
  }
  func.func @transform_34(%arg0: i32) -> (i32, i32) {
    %c0_i32 = arith.constant 0 : i32
    %c0_i32_0 = arith.constant 0 : i32
    %c0_i32_1 = arith.constant 0 : i32
    return %c0_i32, %c0_i32_0 : i32, i32
  }
  func.func @transform_35(%arg0: i32) -> (i32, i32) {
    %c0_i32 = arith.constant 0 : i32
    %c0_i32_0 = arith.constant 0 : i32
    %c0_i32_1 = arith.constant 0 : i32
    return %c0_i32, %c0_i32_0 : i32, i32
  }
  func.func @transform_36(%arg0: i32) -> (i32, i32) {
    %c0_i32 = arith.constant 0 : i32
    %c0_i32_0 = arith.constant 0 : i32
    %c0_i32_1 = arith.constant 0 : i32
    return %c0_i32, %c0_i32_0 : i32, i32
  }
  func.func @transform_37(%arg0: i32) -> (i32, i32) {
    %c0_i32 = arith.constant 0 : i32
    %c0_i32_0 = arith.constant 0 : i32
    %c0_i32_1 = arith.constant 0 : i32
    return %c0_i32, %c0_i32_0 : i32, i32
  }
  func.func @transform_38(%arg0: i32) -> (i32, i32) {
    %c0_i32 = arith.constant 0 : i32
    %c0_i32_0 = arith.constant 0 : i32
    %c0_i32_1 = arith.constant 0 : i32
    return %c0_i32, %c0_i32_0 : i32, i32
  }
  func.func @transform_39(%arg0: i32) -> (i32, i32) {
    %c0_i32 = arith.constant 0 : i32
    %c0_i32_0 = arith.constant 0 : i32
    %c0_i32_1 = arith.constant 0 : i32
    return %c0_i32, %c0_i32_0 : i32, i32
  }
  func.func @transform_40(%arg0: i32) -> (i32, i32) {
    %c0_i32 = arith.constant 0 : i32
    %c0_i32_0 = arith.constant 0 : i32
    %c0_i32_1 = arith.constant 0 : i32
    return %c0_i32, %c0_i32_0 : i32, i32
  }
  func.func @transform_41(%arg0: i32) -> (i32, i32) {
    %c0_i32 = arith.constant 0 : i32
    %c0_i32_0 = arith.constant 0 : i32
    %c0_i32_1 = arith.constant 0 : i32
    return %c0_i32, %c0_i32_0 : i32, i32
  }
  func.func @transform_42(%arg0: i32) -> (i32, i32) {
    %c0_i32 = arith.constant 0 : i32
    %c0_i32_0 = arith.constant 0 : i32
    %c0_i32_1 = arith.constant 0 : i32
    return %c0_i32, %c0_i32_0 : i32, i32
  }
  func.func @transform_43(%arg0: i32) -> (i32, i32) {
    %c0_i32 = arith.constant 0 : i32
    %c0_i32_0 = arith.constant 0 : i32
    %c0_i32_1 = arith.constant 0 : i32
    return %c0_i32, %c0_i32_0 : i32, i32
  }
  func.func @transform_44(%arg0: i32) -> (i32, i32) {
    %c0_i32 = arith.constant 0 : i32
    %c0_i32_0 = arith.constant 0 : i32
    %c0_i32_1 = arith.constant 0 : i32
    return %c0_i32, %c0_i32_0 : i32, i32
  }
  func.func @transform_45(%arg0: i32) -> (i32, i32, i32) {
    %c0_i32 = arith.constant 0 : i32
    %c0_i32_0 = arith.constant 0 : i32
    %c0_i32_1 = arith.constant 0 : i32
    return %arg0, %c0_i32, %c0_i32_0 : i32, i32, i32
  }
  func.func @transform_46(%arg0: i32) -> (i32, i32) {
    %c0_i32 = arith.constant 0 : i32
    %c0_i32_0 = arith.constant 0 : i32
    return %arg0, %c0_i32 : i32, i32
  }
}

</mosaic_0001>

<bundles_post_ra>
// kernel: transformer_vae_forward.1
= control target key start
LH: loop header
LB: loop body
LE: loop exit
PB: predicated region body
PF: predicated region fallthrough
CT: control target
= control target key end

     0   :  { %s6507_s6 = smov 1   ;;  %s6508_s10 = smov 2   ;;  %s7802_s0 = inlined_call_operand.smem [shape: u32[47], index: -1, kind: input, shape index: {}] }
   0x1   :  { %s6568_s5 = sld [smem:[%s7802_s0]]   ;;  %s6509_s14 = smov 3  }
   0x2   :  { %s6573_s9 = sld [smem:[%s7802_s0 + %s6507_s6]]   ;;  %s6510_s18 = smov 4  }
   0x3   :  { %s6578_s13 = sld [smem:[%s7802_s0 + %s6508_s10]]   ;;  %s6511_s22 = smov 5  }
   0x4   :  { %s6583_s17 = sld [smem:[%s7802_s0 + %s6509_s14]]   ;;  %s6512_s26 = smov 6  }
   0x5   :  { %s6588_s21 = sld [smem:[%s7802_s0 + %s6510_s18]]   ;;  %s6513_s30 = smov 7  }
   0x6   :  { %s6593_s25 = sld [smem:[%s7802_s0 + %s6511_s22]]   ;;  %s6514_s4 = smov 8  }
   0x7   :  { %s6598_s29 = sld [smem:[%s7802_s0 + %s6512_s26]]   ;;  %s6515_s10 = smov 9  }
   0x8   :  { %s6603_s3 = sld [smem:[%s7802_s0 + %s6513_s30]]   ;;  %s6516_s15 = smov 10  }
   0x9   :  { %7814 = sst [smem:[#allocation5_spill]] %s6578_s13  ;;  %s6517_s20 = smov 11  }
   0xa   :  { %s6608_s8 = sld [smem:[%s7802_s0 + %s6514_s4]]   ;;  %s6518_s26 = smov 12  }
   0xb   :  { %s6613_s14 = sld [smem:[%s7802_s0 + %s6515_s10]]   ;;  %s6519_s1 = smov 13  }
   0xc   :  { %s6618_s19 = sld [smem:[%s7802_s0 + %s6516_s15]]   ;;  %s6520_s7 = smov 14  }
   0xd   :  { %s6623_s24 = sld [smem:[%s7802_s0 + %s6517_s20]]   ;;  %s6521_s15 = smov 15  }
   0xe   :  { %s6628_s30 = sld [smem:[%s7802_s0 + %s6518_s26]]   ;;  %s6522_s22 = smov 16  }
   0xf   :  { %s6633_s6 = sld [smem:[%s7802_s0 + %s6519_s1]]   ;;  %s6523_s28 = smov 17  }
  0x10   :  { %s6638_s12 = sld [smem:[%s7802_s0 + %s6520_s7]]   ;;  %s6524_s7 = smov 18  }
  0x11   :  { %s6643_s20 = sld [smem:[%s7802_s0 + %s6521_s15]]   ;;  %s6525_s15 = smov 19  }
  0x12   :  { %s6648_s27 = sld [smem:[%s7802_s0 + %s6522_s22]]   ;;  %s6526_s22 = smov 20  }
  0x13   :  { %s6653_s4 = sld [smem:[%s7802_s0 + %s6523_s28]]   ;;  %s6527_s28 = smov 21  }
  0x14   :  { %s6658_s13 = sld [smem:[%s7802_s0 + %s6524_s7]]   ;;  %s6528_s7 = smov 22  }
  0x16   :  { %7815 = sst [smem:[#allocation6_spill]] %s6638_s12 }
  0x17   :  { %s6663_s12 = sld [smem:[%s7802_s0 + %s6525_s15]]   ;;  %s6529_s15 = smov 23  }
  0x18   :  { %7816 = sst [smem:[#allocation7_spill]] %s6648_s27 }
  0x19   :  { %7817 = sst [smem:[#allocation8_spill]] %s6653_s4 }
  0x1a   :  { %7818 = sst [smem:[#allocation9_spill]] %s6658_s13 }
  0x1b   :  { %s6668_s27 = sld [smem:[%s7802_s0 + %s6526_s22]]   ;;  %s6530_s22 = smov 24  }
  0x1c   :  { %s6673_s4 = sld [smem:[%s7802_s0 + %s6527_s28]]   ;;  %s6531_s28 = smov 25  }
  0x1d   :  { %7819 = sst [smem:[#allocation10_spill]] %s6663_s12 }
  0x1e   :  { %s6678_s13 = sld [smem:[%s7802_s0 + %s6528_s7]]   ;;  %s6532_s7 = smov 26  }
  0x1f   :  { %s6683_s12 = sld [smem:[%s7802_s0 + %s6529_s15]]   ;;  %s6533_s15 = smov 27  }
  0x21   :  { %7820 = sst [smem:[#allocation11_spill]] %s6668_s27 }
  0x22   :  { %7821 = sst [smem:[#allocation12_spill]] %s6673_s4 }
  0x23   :  { %s6688_s27 = sld [smem:[%s7802_s0 + %s6530_s22]]   ;;  %s6534_s22 = smov 28  }
  0x24   :  { %7822 = sst [smem:[#allocation13_spill]] %s6678_s13 }
  0x25   :  { %7823 = sst [smem:[#allocation14_spill]] %s6683_s12 }
  0x26   :  { %s6693_s4 = sld [smem:[%s7802_s0 + %s6531_s28]]   ;;  %s6535_s28 = smov 29  }
  0x27   :  { %s6698_s13 = sld [smem:[%s7802_s0 + %s6532_s7]]   ;;  %s6536_s7 = smov 30  }
  0x28   :  { %s6703_s12 = sld [smem:[%s7802_s0 + %s6533_s15]]   ;;  %s6537_s15 = smov 31  }
  0x29   :  { %7824 = sst [smem:[#allocation15_spill]] %s6688_s27 }
  0x2a   :  { %s6708_s27 = sld [smem:[%s7802_s0 + %s6534_s22]]   ;;  %s6538_s22 = smov 32  }
  0x2c   :  { %7825 = sst [smem:[#allocation16_spill]] %s6693_s4 }
  0x2d   :  { %7826 = sst [smem:[#allocation17_spill]] %s6698_s13 }
  0x2e   :  { %7827 = sst [smem:[#allocation18_spill]] %s6703_s12 }
  0x2f   :  { %s6713_s4 = sld [smem:[%s7802_s0 + %s6535_s28]]   ;;  %s6539_s28 = smov 33  }
  0x30   :  { %7828 = sst [smem:[#allocation19_spill]] %s6708_s27 }
  0x31   :  { %s6718_s13 = sld [smem:[%s7802_s0 + %s6536_s7]]   ;;  %s6540_s7 = smov 34  }
  0x32   :  { %s6723_s12 = sld [smem:[%s7802_s0 + %s6537_s15]]   ;;  %s6541_s15 = smov 35  }
  0x33   :  { %s6728_s27 = sld [smem:[%s7802_s0 + %s6538_s22]]   ;;  %s6542_s22 = smov 36  }
  0x35   :  { %7829 = sst [smem:[#allocation20_spill]] %s6713_s4 }
  0x36   :  { %s6733_s4 = sld [smem:[%s7802_s0 + %s6539_s28]]   ;;  %s6543_s28 = smov 37  }
  0x37   :  { %7830 = sst [smem:[#allocation21_spill]] %s6718_s13 }
  0x38   :  { %7831 = sst [smem:[#allocation22_spill]] %s6723_s12 }
  0x39   :  { %7832 = sst [smem:[#allocation23_spill]] %s6728_s27 }
  0x3a   :  { %s6738_s13 = sld [smem:[%s7802_s0 + %s6540_s7]]   ;;  %s6544_s7 = smov 38  }
  0x3b   :  { %s6743_s12 = sld [smem:[%s7802_s0 + %s6541_s15]]   ;;  %s6545_s15 = smov 39  }
  0x3c   :  { %7833 = sst [smem:[#allocation24_spill]] %s6733_s4 }
  0x3d   :  { %s6748_s27 = sld [smem:[%s7802_s0 + %s6542_s22]]   ;;  %s6546_s22 = smov 40  }
  0x3e   :  { %s6753_s4 = sld [smem:[%s7802_s0 + %s6543_s28]]   ;;  %s6547_s28 = smov 41  }
  0x40   :  { %7834 = sst [smem:[#allocation25_spill]] %s6738_s13 }
  0x41   :  { %7835 = sst [smem:[#allocation26_spill]] %s6743_s12 }
  0x42   :  { %s6758_s13 = sld [smem:[%s7802_s0 + %s6544_s7]]   ;;  %s6548_s7 = smov 42  }
  0x43   :  { %7836 = sst [smem:[#allocation27_spill]] %s6748_s27 }
  0x44   :  { %7837 = sst [smem:[#allocation28_spill]] %s6753_s4 }
  0x45   :  { %s6763_s12 = sld [smem:[%s7802_s0 + %s6545_s15]]   ;;  %s6549_s15 = smov 43  }
  0x46   :  { %s6768_s27 = sld [smem:[%s7802_s0 + %s6546_s22]]   ;;  %s6550_s22 = smov 44  }
  0x47   :  { %s6773_s4 = sld [smem:[%s7802_s0 + %s6547_s28]]   ;;  %s6551_s28 = smov 45  }
  0x48   :  { %7838 = sst [smem:[#allocation29_spill]] %s6758_s13 }
  0x49   :  { %s6778_s13 = sld [smem:[%s7802_s0 + %s6548_s7]]   ;;  %s6552_s7 = smov 46  }
  0x4b   :  { %7839 = sst [smem:[#allocation30_spill]] %s6763_s12 }
  0x4c   :  { %7840 = sst [smem:[#allocation31_spill]] %s6768_s27 }
  0x4d   :  { %7841 = sst [smem:[#allocation32_spill]] %s6773_s4 }
  0x4e   :  { %s6783_s12 = sld [smem:[%s7802_s0 + %s6549_s15]]  }
  0x4f   :  { %7842 = sst [smem:[#allocation33_spill]] %s6778_s13 }
  0x50   :  { %s6788_s27 = sld [smem:[%s7802_s0 + %s6550_s22]]  }
  0x51   :  { %s6793_s4 = sld [smem:[%s7802_s0 + %s6551_s28]]  }
  0x52   :  { %s6798_s13 = sld [smem:[%s7802_s0 + %s6552_s7]]  }
  0x53   :  { %v200_v0 = vld [vmem:[%s6583_s17 + $0x40] sm:$0xff]  ;;  %v199_v1 = vld [vmem:[%s6583_s17 + $0x38] sm:$0xff]  ;;  %vm208_vm0 = vcmask 588800   ;;  %v198_v2 = vld [vmem:[%s6583_s17 + $0x30] sm:$0xff] }
  0x54   :  { %6260 = vmatprep.subr.mxu0 %v200_v0  ;;  %v190_v3 = vld [vmem:[%s6568_s5] sm:$0xff] }
  0x55   :  { %6261 = vmatpush3.msra.mxu0 %v200_v0 }
  0x56   :  { %6262 = vmatprep.subr.mxu0 %v199_v1 }
  0x57   :  { %99 = vsyncpa [#allocation3], 0  ;;  %6263 = vmatpush3.msra.mxu0 %v199_v1  ;;  %v197_v4 = vld [vmem:[%s6583_s17 + $0x28] sm:$0xff]  ;;  %6278 = vmatprep.mubr.msk.f32.mxu0 %vm208_vm0, %v190_v3  ;;  %v196_v5 = vld [vmem:[%s6583_s17 + $0x20] sm:$0xff]  ;;  %vm309_vm1 = vcmask 1043456   ;;  %vm302_vm2 = vcmask 97280   ;;  %v562_v26 = vlaneseq }
  0x58   :  { %6264 = vmatprep.subr.mxu0 %v198_v2  ;;  %v195_v6 = vld [vmem:[%s6583_s17 + $0x18] sm:$0xff]  ;;  %v194_v7 = vld [vmem:[%s6583_s17 + $0x10] sm:$0xff]  ;;  %v193_v8 = vld [vmem:[%s6583_s17 + $0x8] sm:$0xff]  ;;  %v6553_v25 = vmov 0.0   ;;  %vm6554_vm3 = vmmov 0   ;;  %vm724_vm8 = vcmask 64512  }
  0x59   :  { %6265 = vmatpush3.msra.mxu0 %v198_v2  ;;  %v192_v9 = vld [vmem:[%s6583_s17] sm:$0xff]  ;;  %v191_v10 = vld [vmem:[%s6568_s5 + $0x8] sm:$0xff]  ;;  %v563_v27 = vand.u32 127, %v562_v26  ;;  %s7843_s0 = sld [smem:[#allocation6_spill]]  ;;  %vm3124_vm9 = vcmask 1041409   ;;  %vm5424_vm10 = vcmask 386048  }
  0x5a   :  { %6266 = vmatprep.subr.mxu0 %v197_v4  ;;  %v294_v11 = vld [vmem:[%s6593_s25 + $0x8] sm:$0xf]  ;;  %v293_v12 = vld [vmem:[%s6593_s25] sm:$0xff]  ;;  %s7844_s5 = sld [smem:[#allocation8_spill]]  ;;  %vm3221_vm11 = vcmask 195584   ;;  %vm3466_vm12 = vcmask 91136  }
  0x5b   :  { %6267 = vmatpush3.msra.mxu0 %v197_v4  ;;  %6281 = vmatprep.subr.msk.mxu1 %vm309_vm1, %v294_v11  ;;  %v389_v13 = vld [vmem:[%s6603_s3 + $0x8] sm:$0xf]  ;;  %v5492_v14 = vld [vmem:[%s6588_s21] ss:$0 sm:$0xff]  ;;  %vm749_vm4 = vcmp.ge.s32.totalorder %v563_v27, 6  ;;  %vm750_vm5 = vcmp.lt.s32.totalorder %v563_v27, 12 }
  0x5c   :  { %6268 = vmatprep.subr.mxu0 %v196_v5  ;;  %6282 = vmatpush3.msk.msra.mxu1 %vm309_vm1, %v294_v11  ;;  %v290_v18 = vld [vmem:[%s6573_s9] sm:$0xff]  ;;  %v476_v23 = vld [vmem:[%s6613_s14 + $0x8] sm:$0xf]  ;;  %vm565_vm6 = vcmp.lt.s32.totalorder %v563_v27, 6  ;;  %vm751_vm7 = vmand %vm749_vm4, %vm750_vm5  ;;  %s7845_s9 = sld [smem:[#allocation7_spill]] }
  0x5d   :  { %6269 = vmatpush3.msra.mxu0 %v196_v5  ;;  %6283 = vmatprep.subr.mxu1 %v293_v12  ;;  %v388_v22 = vld [vmem:[%s6603_s3] sm:$0xff]  ;;  %v567_v35 = vsel %vm565_vm6, 1.0, %v6553_v25  ;;  %v752_v36 = vsel %vm751_vm7, 1.0, %v6553_v25  ;;  %s7846_s17 = sld [smem:[#allocation9_spill]] }
  0x5e   :  { %6270 = vmatprep.subr.mxu0 %v195_v6  ;;  %6284 = vmatpush3.msra.mxu1 %v293_v12  ;;  %v475_v24 = vld [vmem:[%s6613_s14] sm:$0xff]  ;;  %s7847_s21 = sld [smem:[#allocation12_spill]] }
  0x5f   :  { %6271 = vmatpush3.msra.mxu0 %v195_v6  ;;  %6288 = vmatprep.subr.msk.mxu1 %vm309_vm1, %v389_v13  ;;  %v5499_v31 = vld [vmem:[%s6608_s8] ss:$0 sm:$0xff]  ;;  %s7848_s25 = sld [smem:[#allocation10_spill]] }
  0x60   :  { %6272 = vmatprep.subr.mxu0 %v194_v7  ;;  %v5503_v33 = vld [vmem:[%s6618_s19] ss:$0 sm:$0xff]  ;;  %s7850_s3 = sld [smem:[#allocation14_spill]] }
  0x61   :  { %6273 = vmatpush3.msra.mxu0 %v194_v7  ;;  %v5495_v43 = vld [vmem:[%s6598_s29] ss:$0 sm:$0xff]  ;;  %s7849_s29 = sld [smem:[#allocation11_spill]] }
  0x62   :  { %6274 = vmatprep.subr.mxu0 %v193_v8  ;;  %s7851_s8 = sld [smem:[#allocation13_spill]] }
  0x63   :  { %6275 = vmatpush3.msra.mxu0 %v193_v8  ;;  %s7852_s14 = sld [smem:[#allocation5_spill]] }
  0x64   :  { %6276 = vmatprep.subr.mxu0 %v192_v9  ;;  %s7853_s19 = sld [smem:[#allocation16_spill]] }
  0x65   :  { %6277 = vmatpush3.msra.mxu0 %v192_v9  ;;  %s7858_s15 = sld [smem:[#allocation24_spill]] }
  0x66   :  { %6279 = vmatmul.mubr.msk.f32.vlgmr.msra.gmra.mxu0 %vm208_vm0, %v191_v10  ;;  %6312 = vmatprep.subr.mxu0 %v6553_v25  ;;  %s7859_s16 = sld [smem:[#allocation23_spill]] }
  0x67   :  { %6314 = vmatprep.mubr.msk.f32.mxu0 %vm6554_vm3, %v6553_v25  ;;  %s7860_s18 = sld [smem:[#allocation19_spill]] }
  0x68   :  { %s7861_s22 = sld [smem:[#allocation20_spill]] }
  0x69   :  { %s7862_s23 = sld [smem:[#allocation25_spill]] }
  0x6a   :  { %s7863_s26 = sld [smem:[#allocation21_spill]] }
  0x6b   :  { %s7864_s28 = sld [smem:[#allocation28_spill]] }
  0x6c   :  { %s7865_s1 = sld [smem:[#allocation26_spill]] }
  0x6d   :  { %s7866_s2 = sld [smem:[#allocation27_spill]] }
  0x6e   :  { %s7867_s7 = sld [smem:[#allocation30_spill]] }
  0x6f   :  { %s7868_s10 = sld [smem:[#allocation29_spill]] }
  0x70   :  { %s7869_s11 = sld [smem:[#allocation31_spill]] }
 0x126   :  { %v6280_v15 = vpop.f32.mrf.mxu0 }
 0x127   :  { %v287_v16 = vadd.f32 %v6280_v15, %v5492_v14 }
 0x128   :  { %v281_v17 = vpop.f32.mrf.mxu0 }
 0x129   :  { %v282_v19 = vadd.f32 %v5492_v14, %v281_v17  ;;  %v6823_v21 = vadd.f32 %v290_v18, %v287_v16 }
 0x12b   :  { %v6821_v20 = vadd.f32 %v290_v18, %v282_v19 }
 0x12d   :  { %6285 = vmatprep.mubr.msk.f32.mxu1 %vm302_vm2, %v6821_v20 }
 0x12e   :  { %6286 = vmatmul.mubr.msk.f32.vlgmr.msra.gmra.mxu1 %vm302_vm2, %v6823_v21 }
 0x12f   :  { %6289 = vmatpush3.msk.msra.mxu1 %vm309_vm1, %v389_v13  ;;  %6292 = vmatprep.mubr.msk.f32.mxu1 %vm302_vm2, %v6821_v20 }
 0x130   :  { %6290 = vmatprep.subr.mxu1 %v388_v22 }
 0x131   :  { %6291 = vmatpush3.msra.mxu1 %v388_v22 }
 0x132   :  { %6293 = vmatmul.mubr.msk.f32.vlgmr.msra.gmra.mxu1 %vm302_vm2, %v6823_v21  ;;  %6295 = vmatprep.subr.msk.mxu1 %vm309_vm1, %v476_v23 }
 0x133   :  { %6296 = vmatpush3.msk.msra.mxu1 %vm309_vm1, %v476_v23  ;;  %6299 = vmatprep.mubr.msk.f32.mxu1 %vm302_vm2, %v6821_v20 }
 0x134   :  { %6297 = vmatprep.subr.mxu1 %v475_v24 }
 0x135   :  { %6298 = vmatpush3.msra.mxu1 %v475_v24 }
 0x136   :  { %6300 = vmatmul.mubr.msk.f32.vlgmr.msra.gmra.mxu1 %vm302_vm2, %v6823_v21  ;;  %6302 = vmatprep.subr.mxu1 %v6553_v25 }
 0x137   :  { %6304 = vmatprep.mubr.msk.f32.mxu1 %vm6554_vm3, %v6553_v25 }
 0x1ee   :  { %v6287_v28 = vpop.f32.mrf.mxu1 }
 0x1ef   :  { %v385_v50 = vadd.f32 %v6287_v28, %v5495_v43 }
 0x1f0   :  { %v379_v29 = vpop.f32.mrf.mxu1 }
 0x1f1   :  { %v380_v46 = vadd.f32 %v5495_v43, %v379_v29 }
 0x1f2   :  { %v6294_v30 = vpop.f32.mrf.mxu1 }
 0x1f3   :  { %v472_v38 = vadd.f32 %v6294_v30, %v5499_v31 }
 0x1f4   :  { %v466_v32 = vpop.f32.mrf.mxu1 }
 0x1f5   :  { %v467_v34 = vadd.f32 %v5499_v31, %v466_v32  ;;  %v569_v47 = vmul.f32 %v567_v35, %v472_v38  ;;  %v754_v51 = vmul.f32 %v752_v36, %v472_v38 }
 0x1f6   :  { %v6301_v37 = vpop.f32.mrf.mxu1 }
 0x1f7   :  { %v568_v39 = vmul.f32 %v567_v35, %v467_v34  ;;  %v753_v40 = vmul.f32 %v752_v36, %v467_v34  ;;  %v559_v41 = vadd.f32 %v6301_v37, %v5503_v33 }
 0x1f8   :  { %v553_v42 = vpop.f32.mrf.mxu1 }
 0x1f9   :  { %v6855_v44 = vmul.f32 %v567_v35, %v559_v41  ;;  %v554_v45 = vadd.f32 %v5503_v33, %v553_v42  ;;  %6303 = vmatpush3.xpose.msk.msra.mxu1 %vm302_vm2, %v568_v39  ;;  %6313 = vmatpush3.xpose.msk.msra.mxu0 %vm302_vm2, %v753_v40  ;;  %v926_v52 = vmul.f32 %v752_v36, %v559_v41  ;;  %v1220_v41 = vld [vmem:[%s6623_s24 + $0x8] sm:$0xf]  ;;  %v1219_v42 = vld [vmem:[%s6623_s24] sm:$0xff]  ;;  %s7854_s24 = sld [smem:[#allocation15_spill]] }
 0x1fa   :  { %6307 = vmatprep.subr.mxu1 %v6553_v25  ;;  %6322 = vmatprep.subr.mxu0 %v6553_v25 }
 0x1fb   :  { %v6861_v48 = vmul.f32 %v567_v35, %v554_v45  ;;  %v925_v49 = vmul.f32 %v752_v36, %v554_v45 }
 0x1fc   :  { %6305 = vmatmul.mubr.msk.f32.vlgmr.msra.gmra.mxu1 %vm302_vm2, %v380_v46  ;;  %6315 = vmatmul.mubr.msk.f32.vlgmr.msra.gmra.mxu0 %vm302_vm2, %v380_v46 }
 0x1fd   :  { %6308 = vmatpush3.xpose.msk.msra.mxu1 %vm302_vm2, %v569_v47  ;;  %6323 = vmatpush3.msra.mxu0 %v925_v49 }
 0x1fe   :  { %6309 = vmatprep.mubr.msk.f32.mxu1 %vm6554_vm3, %v6553_v25  ;;  %6317 = vmatprep.subr.mxu1 %v6553_v25 }
 0x1ff   :  { %6324 = vmatprep.mubr.msk.f32.mxu0 %vm6554_vm3, %v6553_v25  ;;  %6332 = vmatprep.subr.mxu0 %v6553_v25 }
 0x200   :  { %6310 = vmatmul.mubr.msk.f32.vlgmr.msra.gmra.mxu1 %vm302_vm2, %v385_v50 }
 0x201   :  { %6318 = vmatpush3.xpose.msk.msra.mxu1 %vm302_vm2, %v754_v51  ;;  %6319 = vmatprep.mubr.msk.f32.mxu1 %vm6554_vm3, %v6553_v25 }
 0x202   :  { %6327 = vmatprep.subr.mxu1 %v6553_v25 }
 0x204   :  { %6320 = vmatmul.mubr.msk.f32.vlgmr.msra.gmra.mxu1 %vm302_vm2, %v385_v50 }
 0x205   :  { %6328 = vmatpush3.msra.mxu1 %v926_v52  ;;  %6329 = vmatprep.mubr.msk.f32.mxu1 %vm6554_vm3, %v6553_v25 }
 0x206   :  { %6337 = vmatprep.subr.mxu1 %v6553_v25 }
 0x2bc   :  { %v642_v53 = vpop.f32.mrf.mxu1  ;;  %v824_v54 = vpop.f32.mrf.mxu0 }
 0x2bd   :  { %v722_v55 = vmul.f32 0.4082483, %v642_v53  ;;  %v901_v56 = vmul.f32 0.4082483, %v824_v54  ;;  %v5519_v53 = vld [vmem:[%s6628_s30] ss:$0 sm:$0xff] }
 0x2be   :  { %v6306_v57 = vpop.f32.mrf.mxu1  ;;  %v6316_v58 = vpop.f32.mrf.mxu0  ;;  %s6555_s30 = smov 104  }
 0x2bf   :  { %v903_v59 = vsel %vm724_vm8, %v901_v56, -inf  ;;  %v725_v60 = vsel %vm724_vm8, %v722_v55, -inf }
 0x2c0   :  { %904 = vmax.xlane.f32.xlu0 %v903_v59  ;;  %726 = vmax.xlane.f32.xlu1 %v725_v60  ;;  %v718_v61 = vpop.f32.mrf.mxu1 }
 0x2c1   :  { %v723_v62 = vmul.f32 0.4082483, %v718_v61 }
 0x2c2   :  { %v6311_v63 = vpop.f32.mrf.mxu1 }
 0x2c3   :  { %v728_v0 = vsel %vm724_vm8, %v723_v62, -inf }
 0x2c4   :  { %729 = vmax.xlane.f32.xlu1 %v728_v0  ;;  %v897_v1 = vpop.f32.mrf.mxu1 }
 0x2c5   :  { %v902_v2 = vmul.f32 0.4082483, %v897_v1 }
 0x2c6   :  { %v6321_v3 = vpop.f32.mrf.mxu1 }
 0x2c7   :  { %v906_v4 = vsel %vm724_vm8, %v902_v2, -inf }
 0x2c8   :  { %907 = vmax.xlane.f32.xlu0 %v906_v4 }
 0x349   :  { %v905_v5 = vpop.xlane.xlu0 %904  ;;  %v727_v6 = vpop.xlane.xlu1 %726 }
 0x34a   :  { %v909_v7 = vsub.f32 %v901_v56, %v905_v5  ;;  %v731_v8 = vsub.f32 %v722_v55, %v727_v6  ;;  %v1364_v6 = vld [vmem:[%s6643_s20 + $0x88] sm:$0xf] }
 0x34c   :  { %v911_v9 = vmul.f32 1.442695, %v909_v7  ;;  %v733_v10 = vmul.f32 1.442695, %v731_v8  ;;  %v1366_v7 = vld [vmem:[%s6643_s20 + $0x98] sm:$0xf] }
 0x34d   :  { %v730_v11 = vpop.xlane.xlu1 %729  ;;  %v1363_v8 = vld [vmem:[%s6643_s20 + $0x80] sm:$0xf] }
 0x34e   :  { %6453 = vpow2.f32 %v911_v9  ;;  %v732_v12 = vsub.f32 %v723_v62, %v730_v11  ;;  %v1365_v9 = vld [vmem:[%s6643_s20 + $0x90] sm:$0xf]  ;;  %v1362_v11 = vld [vmem:[%s6643_s20 + $0x18] sm:$0xff] }
 0x34f   :  { %6455 = vpow2.f32 %v733_v10  ;;  %v1360_v10 = vld [vmem:[%s6643_s20 + $0x8] sm:$0xff] }
 0x350   :  { %v735_v15 = vmul.f32 1.442695, %v732_v12  ;;  %v1359_v12 = vld [vmem:[%s6643_s20] sm:$0xff] }
 0x351   :  { %v908_v13 = vpop.xlane.xlu0 %907 }
 0x352   :  { %v910_v14 = vsub.f32 %v902_v2, %v908_v13  ;;  %v1361_v13 = vld [vmem:[%s6643_s20 + $0x10] sm:$0xff] }
 0x354   :  { %v913_v16 = vmul.f32 1.442695, %v910_v14  ;;  %v1638_v14 = vld [vmem:[%s6643_s20 + $0xa8] sm:$0xf] }
 0x356   :  { %6457 = vpow2.f32 %v913_v16 }
 0x357   :  { %6459 = vpow2.f32 %v735_v15  ;;  %v1640_v15 = vld [vmem:[%s6643_s20 + $0xb8] sm:$0xf] }
 0x35b   :  { %v6454_v17 = vpop.eup %6453 }
 0x35c   :  { %v915_v18 = vsel %vm724_vm8, %v6454_v17, 0.0  ;;  %v6456_v19 = vpop.eup %6455 }
 0x35d   :  { %916 = vadd.xlane.f32.xlu0 %v915_v18  ;;  %v737_v22 = vsel %vm724_vm8, %v6456_v19, 0.0 }
 0x361   :  { %738 = vadd.xlane.f32.xlu0 %v737_v22 }
 0x363   :  { %v6458_v23 = vpop.eup %6457 }
 0x364   :  { %v918_v24 = vsel %vm724_vm8, %v6458_v23, 0.0  ;;  %v6460_v27 = vpop.eup %6459 }
 0x365   :  { %919 = vadd.xlane.f32.xlu1 %v918_v24  ;;  %v740_v28 = vsel %vm724_vm8, %v6460_v27, 0.0 }
 0x369   :  { %741 = vadd.xlane.f32.xlu1 %v740_v28 }
 0x3e6   :  { %v917_v29 = vpop.xlane.xlu0 %916 }
 0x3e7   :  { %6461 = vrcp.f32 %v917_v29 }
 0x3ea   :  { %v739_v30 = vpop.xlane.xlu0 %738 }
 0x3eb   :  { %6463 = vrcp.f32 %v739_v30  ;;  %v5523_v30 = vld [vmem:[%s6633_s6] ss:$0 sm:$0xff]  ;;  %s7855_s6 = sld [smem:[#allocation22_spill]] }
 0x3ee   :  { %v920_v31 = vpop.xlane.xlu1 %919 }
 0x3ef   :  { %6465 = vrcp.f32 %v920_v31 }
 0x3f2   :  { %v742_v32 = vpop.xlane.xlu1 %741 }
 0x3f3   :  { %6467 = vrcp.f32 %v742_v32  ;;  %v5524_v32 = vld [vmem:[%s7843_s0] ss:$0 sm:$0xff]  ;;  %s7870_s0 = sld [smem:[#allocation32_spill]] }
 0x3f4   :  { %v6462_v33 = vpop.eup %6461 }
 0x3f5   :  { %v922_v34 = vmul.f32 %v6462_v33, %v6454_v17 }
 0x3f7   :  { %6325 = vmatmul.mubr.msk.f32.vlgmr.msra.gmra.mxu0 %vm724_vm8, %v922_v34 }
 0x3f8   :  { %v6464_v35 = vpop.eup %6463  ;;  %6333 = vmatpush3.msra.mxu0 %v6861_v48  ;;  %6334 = vmatprep.mubr.msk.f32.mxu0 %vm6554_vm3, %v6553_v25 }
 0x3f9   :  { %v744_v36 = vmul.f32 %v6464_v35, %v6456_v19  ;;  %6342 = vmatprep.subr.msk.mxu0 %vm309_vm1, %v1220_v41  ;;  %v1637_v35 = vld [vmem:[%s6643_s20 + $0xa0] sm:$0xf] }
 0x3fb   :  { %6335 = vmatmul.mubr.msk.f32.vlgmr.msra.gmra.mxu0 %vm724_vm8, %v744_v36  ;;  %v1639_v36 = vld [vmem:[%s6643_s20 + $0xb0] sm:$0xf] }
 0x3fc   :  { %v6466_v37 = vpop.eup %6465  ;;  %6343 = vmatpush3.msk.msra.mxu0 %vm309_vm1, %v1220_v41  ;;  %v1635_v41 = vld [vmem:[%s6643_s20 + $0x30] sm:$0xff] }
 0x3fd   :  { %v924_v38 = vmul.f32 %v6466_v37, %v6458_v23  ;;  %6344 = vmatprep.subr.mxu0 %v1219_v42  ;;  %v1634_v37 = vld [vmem:[%s6643_s20 + $0x28] sm:$0xff] }
 0x3fe   :  { %6345 = vmatpush3.msra.mxu0 %v1219_v42  ;;  %v1868_v42 = vld [vmem:[%s7844_s5 + $0x2f8] sm:$0xff] }
 0x3ff   :  { %6330 = vmatmul.mubr.msk.f32.vlgmr.msra.gmra.mxu1 %vm724_vm8, %v924_v38  ;;  %5529 = vmatprep.subr.msk.mxu0 %vm309_vm1, %v1366_v7  ;;  %v1636_v38 = vld [vmem:[%s6643_s20 + $0x38] sm:$0xff]  ;;  %v1877_v7 = vld [vmem:[%s7844_s5 + $0x340] sm:$0xff] }
 0x400   :  { %v6468_v39 = vpop.eup %6467  ;;  %6338 = vmatpush3.msra.mxu1 %v6855_v44  ;;  %6339 = vmatprep.mubr.msk.f32.mxu1 %vm6554_vm3, %v6553_v25 }
 0x401   :  { %v746_v40 = vmul.f32 %v6468_v39, %v6460_v27  ;;  %5525 = vmatprep.subr.msk.mxu1 %vm309_vm1, %v1364_v6  ;;  %v1845_v6 = vld [vmem:[%s7844_s5 + $0x240] sm:$0xff] }
 0x403   :  { %6340 = vmatmul.mubr.msk.f32.vlgmr.msra.gmra.mxu1 %vm724_vm8, %v746_v40  ;;  %v1633_v40 = vld [vmem:[%s6643_s20 + $0x20] sm:$0xff] }
 0x404   :  { %1471 = vmatprep.mubr.f32.mxu1 %v6553_v25  ;;  %5526 = vmatpush1.msk.msra.mxu1 %vm309_vm1, %v1363_v8  ;;  %v1860_v8 = vld [vmem:[%s7844_s5 + $0x2b8] sm:$0xff] }
 0x405   :  { %1437 = vmatprep.subr.mxu1 %v1360_v10  ;;  %v1844_v10 = vld [vmem:[%s7844_s5 + $0x238] sm:$0xff] }
 0x406   :  { %1438 = vmatpush1.msra.mxu1 %v1359_v12  ;;  %v1859_v12 = vld [vmem:[%s7844_s5 + $0x2b0] sm:$0xff] }
 0x407   :  { %5533 = vmatprep.subr.msk.mxu1 %vm309_vm1, %v1638_v14  ;;  %v1843_v14 = vld [vmem:[%s7844_s5 + $0x230] sm:$0xff] }
 0x4b7   :  { %v996_v43 = vpop.f32.mrf.mxu0 }
 0x4b9   :  { %v6326_v45 = vpop.f32.mrf.mxu0 }
 0x4ba   :  { %v1852_v45 = vld [vmem:[%s7844_s5 + $0x278] sm:$0xff] }
 0x4bb   :  { %v1142_v44 = vpop.f32.mrf.mxu0 }
 0x4bc   :  { %v1143_v46 = vadd.f32 %v1142_v44, %v996_v43  ;;  %v1900_v43 = vld [vmem:[%s7844_s5 + $0x3f8] sm:$0xff] }
 0x4bd   :  { %v6336_v47 = vpop.f32.mrf.mxu0  ;;  %v1884_v44 = vld [vmem:[%s7844_s5 + $0x378] sm:$0xff] }
 0x4be   :  { %6346 = vmatprep.mubr.msk.f32.mxu0 %vm302_vm2, %v1143_v46  ;;  %v1867_v46 = vld [vmem:[%s7844_s5 + $0x2f0] sm:$0xff] }
 0x4bf   :  { %v1069_v48 = vpop.f32.mrf.mxu1  ;;  %v1899_v47 = vld [vmem:[%s7844_s5 + $0x3f0] sm:$0xff] }
 0x4c1   :  { %v6331_v49 = vpop.f32.mrf.mxu1 }
 0x4c2   :  { %v1883_v49 = vld [vmem:[%s7844_s5 + $0x370] sm:$0xff] }
 0x4c3   :  { %v1215_v50 = vpop.f32.mrf.mxu1 }
 0x4c4   :  { %v1216_v51 = vadd.f32 %v1215_v50, %v1069_v48  ;;  %v1851_v48 = vld [vmem:[%s7844_s5 + $0x270] sm:$0xff]  ;;  %v1866_v50 = vld [vmem:[%s7844_s5 + $0x2e8] sm:$0xff] }
 0x4c5   :  { %v6341_v52 = vpop.f32.mrf.mxu1 }
 0x4c6   :  { %6347 = vmatmul.mubr.msk.f32.vlgmr.msra.gmra.mxu0 %vm302_vm2, %v1216_v51  ;;  %v1898_v51 = vld [vmem:[%s7844_s5 + $0x3e8] sm:$0xff] }
 0x4c7   :  { %1548 = vmatprep.mubr.f32.mxu0 %v6553_v25  ;;  %5530 = vmatpush1.msk.msra.mxu0 %vm309_vm1, %v1365_v9  ;;  %v1850_v52 = vld [vmem:[%s7844_s5 + $0x268] sm:$0xff]  ;;  %v1892_v9 = vld [vmem:[%s7844_s5 + $0x3b8] sm:$0xff] }
 0x4c8   :  { %1514 = vmatprep.subr.mxu0 %v1362_v11  ;;  %v1876_v11 = vld [vmem:[%s7844_s5 + $0x338] sm:$0xff] }
 0x4c9   :  { %1515 = vmatpush1.msra.mxu0 %v1361_v13  ;;  %v1891_v13 = vld [vmem:[%s7844_s5 + $0x3b0] sm:$0xff] }
 0x4ca   :  { %5537 = vmatprep.subr.msk.mxu0 %vm309_vm1, %v1640_v15  ;;  %v1875_v15 = vld [vmem:[%s7844_s5 + $0x330] sm:$0xff] }
 0x586   :  { %v6348_v54 = vpop.f32.mrf.mxu0 }
 0x587   :  { %v1309_v55 = vadd.f32 %v6348_v54, %v5519_v53  ;;  %v1865_v54 = vld [vmem:[%s7844_s5 + $0x2e0] sm:$0xff] }
 0x588   :  { %v1303_v56 = vpop.f32.mrf.mxu0 }
 0x589   :  { %v1304_v57 = vadd.f32 %v5519_v53, %v1303_v56  ;;  %v1313_v58 = vadd.f32 %v1309_v55, %v6823_v21  ;;  %v1882_v53 = vld [vmem:[%s7844_s5 + $0x368] sm:$0xff]  ;;  %v1897_v55 = vld [vmem:[%s7844_s5 + $0x3e0] sm:$0xff] }
 0x58a   :  { %v1849_v56 = vld [vmem:[%s7844_s5 + $0x260] sm:$0xff] }
 0x58b   :  { %v1317_v59 = vsel %vm302_vm2, %v1313_v58, 0.0  ;;  %v1312_v60 = vadd.f32 %v1304_v57, %v6821_v20  ;;  %v1881_v57 = vld [vmem:[%s7844_s5 + $0x360] sm:$0xff] }
 0x58c   :  { %1318 = vadd.xlane.f32.xlu1 %v1317_v59  ;;  %v1896_v59 = vld [vmem:[%s7844_s5 + $0x3d8] sm:$0xff] }
 0x58d   :  { %v1314_v61 = vsel %vm302_vm2, %v1312_v60, 0.0 }
 0x58e   :  { %1315 = vadd.xlane.f32.xlu0 %v1314_v61  ;;  %v1880_v61 = vld [vmem:[%s7844_s5 + $0x358] sm:$0xff] }
 0x615   :  { %v1319_v62 = vpop.xlane.xlu1 %1318 }
 0x616   :  { %v1322_v63 = vmul.f32 0.083333336, %v1319_v62  ;;  %v1863_v62 = vld [vmem:[%s7844_s5 + $0x2d0] sm:$0xff] }
 0x617   :  { %v1316_v0 = vpop.xlane.xlu0 %1315 }
 0x618   :  { %v1324_v1 = vsub.f32 %v1313_v58, %v1322_v63  ;;  %v1321_v2 = vmul.f32 0.083333336, %v1316_v0  ;;  %v1864_v58 = vld [vmem:[%s7844_s5 + $0x2d8] sm:$0xff]  ;;  %v1895_v63 = vld [vmem:[%s7844_s5 + $0x3d0] sm:$0xff] }
 0x619   :  { %v1847_v0 = vld [vmem:[%s7844_s5 + $0x250] sm:$0xff] }
 0x61a   :  { %v1323_v3 = vsub.f32 %v1312_v60, %v1321_v2  ;;  %v1326_v21 = vmul.f32 %v1324_v1, %v1324_v1  ;;  %v1848_v60 = vld [vmem:[%s7844_s5 + $0x258] sm:$0xff]  ;;  %v1862_v2 = vld [vmem:[%s7844_s5 + $0x2c8] sm:$0xff] }
 0x61c   :  { %v1330_v20 = vsel %vm302_vm2, %v1326_v21, 0.0  ;;  %v1325_v4 = vmul.f32 %v1323_v3, %v1323_v3  ;;  %v1846_v21 = vld [vmem:[%s7844_s5 + $0x248] sm:$0xff] }
 0x61d   :  { %1331 = vadd.xlane.f32.xlu1 %v1330_v20  ;;  %v1878_v20 = vld [vmem:[%s7844_s5 + $0x348] sm:$0xff] }
 0x61e   :  { %v1327_v5 = vsel %vm302_vm2, %v1325_v4, 0.0  ;;  %v1861_v4 = vld [vmem:[%s7844_s5 + $0x2c0] sm:$0xff] }
 0x61f   :  { %1328 = vadd.xlane.f32.xlu0 %v1327_v5  ;;  %v1893_v5 = vld [vmem:[%s7844_s5 + $0x3c0] sm:$0xff] }
 0x6a6   :  { %v1332_v16 = vpop.xlane.xlu1 %1331 }
 0x6a7   :  { %v1334_v17 = vmul.f32 0.083333336, %v1332_v16  ;;  %v1858_v16 = vld [vmem:[%s7844_s5 + $0x2a8] sm:$0xff] }
 0x6a8   :  { %v1329_v18 = vpop.xlane.xlu0 %1328 }
 0x6a9   :  { %v1336_v19 = vadd.f32 1e-05, %v1334_v17  ;;  %v1333_v22 = vmul.f32 0.083333336, %v1329_v18  ;;  %v1890_v17 = vld [vmem:[%s7844_s5 + $0x3a8] sm:$0xff] }
 0x6aa   :  { %v1842_v18 = vld [vmem:[%s7844_s5 + $0x228] sm:$0xff] }
 0x6ab   :  { %6469 = vrsqrt.f32 %v1336_v19  ;;  %v1335_v23 = vadd.f32 1e-05, %v1333_v22  ;;  %v1874_v19 = vld [vmem:[%s7844_s5 + $0x328] sm:$0xff]  ;;  %v1857_v22 = vld [vmem:[%s7844_s5 + $0x2a0] sm:$0xff] }
 0x6ad   :  { %6471 = vrsqrt.f32 %v1335_v23  ;;  %v1889_v23 = vld [vmem:[%s7844_s5 + $0x3a0] sm:$0xff] }
 0x6b8   :  { %v6470_v24 = vpop.eup %6469 }
 0x6b9   :  { %v1340_v28 = vmul.f32 %v6470_v24, %v1324_v1  ;;  %v1879_v1 = vld [vmem:[%s7844_s5 + $0x350] sm:$0xff]  ;;  %v1841_v24 = vld [vmem:[%s7844_s5 + $0x220] sm:$0xff] }
 0x6ba   :  { %v6472_v27 = vpop.eup %6471 }
 0x6bb   :  { %v1339_v29 = vmul.f32 %v6472_v27, %v1323_v3  ;;  %v1349_v33 = vmul.f32 %v5523_v30, %v1340_v28  ;;  %v1894_v3 = vld [vmem:[%s7844_s5 + $0x3c8] sm:$0xff]  ;;  %v1873_v27 = vld [vmem:[%s7844_s5 + $0x320] sm:$0xff]  ;;  %v1856_v28 = vld [vmem:[%s7844_s5 + $0x298] sm:$0xff] }
 0x6bd   :  { %v1348_v31 = vmul.f32 %v5523_v30, %v1339_v29  ;;  %v6944_v39 = vadd.f32 %v5524_v32, %v1349_v33  ;;  %v1888_v29 = vld [vmem:[%s7844_s5 + $0x398] sm:$0xff]  ;;  %v1887_v33 = vld [vmem:[%s7844_s5 + $0x390] sm:$0xff] }
 0x6be   :  { %v1840_v30 = vld [vmem:[%s7844_s5 + $0x218] sm:$0xff] }
 0x6bf   :  { %v6932_v34 = vadd.f32 %v5524_v32, %v1348_v31  ;;  %v1872_v31 = vld [vmem:[%s7844_s5 + $0x318] sm:$0xff]  ;;  %v1855_v32 = vld [vmem:[%s7844_s5 + $0x290] sm:$0xff] }
 0x6c1   :  { %5527 = vmatmul.mubr.msk.f32.vlgmr.msra.gmra.mxu1 %vm302_vm2, %v6932_v34  ;;  %5531 = vmatmul.mubr.msk.f32.vlgmr.msra.gmra.mxu0 %vm302_vm2, %v6932_v34 }
 0x6c2   :  { %5534 = vmatpush1.msk.msra.mxu1 %vm309_vm1, %v1637_v35  ;;  %5538 = vmatpush1.msk.msra.mxu0 %vm309_vm1, %v1639_v36  ;;  %v1839_v35 = vld [vmem:[%s7844_s5 + $0x210] sm:$0xff] }
 0x6c3   :  { %1477 = vmatprep.mubr.f32.mxu1 %v6553_v25  ;;  %1554 = vmatprep.mubr.f32.mxu0 %v6553_v25  ;;  %v1871_v36 = vld [vmem:[%s7844_s5 + $0x310] sm:$0xff] }
 0x6c4   :  { %1705 = vmatprep.subr.mxu1 %v1634_v37  ;;  %1782 = vmatprep.subr.mxu0 %v1636_v38  ;;  %v1854_v37 = vld [vmem:[%s7844_s5 + $0x288] sm:$0xff] }
 0x6c5   :  { %5528 = vmatmul.mubr.msk.f32.gmra.mxu1 %vm302_vm2, %v6944_v39  ;;  %5532 = vmatmul.mubr.msk.f32.gmra.mxu0 %vm302_vm2, %v6944_v39  ;;  %v1886_v38 = vld [vmem:[%s7844_s5 + $0x388] sm:$0xff] }
 0x6c6   :  { %1706 = vmatpush1.msra.mxu1 %v1633_v40  ;;  %1783 = vmatpush1.msra.mxu0 %v1635_v41  ;;  %v1838_v40 = vld [vmem:[%s7844_s5 + $0x208] sm:$0xff] }
 0x6c7   :  { %1739 = vmatprep.mubr.f32.mxu1 %v6553_v25  ;;  %1816 = vmatprep.mubr.f32.mxu0 %v6553_v25  ;;  %v1870_v41 = vld [vmem:[%s7844_s5 + $0x308] sm:$0xff] }
 0x6c8   :  { %5654 = vmatprep.subr.mxu1 %v1868_v42  ;;  %5692 = vmatprep.subr.mxu0 %v1900_v43  ;;  %v1853_v42 = vld [vmem:[%s7844_s5 + $0x280] sm:$0xff] }
 0x6c9   :  { %5535 = vmatmul.mubr.msk.f32.vlgmr.msra.gmra.mxu1 %vm302_vm2, %v6932_v34  ;;  %5539 = vmatmul.mubr.msk.f32.vlgmr.msra.gmra.mxu0 %vm302_vm2, %v6932_v34  ;;  %v1885_v43 = vld [vmem:[%s7844_s5 + $0x380] sm:$0xff] }
 0x6ca   :  { %1745 = vmatprep.mubr.f32.mxu1 %v6553_v25  ;;  %1822 = vmatprep.mubr.f32.mxu0 %v6553_v25 }
 0x6cb   :  { %5655 = vmatpush3.msra.mxu1 %v1852_v45  ;;  %5693 = vmatpush3.msra.mxu0 %v1884_v44  ;;  %v1837_v45 = vld [vmem:[%s7844_s5 + $0x200] sm:$0xff] }
 0x6cc   :  { %5656 = vmatprep.subr.mxu1 %v1867_v46  ;;  %5694 = vmatprep.subr.mxu0 %v1899_v47  ;;  %v1869_v44 = vld [vmem:[%s7844_s5 + $0x300] sm:$0xff]  ;;  %v1600_v46 = vld [vmem:[%s7844_s5 + $0xf8] sm:$0xff] }
 0x6cd   :  { %5536 = vmatmul.mubr.msk.f32.gmra.mxu1 %vm302_vm2, %v6944_v39  ;;  %5540 = vmatmul.mubr.msk.f32.gmra.mxu0 %vm302_vm2, %v6944_v39  ;;  %v1632_v47 = vld [vmem:[%s7844_s5 + $0x1f8] sm:$0xff] }
 0x6ce   :  { %5657 = vmatpush3.msra.mxu1 %v1851_v48  ;;  %5695 = vmatpush3.msra.mxu0 %v1883_v49  ;;  %v7033_v48 = vshrl.u32 %v562_v26, 7 }
 0x6cf   :  { %5658 = vmatprep.subr.mxu1 %v1866_v50  ;;  %5696 = vmatprep.subr.mxu0 %v1898_v51 }
 0x6d0   :  { %5659 = vmatpush3.msra.mxu1 %v1850_v52  ;;  %5697 = vmatpush3.msra.mxu0 %v1882_v53  ;;  %v1641_v53 = vld [vmem:[%s7845_s9 + $0x4] sm:$0xf]  ;;  %v7051_v26 = vsub.s32 1, %v7033_v48 }
 0x6d1   :  { %5660 = vmatprep.subr.mxu1 %v1865_v54  ;;  %5698 = vmatprep.subr.mxu0 %v1897_v55  ;;  %v7041_v54 = vsub.s32 0, %v7033_v48  ;;  %v7044_v55 = vsub.s32 2, %v7033_v48 }
 0x6d2   :  { %5661 = vmatpush3.msra.mxu1 %v1849_v56  ;;  %5699 = vmatpush3.msra.mxu0 %v1881_v57 }
 0x6d3   :  { %5662 = vmatprep.subr.mxu1 %v1864_v58  ;;  %5700 = vmatprep.subr.mxu0 %v1896_v59  ;;  %v7054_v58 = vsub.s32 3, %v7033_v48 }
 0x6d4   :  { %5663 = vmatpush3.msra.mxu1 %v1848_v60  ;;  %5701 = vmatpush3.msra.mxu0 %v1880_v61  ;;  %v1646_v61 = vrot.slane %v1641_v53, %v7041_v54 }
 0x6d5   :  { %5664 = vmatprep.subr.mxu1 %v1863_v62  ;;  %5702 = vmatprep.subr.mxu0 %v1895_v63  ;;  %v1654_v62 = vrot.slane %v1641_v53, %v7044_v55  ;;  %v1650_v63 = vrot.slane %v1641_v53, %v7051_v26 }
 0x6d6   :  { %5665 = vmatpush3.msra.mxu1 %v1847_v0  ;;  %5703 = vmatpush3.msra.mxu0 %v1879_v1  ;;  %v1658_v0 = vrot.slane %v1641_v53, %v7054_v58  ;;  %v1596_v53 = vld [vmem:[%s7844_s5 + $0xd8] sm:$0xff] }
 0x6d7   :  { %5666 = vmatprep.subr.mxu1 %v1862_v2  ;;  %5704 = vmatprep.subr.mxu0 %v1894_v3 }
 0x6d8   :  { %5667 = vmatpush3.msra.mxu1 %v1846_v21  ;;  %5705 = vmatpush3.msra.mxu0 %v1878_v20 }
 0x6d9   :  { %5668 = vmatprep.subr.mxu1 %v1861_v4  ;;  %5706 = vmatprep.subr.mxu0 %v1893_v5 }
 0x6da   :  { %5669 = vmatpush3.msra.mxu1 %v1845_v6  ;;  %5707 = vmatpush3.msra.mxu0 %v1877_v7 }
 0x6db   :  { %5670 = vmatprep.subr.mxu1 %v1860_v8  ;;  %5708 = vmatprep.subr.mxu0 %v1892_v9  ;;  %v7065_v9 = vld [vmem:[%s7845_s9] sm:$0xf] }
 0x6dc   :  { %5671 = vmatpush3.msra.mxu1 %v1844_v10  ;;  %5709 = vmatpush3.msra.mxu0 %v1876_v11 }
 0x6dd   :  { %5672 = vmatprep.subr.mxu1 %v1859_v12  ;;  %5710 = vmatprep.subr.mxu0 %v1891_v13  ;;  %v7069_v12 = vrot.slane %v7065_v9, %v7051_v26 }
 0x6de   :  { %5673 = vmatpush3.msra.mxu1 %v1843_v14  ;;  %5711 = vmatpush3.msra.mxu0 %v1875_v15 }
 0x6df   :  { %5674 = vmatprep.subr.mxu1 %v1858_v16  ;;  %5712 = vmatprep.subr.mxu0 %v1890_v17  ;;  %v1584_v17 = vld [vmem:[%s7844_s5 + $0x78] sm:$0xff] }
 0x6e0   :  { %5675 = vmatpush3.msra.mxu1 %v1842_v18  ;;  %5713 = vmatpush3.msra.mxu0 %v1874_v19  ;;  %v1616_v18 = vld [vmem:[%s7844_s5 + $0x178] sm:$0xff]  ;;  %v7075_v19 = vrot.slane %v7065_v9, %v7054_v58 }
 0x6e1   :  { %5676 = vmatprep.subr.mxu1 %v1857_v22  ;;  %5714 = vmatprep.subr.mxu0 %v1889_v23 }
 0x6e2   :  { %5677 = vmatpush3.msra.mxu1 %v1841_v24  ;;  %5715 = vmatpush3.msra.mxu0 %v1873_v27  ;;  %v1599_v24 = vld [vmem:[%s7844_s5 + $0xf0] sm:$0xff] }
 0x6e3   :  { %5678 = vmatprep.subr.mxu1 %v1856_v28  ;;  %5716 = vmatprep.subr.mxu0 %v1888_v29  ;;  %v1631_v27 = vld [vmem:[%s7844_s5 + $0x1f0] sm:$0xff] }
 0x6e4   :  { %5679 = vmatpush3.msra.mxu1 %v1840_v30  ;;  %5717 = vmatpush3.msra.mxu0 %v1872_v31  ;;  %v1583_v30 = vld [vmem:[%s7844_s5 + $0x70] sm:$0xff] }
 0x6e5   :  { %5680 = vmatprep.subr.mxu1 %v1855_v32  ;;  %5718 = vmatprep.subr.mxu0 %v1887_v33  ;;  %v1615_v31 = vld [vmem:[%s7844_s5 + $0x170] sm:$0xff] }
 0x6e6   :  { %5681 = vmatpush3.msra.mxu1 %v1839_v35  ;;  %5719 = vmatpush3.msra.mxu0 %v1871_v36  ;;  %v1598_v36 = vld [vmem:[%s7844_s5 + $0xe8] sm:$0xff] }
 0x6e7   :  { %5682 = vmatprep.subr.mxu1 %v1854_v37  ;;  %5720 = vmatprep.subr.mxu0 %v1886_v38  ;;  %v1630_v37 = vld [vmem:[%s7844_s5 + $0x1e8] sm:$0xff] }
 0x6e8   :  { %5683 = vmatpush3.msra.mxu1 %v1838_v40  ;;  %5721 = vmatpush3.msra.mxu0 %v1870_v41 }
 0x6e9   :  { %5684 = vmatprep.subr.mxu1 %v1853_v42  ;;  %5722 = vmatprep.subr.mxu0 %v1885_v43  ;;  %v1582_v42 = vld [vmem:[%s7844_s5 + $0x68] sm:$0xff] }
 0x6ea   :  { %5685 = vmatpush3.msra.mxu1 %v1837_v45  ;;  %5723 = vmatpush3.msra.mxu0 %v1869_v44  ;;  %v1614_v43 = vld [vmem:[%s7844_s5 + $0x168] sm:$0xff]  ;;  %v1597_v45 = vld [vmem:[%s7844_s5 + $0xe0] sm:$0xff] }
 0x6eb   :  { %5730 = vmatprep.subr.mxu1 %v1600_v46  ;;  %5768 = vmatprep.subr.mxu0 %v1632_v47  ;;  %v1629_v46 = vld [vmem:[%s7844_s5 + $0x1e0] sm:$0xff] }
 0x781   :  { %v7035_v49 = vpop.f32.mrf.mxu1  ;;  %v7037_v50 = vpop.f32.mrf.mxu0 }
 0x783   :  { %v1475_v51 = vpop.f32.mrf.mxu1  ;;  %v1552_v52 = vpop.f32.mrf.mxu0 }
 0x784   :  { %v1476_v35 = vadd.f32 %v1475_v51, %v7069_v12  ;;  %v1553_v38 = vadd.f32 %v1552_v52, %v7075_v19  ;;  %v1581_v51 = vld [vmem:[%s7844_s5 + $0x60] sm:$0xff] }
 0x785   :  { %v7046_v56 = vpop.f32.mrf.mxu1  ;;  %v7048_v57 = vpop.f32.mrf.mxu0  ;;  %v1613_v52 = vld [vmem:[%s7844_s5 + $0x160] sm:$0xff] }
 0x786   :  { %v1562_v44 = vmax.f32 %v1476_v35, 0.0  ;;  %v1564_v47 = vmax.f32 %v1553_v38, 0.0  ;;  %v1620_v35 = vld [vmem:[%s7844_s5 + $0x198] sm:$0xff] }
 0x787   :  { %v7056_v59 = vpop.f32.mrf.mxu1  ;;  %v7058_v60 = vpop.f32.mrf.mxu0  ;;  %v1572_v38 = vld [vmem:[%s7844_s5 + $0x18] sm:$0xff] }
 0x789   :  { %v1741_v1 = vpop.f32.mrf.mxu1  ;;  %v1818_v2 = vpop.f32.mrf.mxu0 }
 0x78a   :  { %v1742_v3 = vadd.f32 %v1741_v1, %v1646_v61  ;;  %v1819_v21 = vadd.f32 %v1818_v2, %v1654_v62  ;;  %v1627_v1 = vld [vmem:[%s7844_s5 + $0x1d0] sm:$0xff] }
 0x78b   :  { %v1743_v20 = vpop.f32.mrf.mxu1  ;;  %v1820_v4 = vpop.f32.mrf.mxu0  ;;  %v1579_v2 = vld [vmem:[%s7844_s5 + $0x50] sm:$0xff] }
 0x78c   :  { %v1744_v5 = vadd.f32 %v1743_v20, %v1650_v63  ;;  %v1821_v6 = vadd.f32 %v1820_v4, %v1658_v0  ;;  %v1829_v13 = vmax.f32 %v1742_v3, 0.0  ;;  %v1831_v14 = vmax.f32 %v1819_v21, 0.0  ;;  %v1611_v3 = vld [vmem:[%s7844_s5 + $0x150] sm:$0xff]  ;;  %v1594_v21 = vld [vmem:[%s7844_s5 + $0xc8] sm:$0xff] }
 0x78d   :  { %v1747_v7 = vpop.f32.mrf.mxu1  ;;  %v1824_v8 = vpop.f32.mrf.mxu0  ;;  %v1626_v20 = vld [vmem:[%s7844_s5 + $0x1c8] sm:$0xff] }
 0x78e   :  { %v1830_v10 = vmax.f32 %v1744_v5, 0.0  ;;  %v1832_v11 = vmax.f32 %v1821_v6, 0.0  ;;  %v1748_v28 = vadd.f32 %v1747_v7, %v1646_v61  ;;  %v1825_v29 = vadd.f32 %v1824_v8, %v1654_v62  ;;  %v1628_v61 = vld [vmem:[%s7844_s5 + $0x1d8] sm:$0xff]  ;;  %v1578_v4 = vld [vmem:[%s7844_s5 + $0x48] sm:$0xff]  ;;  %v1593_v6 = vld [vmem:[%s7844_s5 + $0xc0] sm:$0xff] }
 0x78f   :  { %v1749_v15 = vpop.f32.mrf.mxu1  ;;  %v1826_v16 = vpop.f32.mrf.mxu0  ;;  %v1580_v62 = vld [vmem:[%s7844_s5 + $0x58] sm:$0xff]  ;;  %v1610_v5 = vld [vmem:[%s7844_s5 + $0x148] sm:$0xff]  ;;  %v1625_v7 = vld [vmem:[%s7844_s5 + $0x1c0] sm:$0xff] }
 0x790   :  { %v1750_v22 = vadd.f32 %v1749_v15, %v1650_v63  ;;  %v1827_v23 = vadd.f32 %v1826_v16, %v1658_v0  ;;  %1965 = vmatprep.mubr.f32.mxu1 %v1830_v10  ;;  %2040 = vmatprep.mubr.f32.mxu0 %v1832_v11  ;;  %v1833_v40 = vmax.f32 %v1748_v28, 0.0  ;;  %v1835_v41 = vmax.f32 %v1825_v29, 0.0  ;;  %v1612_v63 = vld [vmem:[%s7844_s5 + $0x158] sm:$0xff]  ;;  %v1595_v0 = vld [vmem:[%s7844_s5 + $0xd0] sm:$0xff]  ;;  %v1577_v8 = vld [vmem:[%s7844_s5 + $0x40] sm:$0xff] }
 0x791   :  { %1966 = vmatmul.mubr.f32.vlgmr.msra.gmra.mxu1 %v1829_v13  ;;  %2041 = vmatmul.mubr.f32.vlgmr.msra.gmra.mxu0 %v1831_v14  ;;  %v1609_v10 = vld [vmem:[%s7844_s5 + $0x140] sm:$0xff]  ;;  %v1592_v11 = vld [vmem:[%s7844_s5 + $0xb8] sm:$0xff]  ;;  %v1591_v16 = vld [vmem:[%s7844_s5 + $0xb0] sm:$0xff] }
 0x792   :  { %v1834_v32 = vmax.f32 %v1750_v22, 0.0  ;;  %v1836_v33 = vmax.f32 %v1827_v23, 0.0  ;;  %5731 = vmatpush3.msra.mxu1 %v1584_v17  ;;  %5769 = vmatpush3.msra.mxu0 %v1616_v18  ;;  %v1624_v13 = vld [vmem:[%s7844_s5 + $0x1b8] sm:$0xff]  ;;  %v1623_v17 = vld [vmem:[%s7844_s5 + $0x1b0] sm:$0xff]  ;;  %v1590_v23 = vld [vmem:[%s7844_s5 + $0xa8] sm:$0xff] }
 0x793   :  { %5732 = vmatprep.subr.mxu1 %v1599_v24  ;;  %5770 = vmatprep.subr.mxu0 %v1631_v27  ;;  %v1576_v14 = vld [vmem:[%s7844_s5 + $0x38] sm:$0xff]  ;;  %v1575_v18 = vld [vmem:[%s7844_s5 + $0x30] sm:$0xff]  ;;  %v1622_v24 = vld [vmem:[%s7844_s5 + $0x1a8] sm:$0xff] }
 0x794   :  { %5733 = vmatpush3.msra.mxu1 %v1583_v30  ;;  %5771 = vmatpush3.msra.mxu0 %v1615_v31  ;;  %v1608_v15 = vld [vmem:[%s7844_s5 + $0x138] sm:$0xff]  ;;  %v1607_v22 = vld [vmem:[%s7844_s5 + $0x130] sm:$0xff]  ;;  %v1574_v27 = vld [vmem:[%s7844_s5 + $0x28] sm:$0xff] }
 0x795   :  { %1970 = vmatprep.mubr.f32.mxu1 %v1834_v32  ;;  %2045 = vmatprep.mubr.f32.mxu0 %v1836_v33  ;;  %v1606_v28 = vld [vmem:[%s7844_s5 + $0x128] sm:$0xff]  ;;  %v1589_v29 = vld [vmem:[%s7844_s5 + $0xa0] sm:$0xff]  ;;  %v1588_v33 = vld [vmem:[%s7844_s5 + $0x98] sm:$0xff] }
 0x796   :  { %5734 = vmatprep.subr.mxu1 %v1598_v36  ;;  %5772 = vmatprep.subr.mxu0 %v1630_v37  ;;  %v1621_v30 = vld [vmem:[%s7844_s5 + $0x1a0] sm:$0xff]  ;;  %v1372_v36 = vrot.slane %v7065_v9, %v7041_v54  ;;  %v1380_v37 = vrot.slane %v7065_v9, %v7044_v55  ;;  %v1586_v9 = vld [vmem:[%s7844_s5 + $0x88] sm:$0xff] }
 0x797   :  { %1971 = vmatmul.mubr.f32.gmra.mxu1 %v1833_v40  ;;  %2046 = vmatmul.mubr.f32.gmra.mxu0 %v1835_v41  ;;  %v1573_v31 = vld [vmem:[%s7844_s5 + $0x20] sm:$0xff]  ;;  %v1604_v40 = vld [vmem:[%s7844_s5 + $0x118] sm:$0xff]  ;;  %v1587_v41 = vld [vmem:[%s7844_s5 + $0x90] sm:$0xff] }
 0x798   :  { %5735 = vmatpush3.msra.mxu1 %v1582_v42  ;;  %5773 = vmatpush3.msra.mxu0 %v1614_v43  ;;  %v1605_v32 = vld [vmem:[%s7844_s5 + $0x120] sm:$0xff]  ;;  %v1619_v42 = vld [vmem:[%s7844_s5 + $0x190] sm:$0xff] }
 0x799   :  { %5736 = vmatprep.subr.mxu1 %v1597_v45  ;;  %2115 = vmatprep.mubr.f32.mxu1 %v1562_v44  ;;  %v1571_v43 = vld [vmem:[%s7844_s5 + $0x10] sm:$0xff]  ;;  %v1618_v44 = vld [vmem:[%s7844_s5 + $0x188] sm:$0xff] }
 0x79a   :  { %5774 = vmatprep.subr.mxu0 %v1629_v46  ;;  %2190 = vmatprep.mubr.f32.mxu0 %v1564_v47  ;;  %v1603_v45 = vld [vmem:[%s7844_s5 + $0x110] sm:$0xff]  ;;  %v1474_v46 = vadd.f32 %v7035_v49, %v1372_v36  ;;  %v1551_v47 = vadd.f32 %v7037_v50, %v1380_v37  ;;  %v1569_v49 = vld [vmem:[%s7844_s5] sm:$0xff] }
 0x79b   :  { %5737 = vmatpush3.msra.mxu1 %v1581_v51  ;;  %5775 = vmatpush3.msra.mxu0 %v1613_v52  ;;  %v1570_v51 = vld [vmem:[%s7844_s5 + $0x8] sm:$0xff]  ;;  %v1601_v50 = vld [vmem:[%s7844_s5 + $0x100] sm:$0xff] }
 0x79c   :  { %5738 = vmatprep.subr.mxu1 %v1596_v53  ;;  %5776 = vmatprep.subr.mxu0 %v1628_v61  ;;  %v1602_v52 = vld [vmem:[%s7844_s5 + $0x108] sm:$0xff]  ;;  %v1585_v53 = vld [vmem:[%s7844_s5 + $0x80] sm:$0xff] }
 0x79d   :  { %5739 = vmatpush3.msra.mxu1 %v1580_v62  ;;  %5777 = vmatpush3.msra.mxu0 %v1612_v63  ;;  %v1617_v61 = vld [vmem:[%s7844_s5 + $0x180] sm:$0xff]  ;;  %v1482_v62 = vadd.f32 %v7056_v59, %v7069_v12  ;;  %v1559_v63 = vadd.f32 %v7058_v60, %v7075_v19  ;;  %v2206_v59 = vld [vmem:[%s6643_s20 + $0xc8] sm:$0xf]  ;;  %v2208_v12 = vld [vmem:[%s6643_s20 + $0xd8] sm:$0xf] }
 0x79e   :  { %5740 = vmatprep.subr.mxu1 %v1595_v0  ;;  %5778 = vmatprep.subr.mxu0 %v1627_v1  ;;  %v1561_v0 = vmax.f32 %v1474_v46, 0.0  ;;  %v1563_v1 = vmax.f32 %v1551_v47, 0.0  ;;  %v2413_v46 = vld [vmem:[%s7844_s5 + $0x440] sm:$0xff] }
 0x79f   :  { %5741 = vmatpush3.msra.mxu1 %v1579_v2  ;;  %5779 = vmatpush3.msra.mxu0 %v1611_v3  ;;  %v1480_v2 = vadd.f32 %v7046_v56, %v1372_v36  ;;  %v1557_v3 = vadd.f32 %v7048_v57, %v1380_v37  ;;  %v1566_v60 = vmax.f32 %v1482_v62, 0.0  ;;  %v1568_v19 = vmax.f32 %v1559_v63, 0.0  ;;  %v2431_v36 = vld [vmem:[%s7844_s5 + $0x4d0] sm:$0xff]  ;;  %v2445_v47 = vld [vmem:[%s7844_s5 + $0x540] sm:$0xff] }
 0x7a0   :  { %5742 = vmatprep.subr.mxu1 %v1594_v21  ;;  %5780 = vmatprep.subr.mxu0 %v1626_v20  ;;  %v2205_v21 = vld [vmem:[%s6643_s20 + $0xc0] sm:$0xf]  ;;  %v2207_v20 = vld [vmem:[%s6643_s20 + $0xd0] sm:$0xf] }
 0x7a1   :  { %5743 = vmatpush3.msra.mxu1 %v1578_v4  ;;  %5781 = vmatpush3.msra.mxu0 %v1610_v5  ;;  %v1565_v56 = vmax.f32 %v1480_v2, 0.0  ;;  %v1567_v57 = vmax.f32 %v1557_v3, 0.0  ;;  %v2202_v4 = vld [vmem:[%s6643_s20 + $0x48] sm:$0xff]  ;;  %v2204_v5 = vld [vmem:[%s6643_s20 + $0x58] sm:$0xff]  ;;  %v2463_v37 = vld [vmem:[%s7844_s5 + $0x5d0] sm:$0xff] }
 0x7a2   :  { %5744 = vmatprep.subr.mxu1 %v1593_v6  ;;  %5782 = vmatprep.subr.mxu0 %v1625_v7  ;;  %v2201_v6 = vld [vmem:[%s6643_s20 + $0x40] sm:$0xff]  ;;  %v2203_v7 = vld [vmem:[%s6643_s20 + $0x50] sm:$0xff]  ;;  %v2410_v2 = vld [vmem:[%s7844_s5 + $0x428] sm:$0xff] }
 0x7a3   :  { %5745 = vmatpush3.msra.mxu1 %v1577_v8  ;;  %5783 = vmatpush3.msra.mxu0 %v1609_v10  ;;  %v2436_v8 = vld [vmem:[%s7844_s5 + $0x4f8] sm:$0xff]  ;;  %v2427_v62 = vld [vmem:[%s7844_s5 + $0x4b0] sm:$0xff]  ;;  %v2442_v3 = vld [vmem:[%s7844_s5 + $0x528] sm:$0xff] }
 0x7a4   :  { %5746 = vmatprep.subr.mxu1 %v1592_v11  ;;  %5784 = vmatprep.subr.mxu0 %v1624_v13  ;;  %v2468_v10 = vld [vmem:[%s7844_s5 + $0x5f8] sm:$0xff]  ;;  %v2459_v63 = vld [vmem:[%s7844_s5 + $0x5b0] sm:$0xff] }
 0x7a5   :  { %5747 = vmatpush3.msra.mxu1 %v1576_v14  ;;  %5785 = vmatpush3.msra.mxu0 %v1608_v15  ;;  %v2420_v11 = vld [vmem:[%s7844_s5 + $0x478] sm:$0xff]  ;;  %v2435_v14 = vld [vmem:[%s7844_s5 + $0x4f0] sm:$0xff] }
 0x7a6   :  { %5748 = vmatprep.subr.mxu1 %v1591_v16  ;;  %5786 = vmatprep.subr.mxu0 %v1623_v17  ;;  %v2452_v13 = vld [vmem:[%s7844_s5 + $0x578] sm:$0xff]  ;;  %v2467_v15 = vld [vmem:[%s7844_s5 + $0x5f0] sm:$0xff] }
 0x7a7   :  { %5749 = vmatpush3.msra.mxu1 %v1575_v18  ;;  %5787 = vmatpush3.msra.mxu0 %v1607_v22  ;;  %v2419_v16 = vld [vmem:[%s7844_s5 + $0x470] sm:$0xff]  ;;  %v2434_v18 = vld [vmem:[%s7844_s5 + $0x4e8] sm:$0xff] }
 0x7a8   :  { %5750 = vmatprep.subr.mxu1 %v1590_v23  ;;  %5788 = vmatprep.subr.mxu0 %v1622_v24  ;;  %v2451_v17 = vld [vmem:[%s7844_s5 + $0x570] sm:$0xff]  ;;  %v2466_v22 = vld [vmem:[%s7844_s5 + $0x5e8] sm:$0xff] }
 0x7a9   :  { %5751 = vmatpush3.msra.mxu1 %v1574_v27  ;;  %5789 = vmatpush3.msra.mxu0 %v1606_v28  ;;  %v2418_v23 = vld [vmem:[%s7844_s5 + $0x468] sm:$0xff]  ;;  %v2433_v27 = vld [vmem:[%s7844_s5 + $0x4e0] sm:$0xff] }
 0x7aa   :  { %5752 = vmatprep.subr.mxu1 %v1589_v29  ;;  %5790 = vmatprep.subr.mxu0 %v1621_v30  ;;  %v2450_v24 = vld [vmem:[%s7844_s5 + $0x568] sm:$0xff]  ;;  %v2465_v28 = vld [vmem:[%s7844_s5 + $0x5e0] sm:$0xff] }
 0x7ab   :  { %5753 = vmatpush3.msra.mxu1 %v1573_v31  ;;  %5791 = vmatpush3.msra.mxu0 %v1605_v32  ;;  %v2417_v29 = vld [vmem:[%s7844_s5 + $0x460] sm:$0xff]  ;;  %v2432_v31 = vld [vmem:[%s7844_s5 + $0x4d8] sm:$0xff] }
 0x7ac   :  { %5754 = vmatprep.subr.mxu1 %v1588_v33  ;;  %5792 = vmatprep.subr.mxu0 %v1620_v35  ;;  %v2449_v30 = vld [vmem:[%s7844_s5 + $0x560] sm:$0xff]  ;;  %v2464_v32 = vld [vmem:[%s7844_s5 + $0x5d8] sm:$0xff] }
 0x7ad   :  { %5755 = vmatpush3.msra.mxu1 %v1572_v38  ;;  %5793 = vmatpush3.msra.mxu0 %v1604_v40  ;;  %v2416_v33 = vld [vmem:[%s7844_s5 + $0x458] sm:$0xff]  ;;  %v2415_v38 = vld [vmem:[%s7844_s5 + $0x450] sm:$0xff] }
 0x7ae   :  { %5756 = vmatprep.subr.mxu1 %v1587_v41  ;;  %5794 = vmatprep.subr.mxu0 %v1619_v42  ;;  %v2448_v35 = vld [vmem:[%s7844_s5 + $0x558] sm:$0xff]  ;;  %v2447_v40 = vld [vmem:[%s7844_s5 + $0x550] sm:$0xff]  ;;  %v2430_v41 = vld [vmem:[%s7844_s5 + $0x4c8] sm:$0xff] }
 0x7af   :  { %5757 = vmatpush3.msra.mxu1 %v1571_v43  ;;  %5795 = vmatpush3.msra.mxu0 %v1603_v45  ;;  %v2462_v42 = vld [vmem:[%s7844_s5 + $0x5c8] sm:$0xff] }
 0x7b0   :  { %5758 = vmatprep.subr.mxu1 %v1586_v9  ;;  %5796 = vmatprep.subr.mxu0 %v1618_v44  ;;  %v2414_v43 = vld [vmem:[%s7844_s5 + $0x448] sm:$0xff]  ;;  %v2429_v9 = vld [vmem:[%s7844_s5 + $0x4c0] sm:$0xff] }
 0x7b1   :  { %5759 = vmatpush3.msra.mxu1 %v1570_v51  ;;  %5797 = vmatpush3.msra.mxu0 %v1602_v52  ;;  %v2446_v45 = vld [vmem:[%s7844_s5 + $0x548] sm:$0xff]  ;;  %v2461_v44 = vld [vmem:[%s7844_s5 + $0x5c0] sm:$0xff]  ;;  %v2428_v51 = vld [vmem:[%s7844_s5 + $0x4b8] sm:$0xff] }
 0x7b2   :  { %5760 = vmatprep.subr.mxu1 %v1585_v53  ;;  %5798 = vmatprep.subr.mxu0 %v1617_v61  ;;  %v2460_v52 = vld [vmem:[%s7844_s5 + $0x5b8] sm:$0xff] }
 0x7b3   :  { %5761 = vmatpush3.msra.mxu1 %v1569_v49  ;;  %5799 = vmatpush3.msra.mxu0 %v1601_v50  ;;  %v2412_v53 = vld [vmem:[%s7844_s5 + $0x438] sm:$0xff]  ;;  %v2411_v49 = vld [vmem:[%s7844_s5 + $0x430] sm:$0xff] }
 0x7b4   :  { %2116 = vmatmul.mubr.f32.vlgmr.msra.gmra.mxu1 %v1561_v0  ;;  %2191 = vmatmul.mubr.f32.vlgmr.msra.gmra.mxu0 %v1563_v1  ;;  %v2444_v61 = vld [vmem:[%s7844_s5 + $0x538] sm:$0xff]  ;;  %v2443_v50 = vld [vmem:[%s7844_s5 + $0x530] sm:$0xff]  ;;  %v2426_v0 = vld [vmem:[%s7844_s5 + $0x4a8] sm:$0xff] }
 0x7b5   :  { %5541 = vmatprep.subr.msk.mxu1 %vm309_vm1, %v2206_v59  ;;  %5545 = vmatprep.subr.msk.mxu0 %vm309_vm1, %v2208_v12  ;;  %v2458_v1 = vld [vmem:[%s7844_s5 + $0x5a8] sm:$0xff]  ;;  %v2425_v59 = vld [vmem:[%s7844_s5 + $0x4a0] sm:$0xff] }
 0x7b6   :  { %2120 = vmatprep.mubr.f32.mxu1 %v1566_v60  ;;  %2195 = vmatprep.mubr.f32.mxu0 %v1568_v19  ;;  %v2457_v12 = vld [vmem:[%s7844_s5 + $0x5a0] sm:$0xff] }
 0x7b7   :  { %5542 = vmatpush1.msk.msra.mxu1 %vm309_vm1, %v2205_v21  ;;  %5546 = vmatpush1.msk.msra.mxu0 %vm309_vm1, %v2207_v20  ;;  %v2409_v60 = vld [vmem:[%s7844_s5 + $0x420] sm:$0xff]  ;;  %v2424_v21 = vld [vmem:[%s7844_s5 + $0x498] sm:$0xff] }
 0x7b8   :  { %2121 = vmatmul.mubr.f32.gmra.mxu1 %v1565_v56  ;;  %2196 = vmatmul.mubr.f32.gmra.mxu0 %v1567_v57  ;;  %v2441_v19 = vld [vmem:[%s7844_s5 + $0x520] sm:$0xff]  ;;  %v2456_v20 = vld [vmem:[%s7844_s5 + $0x598] sm:$0xff] }
 0x7b9   :  { %2273 = vmatprep.subr.mxu1 %v2202_v4  ;;  %2350 = vmatprep.subr.mxu0 %v2204_v5  ;;  %v2408_v56 = vld [vmem:[%s7844_s5 + $0x418] sm:$0xff]  ;;  %v2423_v4 = vld [vmem:[%s7844_s5 + $0x490] sm:$0xff] }
 0x7ba   :  { %2274 = vmatpush1.msra.mxu1 %v2201_v6  ;;  %2351 = vmatpush1.msra.mxu0 %v2203_v7  ;;  %v2440_v57 = vld [vmem:[%s7844_s5 + $0x518] sm:$0xff]  ;;  %v2455_v5 = vld [vmem:[%s7844_s5 + $0x590] sm:$0xff] }
 0x7bb   :  { %2307 = vmatprep.mubr.f32.mxu1 %v6553_v25  ;;  %2384 = vmatprep.mubr.f32.mxu0 %v6553_v25  ;;  %v2407_v6 = vld [vmem:[%s7844_s5 + $0x410] sm:$0xff] }
 0x7bc   :  { %5543 = vmatmul.mubr.msk.f32.vlgmr.msra.gmra.mxu1 %vm302_vm2, %v6932_v34  ;;  %5547 = vmatmul.mubr.msk.f32.vlgmr.msra.gmra.mxu0 %vm302_vm2, %v6932_v34  ;;  %v2439_v7 = vld [vmem:[%s7844_s5 + $0x510] sm:$0xff] }
 0x7bd   :  { %2313 = vmatprep.mubr.f32.mxu1 %v6553_v25  ;;  %2390 = vmatprep.mubr.f32.mxu0 %v6553_v25 }
 0x7be   :  { %5806 = vmatprep.subr.mxu1 %v2436_v8  ;;  %5844 = vmatprep.subr.mxu0 %v2468_v10  ;;  %v2422_v8 = vld [vmem:[%s7844_s5 + $0x488] sm:$0xff] }
 0x7bf   :  { %5807 = vmatpush3.msra.mxu1 %v2420_v11  ;;  %5845 = vmatpush3.msra.mxu0 %v2452_v13  ;;  %v2454_v10 = vld [vmem:[%s7844_s5 + $0x588] sm:$0xff] }
 0x7c0   :  { %5544 = vmatmul.mubr.msk.f32.gmra.mxu1 %vm302_vm2, %v6944_v39  ;;  %5548 = vmatmul.mubr.msk.f32.gmra.mxu0 %vm302_vm2, %v6944_v39  ;;  %v2406_v11 = vld [vmem:[%s7844_s5 + $0x408] sm:$0xff] }
 0x7c1   :  { %5808 = vmatprep.subr.mxu1 %v2435_v14  ;;  %5846 = vmatprep.subr.mxu0 %v2467_v15  ;;  %v2438_v13 = vld [vmem:[%s7844_s5 + $0x508] sm:$0xff]  ;;  %v2421_v14 = vld [vmem:[%s7844_s5 + $0x480] sm:$0xff] }
 0x7c2   :  { %5809 = vmatpush3.msra.mxu1 %v2419_v16  ;;  %5847 = vmatpush3.msra.mxu0 %v2451_v17  ;;  %v2453_v15 = vld [vmem:[%s7844_s5 + $0x580] sm:$0xff] }
 0x7c3   :  { %5810 = vmatprep.subr.mxu1 %v2434_v18  ;;  %5848 = vmatprep.subr.mxu0 %v2466_v22  ;;  %v2405_v16 = vld [vmem:[%s7844_s5 + $0x400] sm:$0xff]  ;;  %v2626_v18 = vld [vmem:[%s6643_s20 + $0xe8] sm:$0xf]  ;;  %v2628_v22 = vld [vmem:[%s6643_s20 + $0xf8] sm:$0xf] }
 0x7c4   :  { %5811 = vmatpush3.msra.mxu1 %v2418_v23  ;;  %5849 = vmatpush3.msra.mxu0 %v2450_v24  ;;  %v2437_v17 = vld [vmem:[%s7844_s5 + $0x500] sm:$0xff] }
 0x7c5   :  { %5812 = vmatprep.subr.mxu1 %v2433_v27  ;;  %5850 = vmatprep.subr.mxu0 %v2465_v28 }
 0x7c6   :  { %5813 = vmatpush3.msra.mxu1 %v2417_v29  ;;  %5851 = vmatpush3.msra.mxu0 %v2449_v30 }
 0x7c7   :  { %5814 = vmatprep.subr.mxu1 %v2432_v31  ;;  %5852 = vmatprep.subr.mxu0 %v2464_v32 }
 0x7c8   :  { %5815 = vmatpush3.msra.mxu1 %v2416_v33  ;;  %5853 = vmatpush3.msra.mxu0 %v2448_v35 }
 0x7c9   :  { %5816 = vmatprep.subr.mxu1 %v2431_v36  ;;  %5854 = vmatprep.subr.mxu0 %v2463_v37 }
 0x7ca   :  { %5817 = vmatpush3.msra.mxu1 %v2415_v38  ;;  %5855 = vmatpush3.msra.mxu0 %v2447_v40 }
 0x7cb   :  { %5818 = vmatprep.subr.mxu1 %v2430_v41  ;;  %5856 = vmatprep.subr.mxu0 %v2462_v42 }
 0x7cc   :  { %5819 = vmatpush3.msra.mxu1 %v2414_v43  ;;  %5857 = vmatpush3.msra.mxu0 %v2446_v45 }
 0x7cd   :  { %5820 = vmatprep.subr.mxu1 %v2429_v9  ;;  %5858 = vmatprep.subr.mxu0 %v2461_v44 }
 0x7ce   :  { %5821 = vmatpush3.msra.mxu1 %v2413_v46  ;;  %5859 = vmatpush3.msra.mxu0 %v2445_v47  ;;  %v2209_v46 = vld [vmem:[%s7845_s9 + $0x8] sm:$0xf] }
 0x7cf   :  { %5822 = vmatprep.subr.mxu1 %v2428_v51  ;;  %5860 = vmatprep.subr.mxu0 %v2460_v52 }
 0x7d0   :  { %5823 = vmatpush3.msra.mxu1 %v2412_v53  ;;  %5861 = vmatpush3.msra.mxu0 %v2444_v61 }
 0x7d1   :  { %5824 = vmatprep.subr.mxu1 %v2427_v62  ;;  %5862 = vmatprep.subr.mxu0 %v2459_v63  ;;  %v2214_v62 = vrot.slane %v2209_v46, %v7041_v54  ;;  %v2222_v63 = vrot.slane %v2209_v46, %v7044_v55 }
 0x7d2   :  { %5825 = vmatpush3.msra.mxu1 %v2411_v49  ;;  %5863 = vmatpush3.msra.mxu0 %v2443_v50 }
 0x7d3   :  { %5826 = vmatprep.subr.mxu1 %v2426_v0  ;;  %5864 = vmatprep.subr.mxu0 %v2458_v1  ;;  %v2218_v1 = vrot.slane %v2209_v46, %v7051_v26 }
 0x7d4   :  { %5827 = vmatpush3.msra.mxu1 %v2410_v2  ;;  %5865 = vmatpush3.msra.mxu0 %v2442_v3 }
 0x7d5   :  { %5828 = vmatprep.subr.mxu1 %v2425_v59  ;;  %5866 = vmatprep.subr.mxu0 %v2457_v12  ;;  %v2226_v59 = vrot.slane %v2209_v46, %v7054_v58  ;;  %v2870_v46 = vld [vmem:[%s7844_s5 + $0x768] sm:$0xff] }
 0x7d6   :  { %5829 = vmatpush3.msra.mxu1 %v2409_v60  ;;  %5867 = vmatpush3.msra.mxu0 %v2441_v19 }
 0x7d7   :  { %5830 = vmatprep.subr.mxu1 %v2424_v21  ;;  %5868 = vmatprep.subr.mxu0 %v2456_v20 }
 0x7d8   :  { %5831 = vmatpush3.msra.mxu1 %v2408_v56  ;;  %5869 = vmatpush3.msra.mxu0 %v2440_v57 }
 0x7d9   :  { %5832 = vmatprep.subr.mxu1 %v2423_v4  ;;  %5870 = vmatprep.subr.mxu0 %v2455_v5 }
 0x7da   :  { %5833 = vmatpush3.msra.mxu1 %v2407_v6  ;;  %5871 = vmatpush3.msra.mxu0 %v2439_v7 }
 0x7db   :  { %5834 = vmatprep.subr.mxu1 %v2422_v8  ;;  %5872 = vmatprep.subr.mxu0 %v2454_v10 }
 0x7dc   :  { %5835 = vmatpush3.msra.mxu1 %v2406_v11  ;;  %5873 = vmatpush3.msra.mxu0 %v2438_v13 }
 0x7dd   :  { %5836 = vmatprep.subr.mxu1 %v2421_v14  ;;  %5874 = vmatprep.subr.mxu0 %v2453_v15  ;;  %v2625_v15 = vld [vmem:[%s6643_s20 + $0xe0] sm:$0xf] }
 0x7de   :  { %5837 = vmatpush3.msra.mxu1 %v2405_v16  ;;  %5875 = vmatpush3.msra.mxu0 %v2437_v17 }
 0x7df   :  { %5549 = vmatprep.subr.msk.mxu1 %vm309_vm1, %v2626_v18  ;;  %5553 = vmatprep.subr.msk.mxu0 %vm309_vm1, %v2628_v22 }
 0x851   :  { %v5686_v23 = vpop.f32.mrf.mxu1  ;;  %v5724_v24 = vpop.f32.mrf.mxu0 }
 0x853   :  { %v5687_v27 = vpop.f32.mrf.mxu1  ;;  %v5725_v28 = vpop.f32.mrf.mxu0 }
 0x854   :  { %v5688_v29 = vadd.f32 %v5687_v27, %v5686_v23  ;;  %v5726_v30 = vadd.f32 %v5725_v28, %v5724_v24  ;;  %v2627_v23 = vld [vmem:[%s6643_s20 + $0xf0] sm:$0xf]  ;;  %v2622_v24 = vld [vmem:[%s6643_s20 + $0x68] sm:$0xff] }
 0x856   :  { %v2043_v31 = vadd.f32 %v5726_v30, %v5688_v29  ;;  %v2624_v29 = vld [vmem:[%s6643_s20 + $0x78] sm:$0xff] }
 0x857   :  { %v5689_v32 = vpop.f32.mrf.mxu1  ;;  %v5727_v33 = vpop.f32.mrf.mxu0 }
 0x859   :  { %v5690_v35 = vpop.f32.mrf.mxu1  ;;  %v5728_v36 = vpop.f32.mrf.mxu0 }
 0x85a   :  { %v5691_v37 = vadd.f32 %v5690_v35, %v5689_v32  ;;  %v5729_v38 = vadd.f32 %v5728_v36, %v5727_v33  ;;  %v2623_v33 = vld [vmem:[%s6643_s20 + $0x70] sm:$0xff]  ;;  %v2856_v35 = vld [vmem:[%s7844_s5 + $0x6f8] sm:$0xff] }
 0x85b   :  { %v2888_v36 = vld [vmem:[%s7844_s5 + $0x7f8] sm:$0xff] }
 0x85c   :  { %v2048_v40 = vadd.f32 %v5729_v38, %v5691_v37  ;;  %v2840_v37 = vld [vmem:[%s7844_s5 + $0x678] sm:$0xff] }
 0x85d   :  { %v2872_v38 = vld [vmem:[%s7844_s5 + $0x778] sm:$0xff] }
 0x874   :  { %v5762_v41 = vpop.f32.mrf.mxu1  ;;  %v5800_v42 = vpop.f32.mrf.mxu0 }
 0x876   :  { %v5763_v43 = vpop.f32.mrf.mxu1  ;;  %v5801_v45 = vpop.f32.mrf.mxu0 }
 0x877   :  { %v5764_v9 = vadd.f32 %v5763_v43, %v5762_v41  ;;  %v5802_v44 = vadd.f32 %v5801_v45, %v5800_v42  ;;  %v2887_v41 = vld [vmem:[%s7844_s5 + $0x7f0] sm:$0xff]  ;;  %v2854_v45 = vld [vmem:[%s7844_s5 + $0x6e8] sm:$0xff] }
 0x878   :  { %v5765_v47 = vpop.f32.mrf.mxu1  ;;  %v5803_v51 = vpop.f32.mrf.mxu0  ;;  %v2839_v42 = vld [vmem:[%s7844_s5 + $0x670] sm:$0xff] }
 0x879   :  { %v2118_v52 = vadd.f32 %v5764_v9, %v2043_v31  ;;  %v2621_v31 = vld [vmem:[%s6643_s20 + $0x60] sm:$0xff]  ;;  %v2871_v43 = vld [vmem:[%s7844_s5 + $0x770] sm:$0xff]  ;;  %v2886_v9 = vld [vmem:[%s7844_s5 + $0x7e8] sm:$0xff]  ;;  %s7857_s20 = sld [smem:[#allocation17_spill]] }
 0x87a   :  { %v5766_v53 = vpop.f32.mrf.mxu1  ;;  %v5804_v61 = vpop.f32.mrf.mxu0 }
 0x87b   :  { %v7246_v49 = vadd.f32 %v5802_v44, %v2118_v52  ;;  %v5767_v50 = vadd.f32 %v5766_v53, %v5765_v47  ;;  %v5805_v0 = vadd.f32 %v5804_v61, %v5803_v51  ;;  %v2838_v44 = vld [vmem:[%s7844_s5 + $0x668] sm:$0xff]  ;;  %v2853_v47 = vld [vmem:[%s7844_s5 + $0x6e0] sm:$0xff]  ;;  %v2852_v61 = vld [vmem:[%s7844_s5 + $0x6d8] sm:$0xff] }
 0x87c   :  { %v2309_v2 = vpop.f32.mrf.mxu1  ;;  %v2386_v3 = vpop.f32.mrf.mxu0  ;;  %v2885_v51 = vld [vmem:[%s7844_s5 + $0x7e0] sm:$0xff] }
 0x87d   :  { %v2123_v12 = vadd.f32 %v5767_v50, %v2048_v40  ;;  %v2310_v60 = vadd.f32 %v2309_v2, %v2214_v62  ;;  %v2387_v56 = vadd.f32 %v2386_v3, %v2222_v63  ;;  %v2855_v40 = vld [vmem:[%s7844_s5 + $0x6f0] sm:$0xff]  ;;  %v2837_v52 = vld [vmem:[%s7844_s5 + $0x660] sm:$0xff]  ;;  %v2868_v50 = vld [vmem:[%s7844_s5 + $0x758] sm:$0xff] }
 0x87e   :  { %v2311_v19 = vpop.f32.mrf.mxu1  ;;  %v2388_v21 = vpop.f32.mrf.mxu0  ;;  %v2869_v53 = vld [vmem:[%s7844_s5 + $0x760] sm:$0xff]  ;;  %v2835_v2 = vld [vmem:[%s7844_s5 + $0x650] sm:$0xff] }
 0x87f   :  { %v7250_v20 = vadd.f32 %v5805_v0, %v2123_v12  ;;  %v2312_v57 = vadd.f32 %v2311_v19, %v2218_v1  ;;  %v2389_v4 = vadd.f32 %v2388_v21, %v2226_v59  ;;  %v2397_v8 = vmax.f32 %v2310_v60, 0.0  ;;  %v2851_v0 = vld [vmem:[%s7844_s5 + $0x6d0] sm:$0xff]  ;;  %v2882_v12 = vld [vmem:[%s7844_s5 + $0x7c8] sm:$0xff]  ;;  %v2849_v21 = vld [vmem:[%s7844_s5 + $0x6c0] sm:$0xff] }
 0x880   :  { %v2315_v5 = vpop.f32.mrf.mxu1  ;;  %v2392_v6 = vpop.f32.mrf.mxu0  ;;  %v2399_v16 = vmax.f32 %v2387_v56, 0.0  ;;  %v2867_v3 = vld [vmem:[%s7844_s5 + $0x750] sm:$0xff]  ;;  %v2834_v60 = vld [vmem:[%s7844_s5 + $0x648] sm:$0xff]  ;;  %v2881_v56 = vld [vmem:[%s7844_s5 + $0x7c0] sm:$0xff] }
 0x881   :  { %v2398_v7 = vmax.f32 %v2312_v57, 0.0  ;;  %v2400_v10 = vmax.f32 %v2389_v4, 0.0  ;;  %v2316_v11 = vadd.f32 %v2315_v5, %v2214_v62  ;;  %v2393_v17 = vadd.f32 %v2392_v6, %v2222_v63  ;;  %v2884_v62 = vld [vmem:[%s7844_s5 + $0x7d8] sm:$0xff]  ;;  %v2866_v19 = vld [vmem:[%s7844_s5 + $0x748] sm:$0xff]  ;;  %v2833_v57 = vld [vmem:[%s7844_s5 + $0x640] sm:$0xff] }
 0x882   :  { %v2317_v13 = vpop.f32.mrf.mxu1  ;;  %v2394_v14 = vpop.f32.mrf.mxu0  ;;  %v2836_v63 = vld [vmem:[%s7844_s5 + $0x658] sm:$0xff]  ;;  %v2865_v4 = vld [vmem:[%s7844_s5 + $0x740] sm:$0xff] }
 0x883   :  { %v2318_v18 = vadd.f32 %v2317_v13, %v2218_v1  ;;  %v2395_v22 = vadd.f32 %v2394_v14, %v2226_v59  ;;  %2533 = vmatprep.mubr.f32.mxu1 %v2398_v7  ;;  %2608 = vmatprep.mubr.f32.mxu0 %v2400_v10  ;;  %v2401_v30 = vmax.f32 %v2316_v11, 0.0  ;;  %v2403_v32 = vmax.f32 %v2393_v17, 0.0  ;;  %v2883_v1 = vld [vmem:[%s7844_s5 + $0x7d0] sm:$0xff]  ;;  %v2850_v59 = vld [vmem:[%s7844_s5 + $0x6c8] sm:$0xff]  ;;  %v2848_v5 = vld [vmem:[%s7844_s5 + $0x6b8] sm:$0xff] }
 0x884   :  { %2534 = vmatmul.mubr.f32.vlgmr.msra.gmra.mxu1 %v2397_v8  ;;  %2609 = vmatmul.mubr.f32.vlgmr.msra.gmra.mxu0 %v2399_v16  ;;  %v2880_v6 = vld [vmem:[%s7844_s5 + $0x7b8] sm:$0xff]  ;;  %v2847_v10 = vld [vmem:[%s7844_s5 + $0x6b0] sm:$0xff]  ;;  %v2878_v16 = vld [vmem:[%s7844_s5 + $0x7a8] sm:$0xff] }
 0x885   :  { %v2402_v27 = vmax.f32 %v2318_v18, 0.0  ;;  %v2404_v28 = vmax.f32 %v2395_v22, 0.0  ;;  %5550 = vmatpush1.msk.msra.mxu1 %vm309_vm1, %v2625_v15  ;;  %5554 = vmatpush1.msk.msra.mxu0 %vm309_vm1, %v2627_v23  ;;  %v2832_v7 = vld [vmem:[%s7844_s5 + $0x638] sm:$0xff]  ;;  %v2879_v11 = vld [vmem:[%s7844_s5 + $0x7b0] sm:$0xff]  ;;  %v2846_v15 = vld [vmem:[%s7844_s5 + $0x6a8] sm:$0xff] }
 0x886   :  { %2693 = vmatprep.subr.mxu1 %v2622_v24  ;;  %2770 = vmatprep.subr.mxu0 %v2624_v29  ;;  %v2864_v8 = vld [vmem:[%s7844_s5 + $0x738] sm:$0xff]  ;;  %v2831_v13 = vld [vmem:[%s7844_s5 + $0x630] sm:$0xff]  ;;  %v2830_v17 = vld [vmem:[%s7844_s5 + $0x628] sm:$0xff] }
 0x887   :  { %2538 = vmatprep.mubr.f32.mxu1 %v2402_v27  ;;  %2613 = vmatprep.mubr.f32.mxu0 %v2404_v28  ;;  %v2863_v14 = vld [vmem:[%s7844_s5 + $0x730] sm:$0xff]  ;;  %v2862_v18 = vld [vmem:[%s7844_s5 + $0x728] sm:$0xff]  ;;  %v2845_v22 = vld [vmem:[%s7844_s5 + $0x6a0] sm:$0xff] }
 0x888   :  { %2539 = vmatmul.mubr.f32.gmra.mxu1 %v2401_v30  ;;  %2614 = vmatmul.mubr.f32.gmra.mxu0 %v2403_v32  ;;  %v2877_v23 = vld [vmem:[%s7844_s5 + $0x7a0] sm:$0xff]  ;;  %v2844_v28 = vld [vmem:[%s7844_s5 + $0x698] sm:$0xff]  ;;  %v2843_v32 = vld [vmem:[%s7844_s5 + $0x690] sm:$0xff] }
 0x889   :  { %2694 = vmatpush1.msra.mxu1 %v2621_v31  ;;  %2771 = vmatpush1.msra.mxu0 %v2623_v33  ;;  %v2829_v24 = vld [vmem:[%s7844_s5 + $0x620] sm:$0xff]  ;;  %v2876_v29 = vld [vmem:[%s7844_s5 + $0x798] sm:$0xff]  ;;  %v2875_v33 = vld [vmem:[%s7844_s5 + $0x790] sm:$0xff] }
 0x88a   :  { %2727 = vmatprep.mubr.f32.mxu1 %v6553_v25  ;;  %2804 = vmatprep.mubr.f32.mxu0 %v6553_v25  ;;  %v2861_v27 = vld [vmem:[%s7844_s5 + $0x720] sm:$0xff]  ;;  %v2828_v30 = vld [vmem:[%s7844_s5 + $0x618] sm:$0xff] }
 0x88b   :  { %5882 = vmatprep.subr.mxu1 %v2856_v35  ;;  %5920 = vmatprep.subr.mxu0 %v2888_v36  ;;  %v2860_v31 = vld [vmem:[%s7844_s5 + $0x718] sm:$0xff]  ;;  %v2827_v35 = vld [vmem:[%s7844_s5 + $0x610] sm:$0xff] }
 0x88c   :  { %5551 = vmatmul.mubr.msk.f32.vlgmr.msra.gmra.mxu1 %vm302_vm2, %v6932_v34  ;;  %5555 = vmatmul.mubr.msk.f32.vlgmr.msra.gmra.mxu0 %vm302_vm2, %v6932_v34  ;;  %v2859_v36 = vld [vmem:[%s7844_s5 + $0x710] sm:$0xff] }
 0x88d   :  { %2733 = vmatprep.mubr.f32.mxu1 %v6553_v25  ;;  %2810 = vmatprep.mubr.f32.mxu0 %v6553_v25 }
 0x88e   :  { %5883 = vmatpush3.msra.mxu1 %v2840_v37  ;;  %5921 = vmatpush3.msra.mxu0 %v2872_v38  ;;  %v2842_v37 = vld [vmem:[%s7844_s5 + $0x688] sm:$0xff] }
 0x88f   :  { %5884 = vmatprep.subr.mxu1 %v2855_v40  ;;  %5922 = vmatprep.subr.mxu0 %v2887_v41  ;;  %v2874_v38 = vld [vmem:[%s7844_s5 + $0x788] sm:$0xff] }
 0x890   :  { %5552 = vmatmul.mubr.msk.f32.gmra.mxu1 %vm302_vm2, %v6944_v39  ;;  %5556 = vmatmul.mubr.msk.f32.gmra.mxu0 %vm302_vm2, %v6944_v39  ;;  %v2826_v40 = vld [vmem:[%s7844_s5 + $0x608] sm:$0xff] }
 0x891   :  { %5885 = vmatpush3.msra.mxu1 %v2839_v42  ;;  %5923 = vmatpush3.msra.mxu0 %v2871_v43  ;;  %v2858_v41 = vld [vmem:[%s7844_s5 + $0x708] sm:$0xff]  ;;  %v2841_v42 = vld [vmem:[%s7844_s5 + $0x680] sm:$0xff] }
 0x892   :  { %5886 = vmatprep.subr.mxu1 %v2854_v45  ;;  %5924 = vmatprep.subr.mxu0 %v2886_v9  ;;  %v2873_v43 = vld [vmem:[%s7844_s5 + $0x780] sm:$0xff] }
 0x893   :  { %5887 = vmatpush3.msra.mxu1 %v2838_v44  ;;  %5925 = vmatpush3.msra.mxu0 %v2870_v46  ;;  %v2825_v45 = vld [vmem:[%s7844_s5 + $0x600] sm:$0xff] }
 0x894   :  { %5888 = vmatprep.subr.mxu1 %v2853_v47  ;;  %5926 = vmatprep.subr.mxu0 %v2885_v51  ;;  %v2857_v9 = vld [vmem:[%s7844_s5 + $0x700] sm:$0xff]  ;;  %s7871_s5 = sld [smem:[#allocation33_spill]] }
 0x895   :  { %5889 = vmatpush3.msra.mxu1 %v2837_v52  ;;  %5927 = vmatpush3.msra.mxu0 %v2869_v53  ;;  %v2629_v53 = vld [vmem:[%s7845_s9 + $0xc] sm:$0xf] }
 0x896   :  { %5890 = vmatprep.subr.mxu1 %v2852_v61  ;;  %5928 = vmatprep.subr.mxu0 %v2884_v62 }
 0x897   :  { %5891 = vmatpush3.msra.mxu1 %v2836_v63  ;;  %5929 = vmatpush3.msra.mxu0 %v2868_v50 }
 0x898   :  { %5892 = vmatprep.subr.mxu1 %v2851_v0  ;;  %5930 = vmatprep.subr.mxu0 %v2883_v1  ;;  %v2634_v1 = vrot.slane %v2629_v53, %v7041_v54 }
 0x899   :  { %5893 = vmatpush3.msra.mxu1 %v2835_v2  ;;  %5931 = vmatpush3.msra.mxu0 %v2867_v3 }
 0x89a   :  { %5894 = vmatprep.subr.mxu1 %v2850_v59  ;;  %5932 = vmatprep.subr.mxu0 %v2882_v12  ;;  %v2642_v59 = vrot.slane %v2629_v53, %v7044_v55  ;;  %v2638_v12 = vrot.slane %v2629_v53, %v7051_v26 }
 0x89b   :  { %5895 = vmatpush3.msra.mxu1 %v2834_v60  ;;  %5933 = vmatpush3.msra.mxu0 %v2866_v19 }
 0x89c   :  { %5896 = vmatprep.subr.mxu1 %v2849_v21  ;;  %5934 = vmatprep.subr.mxu0 %v2881_v56  ;;  %v2646_v56 = vrot.slane %v2629_v53, %v7054_v58 }
 0x89d   :  { %5897 = vmatpush3.msra.mxu1 %v2833_v57  ;;  %5935 = vmatpush3.msra.mxu0 %v2865_v4 }
 0x89e   :  { %5898 = vmatprep.subr.mxu1 %v2848_v5  ;;  %5936 = vmatprep.subr.mxu0 %v2880_v6 }
 0x89f   :  { %5899 = vmatpush3.msra.mxu1 %v2832_v7  ;;  %5937 = vmatpush3.msra.mxu0 %v2864_v8 }
 0x8a0   :  { %5900 = vmatprep.subr.mxu1 %v2847_v10  ;;  %5938 = vmatprep.subr.mxu0 %v2879_v11 }
 0x8a1   :  { %5901 = vmatpush3.msra.mxu1 %v2831_v13  ;;  %5939 = vmatpush3.msra.mxu0 %v2863_v14 }
 0x8a2   :  { %5902 = vmatprep.subr.mxu1 %v2846_v15  ;;  %5940 = vmatprep.subr.mxu0 %v2878_v16 }
 0x8a3   :  { %5903 = vmatpush3.msra.mxu1 %v2830_v17  ;;  %5941 = vmatpush3.msra.mxu0 %v2862_v18 }
 0x8a4   :  { %5904 = vmatprep.subr.mxu1 %v2845_v22  ;;  %5942 = vmatprep.subr.mxu0 %v2877_v23 }
 0x8a5   :  { %5905 = vmatpush3.msra.mxu1 %v2829_v24  ;;  %5943 = vmatpush3.msra.mxu0 %v2861_v27 }
 0x8a6   :  { %5906 = vmatprep.subr.mxu1 %v2844_v28  ;;  %5944 = vmatprep.subr.mxu0 %v2876_v29 }
 0x8a7   :  { %5907 = vmatpush3.msra.mxu1 %v2828_v30  ;;  %5945 = vmatpush3.msra.mxu0 %v2860_v31 }
 0x8a8   :  { %5908 = vmatprep.subr.mxu1 %v2843_v32  ;;  %5946 = vmatprep.subr.mxu0 %v2875_v33 }
 0x8a9   :  { %5909 = vmatpush3.msra.mxu1 %v2827_v35  ;;  %5947 = vmatpush3.msra.mxu0 %v2859_v36 }
 0x8aa   :  { %5910 = vmatprep.subr.mxu1 %v2842_v37  ;;  %5948 = vmatprep.subr.mxu0 %v2874_v38 }
 0x8ab   :  { %5911 = vmatpush3.msra.mxu1 %v2826_v40  ;;  %5949 = vmatpush3.msra.mxu0 %v2858_v41 }
 0x8ac   :  { %5912 = vmatprep.subr.mxu1 %v2841_v42  ;;  %5950 = vmatprep.subr.mxu0 %v2873_v43 }
 0x8ad   :  { %5913 = vmatpush3.msra.mxu1 %v2825_v45  ;;  %5951 = vmatpush3.msra.mxu0 %v2857_v9 }
 0x8ae   :  { %6349 = vmatprep.subr.mxu1 %v6553_v25  ;;  %6356 = vmatprep.subr.mxu0 %v6553_v25 }
 0x944   :  { %v5838_v44 = vpop.f32.mrf.mxu1  ;;  %v5876_v46 = vpop.f32.mrf.mxu0 }
 0x946   :  { %v5839_v47 = vpop.f32.mrf.mxu1  ;;  %v5877_v52 = vpop.f32.mrf.mxu0 }
 0x947   :  { %v5840_v51 = vadd.f32 %v5839_v47, %v5838_v44  ;;  %v5878_v61 = vadd.f32 %v5877_v52, %v5876_v46  ;;  %v5557_v46 = vld [vmem:[%s7846_s17] ss:$0 sm:$0xff] }
 0x948   :  { %v5841_v62 = vpop.f32.mrf.mxu1  ;;  %v5879_v63 = vpop.f32.mrf.mxu0 }
 0x949   :  { %v2611_v50 = vadd.f32 %v5878_v61, %v5840_v51 }
 0x94a   :  { %v5842_v0 = vpop.f32.mrf.mxu1  ;;  %v5880_v3 = vpop.f32.mrf.mxu0 }
 0x94b   :  { %v5843_v2 = vadd.f32 %v5842_v0, %v5841_v62  ;;  %v2619_v60 = vadd.f32 %v2611_v50, %v7246_v49  ;;  %v5881_v19 = vadd.f32 %v5880_v3, %v5879_v63 }
 0x94c   :  { %v2729_v21 = vpop.f32.mrf.mxu1  ;;  %v2806_v57 = vpop.f32.mrf.mxu0 }
 0x94d   :  { %v2616_v4 = vadd.f32 %v5881_v19, %v5843_v2  ;;  %v2730_v5 = vadd.f32 %v2729_v21, %v2634_v1  ;;  %v2807_v7 = vadd.f32 %v2806_v57, %v2642_v59 }
 0x94e   :  { %v2731_v6 = vpop.f32.mrf.mxu1  ;;  %v2808_v10 = vpop.f32.mrf.mxu0 }
 0x94f   :  { %v2732_v8 = vadd.f32 %v2731_v6, %v2638_v12  ;;  %v2620_v11 = vadd.f32 %v2616_v4, %v7250_v20  ;;  %v2809_v13 = vadd.f32 %v2808_v10, %v2646_v56  ;;  %v2817_v17 = vmax.f32 %v2730_v5, 0.0  ;;  %v3113_v4 = vld [vmem:[%s7847_s21] sm:$0xff] }
 0x950   :  { %v2735_v14 = vpop.f32.mrf.mxu1  ;;  %v2812_v16 = vpop.f32.mrf.mxu0  ;;  %v2819_v23 = vmax.f32 %v2807_v7, 0.0 }
 0x951   :  { %v2818_v15 = vmax.f32 %v2732_v8, 0.0  ;;  %v2820_v18 = vmax.f32 %v2809_v13, 0.0  ;;  %v2736_v49 = vadd.f32 %v2735_v14, %v2634_v1  ;;  %v2813_v24 = vadd.f32 %v2812_v16, %v2642_v59  ;;  %v5558_v14 = vld [vmem:[%s7848_s25] ss:$0 sm:$0xff] }
 0x952   :  { %v2737_v22 = vpop.f32.mrf.mxu1  ;;  %v2814_v28 = vpop.f32.mrf.mxu0  ;;  %v5559_v16 = vld [vmem:[%s7849_s29] ss:$0 sm:$0xff] }
 0x953   :  { %v2738_v27 = vadd.f32 %v2737_v22, %v2638_v12  ;;  %2953 = vmatprep.mubr.f32.mxu1 %v2818_v15  ;;  %v2815_v29 = vadd.f32 %v2814_v28, %v2646_v56  ;;  %3028 = vmatprep.mubr.f32.mxu0 %v2820_v18  ;;  %v2821_v31 = vmax.f32 %v2736_v49, 0.0  ;;  %v2823_v32 = vmax.f32 %v2813_v24, 0.0 }
 0x954   :  { %2954 = vmatmul.mubr.f32.vlgmr.msra.gmra.mxu1 %v2817_v17  ;;  %3029 = vmatmul.mubr.f32.vlgmr.msra.gmra.mxu0 %v2819_v23 }
 0x955   :  { %v2822_v30 = vmax.f32 %v2738_v27, 0.0  ;;  %v2824_v20 = vmax.f32 %v2815_v29, 0.0 }
 0x957   :  { %2958 = vmatprep.mubr.f32.mxu1 %v2822_v30  ;;  %3033 = vmatprep.mubr.f32.mxu0 %v2824_v20 }
 0x958   :  { %2959 = vmatmul.mubr.f32.gmra.mxu1 %v2821_v31  ;;  %3034 = vmatmul.mubr.f32.gmra.mxu0 %v2823_v32 }
 0x959   :  { %6353 = vmatprep.mubr.msk.f32.mxu1 %vm6554_vm3, %v6553_v25  ;;  %6362 = vmatprep.mubr.msk.f32.mxu0 %vm6554_vm3, %v6553_v25 }
 0xa14   :  { %v5914_v33 = vpop.f32.mrf.mxu1  ;;  %v5952_v35 = vpop.f32.mrf.mxu0 }
 0xa16   :  { %v5915_v36 = vpop.f32.mrf.mxu1  ;;  %v5953_v38 = vpop.f32.mrf.mxu0 }
 0xa17   :  { %v5916_v37 = vadd.f32 %v5915_v36, %v5914_v33  ;;  %v5954_v40 = vadd.f32 %v5953_v38, %v5952_v35 }
 0xa18   :  { %v5917_v41 = vpop.f32.mrf.mxu1  ;;  %v5955_v42 = vpop.f32.mrf.mxu0 }
 0xa19   :  { %v3031_v43 = vadd.f32 %v5954_v40, %v5916_v37 }
 0xa1a   :  { %v5918_v45 = vpop.f32.mrf.mxu1  ;;  %v5956_v44 = vpop.f32.mrf.mxu0 }
 0xa1b   :  { %v5919_v9 = vadd.f32 %v5918_v45, %v5917_v41  ;;  %v3039_v47 = vadd.f32 %v3031_v43, %v2619_v60  ;;  %v5957_v51 = vadd.f32 %v5956_v44, %v5955_v42  ;;  %v5560_v44 = vld [vmem:[%s7851_s8] ss:$0 sm:$0xff] }
 0xa1d   :  { %v3036_v52 = vadd.f32 %v5957_v51, %v5919_v9  ;;  %v3048_v53 = vadd.f32 %v5557_v46, %v3039_v47  ;;  %v3213_v9 = vld [vmem:[%s7850_s3 + $0x10] sm:$0xff] }
 0xa1e   :  { %6357 = vmatpush3.msra.mxu0 %v3213_v9 }
 0xa1f   :  { %v3040_v61 = vadd.f32 %v3036_v52, %v2620_v11  ;;  %v3050_v62 = vadd.f32 %v3048_v53, %v6932_v34  ;;  %6358 = vmatprep.subr.mxu0 %v6553_v25 }
 0xa21   :  { %v3052_v63 = vsel %vm302_vm2, %v3050_v62, 0.0  ;;  %v3049_v50 = vadd.f32 %v5557_v46, %v3040_v61  ;;  %v3212_v61 = vld [vmem:[%s7850_s3 + $0x8] sm:$0xff] }
 0xa22   :  { %3053 = vadd.xlane.f32.xlu0 %v3052_v63  ;;  %6359 = vmatpush3.msra.mxu0 %v3212_v61  ;;  %v3698_v61 = vld [vmem:[%s7864_s28 + $0x88] sm:$0xf] }
 0xa23   :  { %v3051_v0 = vadd.f32 %v3049_v50, %v6944_v39  ;;  %v3114_v39 = vld [vmem:[%s7847_s21 + $0x8] sm:$0xf]  ;;  %6360 = vmatprep.subr.mxu0 %v6553_v25  ;;  %v3201_v50 = vld [vmem:[%s7852_s14] sm:$0x3] }
 0xa24   :  { %6350 = vmatpush3.msk.msra.mxu1 %vm309_vm1, %v3114_v39 }
 0xa25   :  { %v3055_v1 = vsel %vm302_vm2, %v3051_v0, 0.0  ;;  %6351 = vmatprep.subr.mxu1 %v6553_v25 }
 0xa26   :  { %3056 = vadd.xlane.f32.xlu1 %v3055_v1  ;;  %6352 = vmatpush3.msra.mxu1 %v3113_v4  ;;  %v5565_v4 = vld [vmem:[%s7857_s20] ss:$0 sm:$0xff] }
 0xa27   :  { %6365 = vmatprep.subr.mxu1 %v6553_v25 }
 0xaab   :  { %v3054_v2 = vpop.xlane.xlu0 %3053 }
 0xaac   :  { %v3058_v3 = vmul.f32 0.083333336, %v3054_v2 }
 0xaae   :  { %v3060_v59 = vsub.f32 %v3050_v62, %v3058_v3  ;;  %v3211_v62 = vld [vmem:[%s7850_s3] sm:$0xff]  ;;  %v3296_v3 = vld [vmem:[%s7853_s19 + $0x8] sm:$0xf] }
 0xaaf   :  { %v3057_v12 = vpop.xlane.xlu1 %3056  ;;  %6361 = vmatpush3.msra.mxu0 %v3211_v62  ;;  %v3700_v62 = vld [vmem:[%s7864_s28 + $0x98] sm:$0xf] }
 0xab0   :  { %v3059_v60 = vmul.f32 0.083333336, %v3057_v12  ;;  %v3062_v19 = vmul.f32 %v3060_v59, %v3060_v59  ;;  %6372 = vmatprep.subr.mxu0 %v6553_v25  ;;  %v5563_v12 = vld [vmem:[%s7854_s24] ss:$0 sm:$0xff] }
 0xab2   :  { %v3061_v21 = vsub.f32 %v3051_v0, %v3059_v60  ;;  %v3064_v34 = vsel %vm302_vm2, %v3062_v19, 0.0 }
 0xab3   :  { %3065 = vadd.xlane.f32.xlu0 %v3064_v34 }
 0xab4   :  { %v3063_v56 = vmul.f32 %v3061_v21, %v3061_v21 }
 0xab6   :  { %v3067_v57 = vsel %vm302_vm2, %v3063_v56, 0.0  ;;  %v3496_v56 = vld [vmem:[%s7855_s6] sm:$0xff] }
 0xab7   :  { %3068 = vadd.xlane.f32.xlu1 %v3067_v57 }
 0xb3c   :  { %v3066_v5 = vpop.xlane.xlu0 %3065 }
 0xb3d   :  { %v3070_v6 = vmul.f32 0.083333336, %v3066_v5 }
 0xb3f   :  { %v3072_v7 = vadd.f32 1e-05, %v3070_v6 }
 0xb40   :  { %v3069_v8 = vpop.xlane.xlu1 %3068 }
 0xb41   :  { %6473 = vrsqrt.f32 %v3072_v7  ;;  %v3071_v10 = vmul.f32 0.083333336, %v3069_v8  ;;  %v3579_v7 = vld [vmem:[%s7858_s15 + $0x8] sm:$0xf] }
 0xb43   :  { %v3073_v11 = vadd.f32 1e-05, %v3071_v10  ;;  %v5573_v10 = vld [vmem:[%s7859_s16] ss:$0 sm:$0xff] }
 0xb45   :  { %6475 = vrsqrt.f32 %v3073_v11  ;;  %v3578_v11 = vld [vmem:[%s7858_s15] sm:$0xff] }
 0xb4e   :  { %v6474_v13 = vpop.eup %6473 }
 0xb4f   :  { %v3076_v15 = vmul.f32 %v6474_v13, %v3060_v59  ;;  %v3295_v59 = vld [vmem:[%s7853_s19] sm:$0xff] }
 0xb51   :  { %v3085_v17 = vmul.f32 %v5558_v14, %v3076_v15 }
 0xb52   :  { %v6476_v18 = vpop.eup %6475 }
 0xb53   :  { %v3094_v49 = vadd.f32 %v5559_v16, %v3085_v17  ;;  %v3077_v22 = vmul.f32 %v6476_v18, %v3061_v21  ;;  %v3497_v21 = vld [vmem:[%s7855_s6 + $0x8] sm:$0xf] }
 0xb55   :  { %v3086_v23 = vmul.f32 %v5558_v14, %v3077_v22  ;;  %v3096_v24 = vsel %vm302_vm2, %v3094_v49, 0.0 }
 0xb56   :  { %v3097_v27 = vrot.slane %v3096_v24, 4 }
 0xb57   :  { %v3095_v28 = vadd.f32 %v5559_v16, %v3086_v23  ;;  %v5568_v16 = vld [vmem:[%s7860_s18] ss:$0 sm:$0xff] }
 0xb58   :  { %v3098_v29 = vadd.f32 %v3097_v27, %v3096_v24 }
 0xb59   :  { %v3103_v30 = vsel %vm302_vm2, %v3095_v28, 0.0 }
 0xb5a   :  { %v3099_v31 = vrot.slane %v3098_v29, 2  ;;  %v3104_v20 = vrot.slane %v3103_v30, 4 }
 0xb5c   :  { %v3100_v32 = vadd.f32 %v3099_v31, %v3098_v29  ;;  %v3105_v33 = vadd.f32 %v3104_v20, %v3103_v30 }
 0xb5e   :  { %v3101_v35 = vrot.slane %v3100_v32, 1  ;;  %v3106_v36 = vrot.slane %v3105_v33, 2 }
 0xb60   :  { %v3107_v37 = vadd.f32 %v3106_v36, %v3105_v33  ;;  %v3102_v38 = vadd.f32 %v3101_v35, %v3100_v32 }
 0xb62   :  { %v3108_v40 = vrot.slane %v3107_v37, 1  ;;  %v3111_v42 = vmul.f32 0.125, %v3102_v38 }
 0xb64   :  { %v3109_v41 = vadd.f32 %v3108_v40, %v3107_v37  ;;  %v5571_v37 = vld [vmem:[%s7861_s22] ss:$0 sm:$0xff] }
 0xb65   :  { %v5576_v40 = vld [vmem:[%s7862_s23] ss:$0 sm:$0xff] }
 0xb66   :  { %v3112_v43 = vmul.f32 0.125, %v3109_v41  ;;  %v5572_v41 = vld [vmem:[%s7863_s26] ss:$0 sm:$0xff] }
 0xb68   :  { %v3125_v45 = vsel %vm3124_vm9, %v3112_v43, %v3111_v42 }
 0xb69   :  { %6354 = vmatmul.mubr.msk.f32.vlgmr.msra.gmra.mxu1 %vm302_vm2, %v3125_v45 }
 0xb6a   :  { %6369 = vmatprep.mubr.msk.f32.mxu1 %vm6554_vm3, %v6553_v25  ;;  %6366 = vmatpush3.msk.msra.mxu1 %vm309_vm1, %v3296_v3  ;;  %v3695_v3 = vld [vmem:[%s7864_s28 + $0x10] sm:$0xff] }
 0xb6b   :  { %6367 = vmatprep.subr.mxu1 %v6553_v25 }
 0xb6c   :  { %6368 = vmatpush3.msra.mxu1 %v3295_v59  ;;  %v3953_v59 = vld [vmem:[%s7864_s28 + $0xa8] sm:$0xf] }
 0xb6d   :  { %6379 = vmatprep.subr.mxu1 %v6553_v25 }
 0xc29   :  { %v3197_v46 = vpop.f32.mrf.mxu1 }
 0xc2a   :  { %v3198_v47 = vadd.f32 %v5560_v44, %v3197_v46 }
 0xc2b   :  { %v6355_v51 = vpop.f32.mrf.mxu1 }
 0xc2c   :  { %v3202_v52 = vmul.f32 0.5, %v3198_v47  ;;  %5425 = vst.msk [vmem:[%s6798_s13] sm:$0x3] %vm5424_vm10, %v3198_v47  ;;  %s7856_s13 = sld [smem:[#allocation18_spill]] }
 0xc2e   :  { %v3203_v53 = vmul.f32 1.442695, %v3202_v52 }
 0xc30   :  { %6477 = vpow2.f32 %v3203_v53 }
 0xc32   :  { %v3381_v57 = vld [vmem:[%s7856_s13 + $0x8] sm:$0xf]  ;;  %v3380_v39 = vld [vmem:[%s7856_s13] sm:$0xff] }
 0xc3d   :  { %v6478_v63 = vpop.eup %6477 }
 0xc3e   :  { %3206 = vrot.lane.b32.xlu0 %v6478_v63, %s6555_s30  ;;  %v3697_v63 = vld [vmem:[%s7864_s28 + $0x80] sm:$0xf] }
 0xcb0   :  { %v3207_v0 = vpop.permute.xlu0 %3206 }
 0xcb1   :  { %v3209_v1 = vmul.f32 %v3207_v0, %v3201_v50  ;;  %v3699_v50 = vld [vmem:[%s7864_s28 + $0x90] sm:$0xf]  ;;  %v3694_v0 = vld [vmem:[%s7864_s28 + $0x8] sm:$0xff] }
 0xcb3   :  { %v3210_v2 = vadd.f32 %v3209_v1, %v3198_v47  ;;  %v3696_v1 = vld [vmem:[%s7864_s28 + $0x18] sm:$0xff] }
 0xcb5   :  { %6363 = vmatmul.mubr.msk.f32.vlgmr.msra.gmra.mxu0 %vm3221_vm11, %v3210_v2  ;;  %v3693_v2 = vld [vmem:[%s7864_s28] sm:$0xff] }
 0xcb6   :  { %6376 = vmatprep.mubr.msk.f32.mxu0 %vm6554_vm3, %v6553_v25  ;;  %6373 = vmatpush3.msk.msra.mxu0 %vm309_vm1, %v3381_v57 }
 0xcb7   :  { %6374 = vmatprep.subr.mxu0 %v6553_v25 }
 0xcb8   :  { %6375 = vmatpush3.msra.mxu0 %v3380_v39  ;;  %v5580_v39 = vld [vmem:[%s7866_s2] ss:$0 sm:$0xff] }
 0xcb9   :  { %6386 = vmatprep.subr.mxu0 %v6553_v25 }
 0xd75   :  { %v3291_v60 = vpop.f32.mrf.mxu0 }
 0xd76   :  { %v3292_v19 = vadd.f32 %v5563_v12, %v3291_v60  ;;  %v3955_v12 = vld [vmem:[%s7864_s28 + $0xb8] sm:$0xf] }
 0xd77   :  { %v6364_v34 = vpop.f32.mrf.mxu0 }
 0xd78   :  { %6370 = vmatmul.mubr.msk.f32.vlgmr.msra.gmra.mxu1 %vm302_vm2, %v3292_v19 }
 0xd79   :  { %6380 = vmatpush3.msk.msra.mxu1 %vm309_vm1, %v3497_v21  ;;  %6383 = vmatprep.mubr.msk.f32.mxu1 %vm6554_vm3, %v6553_v25 }
 0xd7a   :  { %6381 = vmatprep.subr.mxu1 %v6553_v25 }
 0xd7b   :  { %6382 = vmatpush3.msra.mxu1 %v3496_v56  ;;  %v5579_v56 = vld [vmem:[%s7865_s1] ss:$0 sm:$0xff] }
 0xd7c   :  { %6384 = vmatmul.mubr.msk.f32.vlgmr.msra.gmra.mxu1 %vm302_vm2, %v3292_v19  ;;  %5581 = vmatprep.subr.msk.mxu1 %vm309_vm1, %v3698_v61  ;;  %v4191_v61 = vld [vmem:[%s7867_s7 + $0x3b8] sm:$0xff] }
 0xd7d   :  { %3802 = vmatprep.mubr.f32.mxu1 %v6553_v25  ;;  %5582 = vmatpush1.msk.msra.mxu1 %vm309_vm1, %v3697_v63  ;;  %v4175_v63 = vld [vmem:[%s7867_s7 + $0x338] sm:$0xff] }
 0xd7e   :  { %3768 = vmatprep.subr.mxu1 %v3694_v0  ;;  %v4190_v0 = vld [vmem:[%s7867_s7 + $0x3b0] sm:$0xff] }
 0xd7f   :  { %3769 = vmatpush1.msra.mxu1 %v3693_v2  ;;  %v4174_v2 = vld [vmem:[%s7867_s7 + $0x330] sm:$0xff] }
 0xd80   :  { %5587 = vmatprep.subr.msk.mxu1 %vm309_vm1, %v3953_v59  ;;  %v4189_v59 = vld [vmem:[%s7867_s7 + $0x3a8] sm:$0xff] }
 0xe38   :  { %v3376_v5 = vpop.f32.mrf.mxu1 }
 0xe39   :  { %v3377_v6 = vadd.f32 %v5565_v4, %v3376_v5 }
 0xe3a   :  { %v6371_v8 = vpop.f32.mrf.mxu1 }
 0xe3b   :  { %6377 = vmatmul.mubr.msk.f32.vlgmr.msra.gmra.mxu0 %vm302_vm2, %v3377_v6  ;;  %v3952_v6 = vld [vmem:[%s7864_s28 + $0xa0] sm:$0xf]  ;;  %v3949_v8 = vld [vmem:[%s7864_s28 + $0x28] sm:$0xff] }
 0xe3c   :  { %v3574_v13 = vpop.f32.mrf.mxu1  ;;  %6387 = vmatpush3.msk.msra.mxu0 %vm309_vm1, %v3579_v7  ;;  %6390 = vmatprep.mubr.msk.f32.mxu0 %vm6554_vm3, %v6553_v25  ;;  %v3954_v7 = vld [vmem:[%s7864_s28 + $0xb0] sm:$0xf] }
 0xe3d   :  { %v3575_v14 = vadd.f32 %v5573_v10, %v3574_v13  ;;  %6388 = vmatprep.subr.mxu0 %v6553_v25  ;;  %v3951_v10 = vld [vmem:[%s7864_s28 + $0x38] sm:$0xff]  ;;  %v3950_v13 = vld [vmem:[%s7864_s28 + $0x30] sm:$0xff] }
 0xe3e   :  { %v6385_v15 = vpop.f32.mrf.mxu1  ;;  %6389 = vmatpush3.msra.mxu0 %v3578_v11  ;;  %v3948_v11 = vld [vmem:[%s7864_s28 + $0x20] sm:$0xff] }
 0xe3f   :  { %6391 = vmatmul.mubr.msk.f32.vlgmr.msra.gmra.mxu0 %vm302_vm2, %v3575_v14  ;;  %5584 = vmatprep.subr.msk.mxu0 %vm309_vm1, %v3700_v62  ;;  %v4167_v14 = vld [vmem:[%s7867_s7 + $0x2f8] sm:$0xff] }
 0xe40   :  { %3873 = vmatprep.mubr.f32.mxu0 %v6553_v25  ;;  %5585 = vmatpush1.msk.msra.mxu0 %vm309_vm1, %v3699_v50  ;;  %v4199_v15 = vld [vmem:[%s7867_s7 + $0x3f8] sm:$0xff]  ;;  %v4158_v50 = vld [vmem:[%s7867_s7 + $0x2b0] sm:$0xff] }
 0xe41   :  { %3839 = vmatprep.subr.mxu0 %v3696_v1  ;;  %v4143_v62 = vld [vmem:[%s7867_s7 + $0x238] sm:$0xff]  ;;  %v4142_v1 = vld [vmem:[%s7867_s7 + $0x230] sm:$0xff] }
 0xe42   :  { %3840 = vmatpush1.msra.mxu0 %v3695_v3  ;;  %v4157_v3 = vld [vmem:[%s7867_s7 + $0x2a8] sm:$0xff] }
 0xe43   :  { %5590 = vmatprep.subr.msk.mxu0 %vm309_vm1, %v3955_v12  ;;  %v4141_v12 = vld [vmem:[%s7867_s7 + $0x228] sm:$0xff] }
 0xefb   :  { %v3461_v17 = vpop.f32.mrf.mxu0 }
 0xefc   :  { %v3462_v18 = vadd.f32 %v5568_v16, %v3461_v17  ;;  %v4151_v16 = vld [vmem:[%s7867_s7 + $0x278] sm:$0xff] }
 0xefd   :  { %v6378_v49 = vpop.f32.mrf.mxu0  ;;  %v4183_v17 = vld [vmem:[%s7867_s7 + $0x378] sm:$0xff] }
 0xefe   :  { %v3465_v22 = vadd.f32 %v3462_v18, %v3292_v19  ;;  %v4166_v18 = vld [vmem:[%s7867_s7 + $0x2f0] sm:$0xff] }
 0xeff   :  { %v3659_v23 = vpop.f32.mrf.mxu0  ;;  %v4198_v49 = vld [vmem:[%s7867_s7 + $0x3f0] sm:$0xff] }
 0xf00   :  { %v3467_v24 = vsel %vm3466_vm12, %v3465_v22, 0.0  ;;  %v3660_v43 = vadd.f32 %v5576_v40, %v3659_v23  ;;  %v4182_v23 = vld [vmem:[%s7867_s7 + $0x370] sm:$0xff] }
 0xf01   :  { %3468 = vadd.xlane.f32.xlu1 %v3467_v24  ;;  %v6392_v27 = vpop.f32.mrf.mxu0  ;;  %v4165_v24 = vld [vmem:[%s7867_s7 + $0x2e8] sm:$0xff]  ;;  %v4194_v40 = vld [vmem:[%s7867_s7 + $0x3d0] sm:$0xff] }
 0xf02   :  { %v4197_v27 = vld [vmem:[%s7867_s7 + $0x3e8] sm:$0xff] }
 0xf8a   :  { %v3469_v28 = vpop.xlane.xlu1 %3468 }
 0xf8b   :  { %v3470_v29 = vmul.f32 0.083333336, %v3469_v28  ;;  %v4149_v28 = vld [vmem:[%s7867_s7 + $0x268] sm:$0xff] }
 0xf8d   :  { %v3471_v30 = vsub.f32 %v3465_v22, %v3470_v29  ;;  %v4150_v22 = vld [vmem:[%s7867_s7 + $0x270] sm:$0xff]  ;;  %v4181_v29 = vld [vmem:[%s7867_s7 + $0x368] sm:$0xff] }
 0xf8f   :  { %v3472_v31 = vmul.f32 %v3471_v30, %v3471_v30 }
 0xf91   :  { %v3473_v20 = vsel %vm3466_vm12, %v3472_v31, 0.0  ;;  %v4196_v31 = vld [vmem:[%s7867_s7 + $0x3e0] sm:$0xff] }
 0xf92   :  { %3474 = vadd.xlane.f32.xlu1 %v3473_v20  ;;  %v4148_v20 = vld [vmem:[%s7867_s7 + $0x260] sm:$0xff] }
0x101b   :  { %v3475_v32 = vpop.xlane.xlu1 %3474 }
0x101c   :  { %v3476_v33 = vmul.f32 0.083333336, %v3475_v32  ;;  %v4180_v32 = vld [vmem:[%s7867_s7 + $0x360] sm:$0xff] }
0x101e   :  { %v3477_v35 = vadd.f32 1e-05, %v3476_v33  ;;  %v4163_v33 = vld [vmem:[%s7867_s7 + $0x2d8] sm:$0xff] }
0x1020   :  { %6479 = vrsqrt.f32 %v3477_v35  ;;  %v4195_v35 = vld [vmem:[%s7867_s7 + $0x3d8] sm:$0xff] }
0x102d   :  { %v6480_v36 = vpop.eup %6479 }
0x102e   :  { %v3479_v38 = vmul.f32 %v6480_v36, %v3471_v30  ;;  %v4164_v30 = vld [vmem:[%s7867_s7 + $0x2e0] sm:$0xff]  ;;  %v4147_v36 = vld [vmem:[%s7867_s7 + $0x258] sm:$0xff] }
0x1030   :  { %v3487_v42 = vmul.f32 %v5571_v37, %v3479_v38  ;;  %v4179_v37 = vld [vmem:[%s7867_s7 + $0x358] sm:$0xff]  ;;  %v4162_v38 = vld [vmem:[%s7867_s7 + $0x2d0] sm:$0xff] }
0x1032   :  { %v3495_v45 = vadd.f32 %v5572_v41, %v3487_v42  ;;  %v4146_v41 = vld [vmem:[%s7867_s7 + $0x250] sm:$0xff] }
0x1033   :  { %v4178_v42 = vld [vmem:[%s7867_s7 + $0x350] sm:$0xff] }
0x1034   :  { %v3663_v9 = vadd.f32 %v3660_v43, %v3495_v45  ;;  %v4161_v43 = vld [vmem:[%s7867_s7 + $0x2c8] sm:$0xff] }
0x1035   :  { %v4193_v45 = vld [vmem:[%s7867_s7 + $0x3c8] sm:$0xff] }
0x1036   :  { %v3664_v44 = vsel %vm3466_vm12, %v3663_v9, 0.0 }
0x1037   :  { %3665 = vadd.xlane.f32.xlu1 %v3664_v44  ;;  %v4177_v44 = vld [vmem:[%s7867_s7 + $0x348] sm:$0xff] }
0x10c0   :  { %v3666_v46 = vpop.xlane.xlu1 %3665 }
0x10c1   :  { %v3667_v47 = vmul.f32 0.083333336, %v3666_v46  ;;  %v4160_v46 = vld [vmem:[%s7867_s7 + $0x2c0] sm:$0xff] }
0x10c3   :  { %v3668_v51 = vsub.f32 %v3663_v9, %v3667_v47  ;;  %v4145_v9 = vld [vmem:[%s7867_s7 + $0x248] sm:$0xff]  ;;  %v4192_v47 = vld [vmem:[%s7867_s7 + $0x3c0] sm:$0xff] }
0x10c5   :  { %v3669_v52 = vmul.f32 %v3668_v51, %v3668_v51 }
0x10c7   :  { %v3670_v53 = vsel %vm3466_vm12, %v3669_v52, 0.0  ;;  %v4176_v52 = vld [vmem:[%s7867_s7 + $0x340] sm:$0xff] }
0x10c8   :  { %3671 = vadd.xlane.f32.xlu1 %v3670_v53  ;;  %v4159_v53 = vld [vmem:[%s7867_s7 + $0x2b8] sm:$0xff] }
0x1151   :  { %v3672_v60 = vpop.xlane.xlu1 %3671 }
0x1152   :  { %v3673_v19 = vmul.f32 0.083333336, %v3672_v60  ;;  %v4173_v60 = vld [vmem:[%s7867_s7 + $0x328] sm:$0xff] }
0x1154   :  { %v3674_v21 = vadd.f32 1e-05, %v3673_v19  ;;  %v4156_v19 = vld [vmem:[%s7867_s7 + $0x2a0] sm:$0xff] }
0x1156   :  { %6481 = vrsqrt.f32 %v3674_v21  ;;  %v4188_v21 = vld [vmem:[%s7867_s7 + $0x3a0] sm:$0xff] }
0x1163   :  { %v6482_v34 = vpop.eup %6481 }
0x1164   :  { %v3676_v57 = vmul.f32 %v6482_v34, %v3668_v51  ;;  %v4144_v51 = vld [vmem:[%s7867_s7 + $0x240] sm:$0xff] }
0x1165   :  { %v4140_v34 = vld [vmem:[%s7867_s7 + $0x220] sm:$0xff] }
0x1166   :  { %v3684_v4 = vmul.f32 %v5579_v56, %v3676_v57  ;;  %v4172_v56 = vld [vmem:[%s7867_s7 + $0x320] sm:$0xff]  ;;  %v4155_v57 = vld [vmem:[%s7867_s7 + $0x298] sm:$0xff] }
0x1168   :  { %v7436_v5 = vadd.f32 %v5580_v39, %v3684_v4  ;;  %v4187_v39 = vld [vmem:[%s7867_s7 + $0x398] sm:$0xff] }
0x1169   :  { %v4139_v4 = vld [vmem:[%s7867_s7 + $0x218] sm:$0xff] }
0x116a   :  { %5583 = vmatmul.mubr.msk.f32.vlgmr.msra.gmra.mxu1 %vm302_vm2, %v7436_v5  ;;  %5586 = vmatmul.mubr.msk.f32.vlgmr.msra.gmra.mxu0 %vm302_vm2, %v7436_v5 }
0x116b   :  { %5588 = vmatpush1.msk.msra.mxu1 %vm309_vm1, %v3952_v6  ;;  %5591 = vmatpush1.msk.msra.mxu0 %vm309_vm1, %v3954_v7  ;;  %v4171_v6 = vld [vmem:[%s7867_s7 + $0x318] sm:$0xff]  ;;  %v4154_v7 = vld [vmem:[%s7867_s7 + $0x290] sm:$0xff] }
0x116c   :  { %4020 = vmatprep.subr.mxu1 %v3949_v8  ;;  %4091 = vmatprep.subr.mxu0 %v3951_v10  ;;  %v4186_v8 = vld [vmem:[%s7867_s7 + $0x390] sm:$0xff] }
0x116d   :  { %4021 = vmatpush1.msra.mxu1 %v3948_v11  ;;  %4054 = vmatprep.mubr.f32.mxu1 %v6553_v25  ;;  %v4138_v10 = vld [vmem:[%s7867_s7 + $0x210] sm:$0xff] }
0x116e   :  { %4092 = vmatpush1.msra.mxu0 %v3950_v13  ;;  %4125 = vmatprep.mubr.f32.mxu0 %v6553_v25  ;;  %v4170_v11 = vld [vmem:[%s7867_s7 + $0x310] sm:$0xff]  ;;  %v4153_v13 = vld [vmem:[%s7867_s7 + $0x288] sm:$0xff] }
0x116f   :  { %5589 = vmatmul.mubr.msk.f32.vlgmr.msra.gmra.mxu1 %vm302_vm2, %v7436_v5  ;;  %5592 = vmatmul.mubr.msk.f32.vlgmr.msra.gmra.mxu0 %vm302_vm2, %v7436_v5 }
0x1170   :  { %5977 = vmatprep.subr.mxu1 %v4167_v14  ;;  %6012 = vmatprep.subr.mxu0 %v4199_v15  ;;  %v4185_v14 = vld [vmem:[%s7867_s7 + $0x388] sm:$0xff] }
0x1171   :  { %5978 = vmatpush3.msra.mxu1 %v4151_v16  ;;  %6013 = vmatpush3.msra.mxu0 %v4183_v17  ;;  %v4137_v15 = vld [vmem:[%s7867_s7 + $0x208] sm:$0xff]  ;;  %v4152_v17 = vld [vmem:[%s7867_s7 + $0x280] sm:$0xff] }
0x1172   :  { %5979 = vmatprep.subr.mxu1 %v4166_v18  ;;  %6014 = vmatprep.subr.mxu0 %v4198_v49  ;;  %v4169_v16 = vld [vmem:[%s7867_s7 + $0x308] sm:$0xff]  ;;  %v4184_v18 = vld [vmem:[%s7867_s7 + $0x380] sm:$0xff] }
0x1173   :  { %5980 = vmatpush3.msra.mxu1 %v4150_v22  ;;  %6015 = vmatpush3.msra.mxu0 %v4182_v23  ;;  %v4136_v49 = vld [vmem:[%s7867_s7 + $0x200] sm:$0xff]  ;;  %v3915_v23 = vld [vmem:[%s7867_s7 + $0xf8] sm:$0xff] }
0x1174   :  { %5981 = vmatprep.subr.mxu1 %v4165_v24  ;;  %6016 = vmatprep.subr.mxu0 %v4197_v27  ;;  %v4168_v22 = vld [vmem:[%s7867_s7 + $0x300] sm:$0xff]  ;;  %v3947_v24 = vld [vmem:[%s7867_s7 + $0x1f8] sm:$0xff] }
0x1175   :  { %5982 = vmatpush3.msra.mxu1 %v4149_v28  ;;  %6017 = vmatpush3.msra.mxu0 %v4181_v29  ;;  %v3956_v29 = vld [vmem:[%s7868_s10 + $0x4] sm:$0xf] }
0x1176   :  { %5983 = vmatprep.subr.mxu1 %v4164_v30  ;;  %6018 = vmatprep.subr.mxu0 %v4196_v31 }
0x1177   :  { %5984 = vmatpush3.msra.mxu1 %v4148_v20  ;;  %6019 = vmatpush3.msra.mxu0 %v4180_v32  ;;  %v3961_v20 = vrot.slane %v3956_v29, %v7041_v54  ;;  %v3969_v32 = vrot.slane %v3956_v29, %v7044_v55 }
0x1178   :  { %5985 = vmatprep.subr.mxu1 %v4163_v33  ;;  %6020 = vmatprep.subr.mxu0 %v4195_v35  ;;  %v7530_v33 = vld [vmem:[%s7868_s10] sm:$0xf]  ;;  %v3965_v35 = vrot.slane %v3956_v29, %v7051_v26 }
0x1179   :  { %5986 = vmatpush3.msra.mxu1 %v4147_v36  ;;  %6021 = vmatpush3.msra.mxu0 %v4179_v37  ;;  %v3973_v36 = vrot.slane %v3956_v29, %v7054_v58  ;;  %v3710_v37 = vrot.slane %v7530_v33, %v7051_v26  ;;  %v3924_v29 = vld [vmem:[%s7867_s7 + $0x140] sm:$0xff] }
0x117a   :  { %5987 = vmatprep.subr.mxu1 %v4162_v38  ;;  %6022 = vmatprep.subr.mxu0 %v4194_v40 }
0x117b   :  { %5988 = vmatpush3.msra.mxu1 %v4146_v41  ;;  %6023 = vmatpush3.msra.mxu0 %v4178_v42  ;;  %v3718_v41 = vrot.slane %v7530_v33, %v7054_v58 }
0x117c   :  { %5989 = vmatprep.subr.mxu1 %v4161_v43  ;;  %6024 = vmatprep.subr.mxu0 %v4193_v45 }
0x117d   :  { %5990 = vmatpush3.msra.mxu1 %v4145_v9  ;;  %6025 = vmatpush3.msra.mxu0 %v4177_v44 }
0x117e   :  { %5991 = vmatprep.subr.mxu1 %v4160_v46  ;;  %6026 = vmatprep.subr.mxu0 %v4192_v47 }
0x117f   :  { %5992 = vmatpush3.msra.mxu1 %v4144_v51  ;;  %6027 = vmatpush3.msra.mxu0 %v4176_v52 }
0x1180   :  { %5993 = vmatprep.subr.mxu1 %v4159_v53  ;;  %6028 = vmatprep.subr.mxu0 %v4191_v61 }
0x1181   :  { %5994 = vmatpush3.msra.mxu1 %v4143_v62  ;;  %6029 = vmatpush3.msra.mxu0 %v4175_v63  ;;  %v3899_v63 = vld [vmem:[%s7867_s7 + $0x78] sm:$0xff] }
0x1182   :  { %5995 = vmatprep.subr.mxu1 %v4158_v50  ;;  %6030 = vmatprep.subr.mxu0 %v4190_v0  ;;  %v3931_v50 = vld [vmem:[%s7867_s7 + $0x178] sm:$0xff]  ;;  %v3914_v0 = vld [vmem:[%s7867_s7 + $0xf0] sm:$0xff] }
0x1183   :  { %5996 = vmatpush3.msra.mxu1 %v4142_v1  ;;  %6031 = vmatpush3.msra.mxu0 %v4174_v2  ;;  %v3946_v2 = vld [vmem:[%s7867_s7 + $0x1f0] sm:$0xff] }
0x1184   :  { %5997 = vmatprep.subr.mxu1 %v4157_v3  ;;  %6032 = vmatprep.subr.mxu0 %v4189_v59  ;;  %v3898_v59 = vld [vmem:[%s7867_s7 + $0x70] sm:$0xff] }
0x1185   :  { %5998 = vmatpush3.msra.mxu1 %v4141_v12  ;;  %6033 = vmatpush3.msra.mxu0 %v4173_v60  ;;  %v3930_v12 = vld [vmem:[%s7867_s7 + $0x170] sm:$0xff]  ;;  %v3913_v60 = vld [vmem:[%s7867_s7 + $0xe8] sm:$0xff] }
0x1186   :  { %5999 = vmatprep.subr.mxu1 %v4156_v19  ;;  %6034 = vmatprep.subr.mxu0 %v4188_v21  ;;  %v3945_v19 = vld [vmem:[%s7867_s7 + $0x1e8] sm:$0xff] }
0x1187   :  { %6000 = vmatpush3.msra.mxu1 %v4140_v34  ;;  %6035 = vmatpush3.msra.mxu0 %v4172_v56  ;;  %v3897_v21 = vld [vmem:[%s7867_s7 + $0x68] sm:$0xff]  ;;  %v3912_v56 = vld [vmem:[%s7867_s7 + $0xe0] sm:$0xff] }
0x1188   :  { %6001 = vmatprep.subr.mxu1 %v4155_v57  ;;  %6036 = vmatprep.subr.mxu0 %v4187_v39  ;;  %v3929_v34 = vld [vmem:[%s7867_s7 + $0x168] sm:$0xff]  ;;  %v3944_v57 = vld [vmem:[%s7867_s7 + $0x1e0] sm:$0xff] }
0x1189   :  { %6002 = vmatpush3.msra.mxu1 %v4139_v4  ;;  %6037 = vmatpush3.msra.mxu0 %v4171_v6  ;;  %v3896_v39 = vld [vmem:[%s7867_s7 + $0x60] sm:$0xff]  ;;  %v3911_v6 = vld [vmem:[%s7867_s7 + $0xd8] sm:$0xff] }
0x118a   :  { %6003 = vmatprep.subr.mxu1 %v4154_v7  ;;  %6038 = vmatprep.subr.mxu0 %v4186_v8  ;;  %v3928_v4 = vld [vmem:[%s7867_s7 + $0x160] sm:$0xff]  ;;  %v3943_v7 = vld [vmem:[%s7867_s7 + $0x1d8] sm:$0xff] }
0x118b   :  { %6004 = vmatpush3.msra.mxu1 %v4138_v10  ;;  %6039 = vmatpush3.msra.mxu0 %v4170_v11  ;;  %v3895_v8 = vld [vmem:[%s7867_s7 + $0x58] sm:$0xff]  ;;  %v3910_v11 = vld [vmem:[%s7867_s7 + $0xd0] sm:$0xff] }
0x118c   :  { %6005 = vmatprep.subr.mxu1 %v4153_v13  ;;  %6040 = vmatprep.subr.mxu0 %v4185_v14  ;;  %v3927_v10 = vld [vmem:[%s7867_s7 + $0x158] sm:$0xff]  ;;  %v3942_v13 = vld [vmem:[%s7867_s7 + $0x1d0] sm:$0xff] }
0x118d   :  { %6006 = vmatpush3.msra.mxu1 %v4137_v15  ;;  %6041 = vmatpush3.msra.mxu0 %v4169_v16  ;;  %v3894_v14 = vld [vmem:[%s7867_s7 + $0x50] sm:$0xff]  ;;  %v3909_v16 = vld [vmem:[%s7867_s7 + $0xc8] sm:$0xff] }
0x118e   :  { %6007 = vmatprep.subr.mxu1 %v4152_v17  ;;  %6042 = vmatprep.subr.mxu0 %v4184_v18  ;;  %v3926_v15 = vld [vmem:[%s7867_s7 + $0x150] sm:$0xff]  ;;  %v3941_v17 = vld [vmem:[%s7867_s7 + $0x1c8] sm:$0xff] }
0x118f   :  { %6008 = vmatpush3.msra.mxu1 %v4136_v49  ;;  %6043 = vmatpush3.msra.mxu0 %v4168_v22  ;;  %v3893_v18 = vld [vmem:[%s7867_s7 + $0x48] sm:$0xff]  ;;  %v3908_v22 = vld [vmem:[%s7867_s7 + $0xc0] sm:$0xff] }
0x1190   :  { %6047 = vmatprep.subr.mxu1 %v3915_v23  ;;  %6082 = vmatprep.subr.mxu0 %v3947_v24  ;;  %v3925_v49 = vld [vmem:[%s7867_s7 + $0x148] sm:$0xff]  ;;  %v3940_v23 = vld [vmem:[%s7867_s7 + $0x1c0] sm:$0xff] }
0x1191   :  { %v3892_v24 = vld [vmem:[%s7867_s7 + $0x40] sm:$0xff] }
0x122a   :  { %v7522_v27 = vpop.f32.mrf.mxu1  ;;  %v7524_v28 = vpop.f32.mrf.mxu0 }
0x122c   :  { %v3806_v30 = vpop.f32.mrf.mxu1  ;;  %v3877_v31 = vpop.f32.mrf.mxu0 }
0x122d   :  { %v3807_v47 = vadd.f32 %v3806_v30, %v3710_v37  ;;  %v3878_v51 = vadd.f32 %v3877_v31, %v3718_v41  ;;  %v3907_v30 = vld [vmem:[%s7867_s7 + $0xb8] sm:$0xff]  ;;  %v3890_v37 = vld [vmem:[%s7867_s7 + $0x30] sm:$0xff]  ;;  %v3937_v41 = vld [vmem:[%s7867_s7 + $0x1a8] sm:$0xff] }
0x122e   :  { %v3939_v31 = vld [vmem:[%s7867_s7 + $0x1b8] sm:$0xff] }
0x122f   :  { %v4056_v38 = vpop.f32.mrf.mxu1  ;;  %v4127_v40 = vpop.f32.mrf.mxu0  ;;  %v3881_v1 = vmax.f32 %v3807_v47, 0.0  ;;  %v3883_v3 = vmax.f32 %v3878_v51, 0.0  ;;  %v3903_v47 = vld [vmem:[%s7867_s7 + $0x98] sm:$0xff] }
0x1230   :  { %v4057_v42 = vadd.f32 %v4056_v38, %v3961_v20  ;;  %v4128_v43 = vadd.f32 %v4127_v40, %v3969_v32  ;;  %v3891_v20 = vld [vmem:[%s7867_s7 + $0x38] sm:$0xff]  ;;  %v3922_v38 = vld [vmem:[%s7867_s7 + $0x130] sm:$0xff]  ;;  %v3905_v40 = vld [vmem:[%s7867_s7 + $0xa8] sm:$0xff] }
0x1231   :  { %v4058_v45 = vpop.f32.mrf.mxu1  ;;  %v4129_v9 = vpop.f32.mrf.mxu0  ;;  %v3923_v32 = vld [vmem:[%s7867_s7 + $0x138] sm:$0xff] }
0x1232   :  { %v4059_v44 = vadd.f32 %v4058_v45, %v3965_v35  ;;  %v4130_v46 = vadd.f32 %v4129_v9, %v3973_v36  ;;  %v4132_v61 = vmax.f32 %v4057_v42, 0.0  ;;  %v4134_v62 = vmax.f32 %v4128_v43, 0.0  ;;  %v3906_v35 = vld [vmem:[%s7867_s7 + $0xb0] sm:$0xff]  ;;  %v3889_v42 = vld [vmem:[%s7867_s7 + $0x28] sm:$0xff]  ;;  %v3904_v45 = vld [vmem:[%s7867_s7 + $0xa0] sm:$0xff] }
0x1233   :  { %v3938_v36 = vld [vmem:[%s7867_s7 + $0x1b0] sm:$0xff]  ;;  %v3921_v43 = vld [vmem:[%s7867_s7 + $0x128] sm:$0xff]  ;;  %v3936_v9 = vld [vmem:[%s7867_s7 + $0x1a0] sm:$0xff] }
0x1234   :  { %v4133_v52 = vmax.f32 %v4059_v44, 0.0  ;;  %v4135_v53 = vmax.f32 %v4130_v46, 0.0  ;;  %v3888_v44 = vld [vmem:[%s7867_s7 + $0x20] sm:$0xff]  ;;  %v3935_v51 = vld [vmem:[%s7867_s7 + $0x198] sm:$0xff] }
0x1235   :  { %v3920_v46 = vld [vmem:[%s7867_s7 + $0x120] sm:$0xff] }
0x1236   :  { %4264 = vmatprep.mubr.f32.mxu1 %v4133_v52  ;;  %4334 = vmatprep.mubr.f32.mxu0 %v4135_v53  ;;  %v3706_v52 = vrot.slane %v7530_v33, %v7041_v54  ;;  %v3714_v53 = vrot.slane %v7530_v33, %v7044_v55  ;;  %v3901_v33 = vld [vmem:[%s7867_s7 + $0x88] sm:$0xff] }
0x1237   :  { %4265 = vmatmul.mubr.f32.vlgmr.msra.gmra.mxu1 %v4132_v61  ;;  %4335 = vmatmul.mubr.f32.vlgmr.msra.gmra.mxu0 %v4134_v62  ;;  %v3887_v61 = vld [vmem:[%s7867_s7 + $0x18] sm:$0xff] }
0x1238   :  { %6048 = vmatpush3.msra.mxu1 %v3899_v63  ;;  %6083 = vmatpush3.msra.mxu0 %v3931_v50  ;;  %v3919_v62 = vld [vmem:[%s7867_s7 + $0x118] sm:$0xff]  ;;  %v3902_v63 = vld [vmem:[%s7867_s7 + $0x90] sm:$0xff] }
0x1239   :  { %6049 = vmatprep.subr.mxu1 %v3914_v0  ;;  %4404 = vmatprep.mubr.f32.mxu1 %v3881_v1  ;;  %v3934_v50 = vld [vmem:[%s7867_s7 + $0x190] sm:$0xff] }
0x123a   :  { %6084 = vmatprep.subr.mxu0 %v3946_v2  ;;  %4474 = vmatprep.mubr.f32.mxu0 %v3883_v3  ;;  %v3886_v0 = vld [vmem:[%s7867_s7 + $0x10] sm:$0xff]  ;;  %v3933_v2 = vld [vmem:[%s7867_s7 + $0x188] sm:$0xff]  ;;  %v3805_v3 = vadd.f32 %v7522_v27, %v3706_v52  ;;  %v4724_v52 = vld [vmem:[%s7867_s7 + $0x5c0] sm:$0xff] }
0x123b   :  { %6050 = vmatpush3.msra.mxu1 %v3898_v59  ;;  %6085 = vmatpush3.msra.mxu0 %v3930_v12  ;;  %v3918_v1 = vld [vmem:[%s7867_s7 + $0x110] sm:$0xff]  ;;  %v3876_v59 = vadd.f32 %v7524_v28, %v3714_v53  ;;  %v3885_v12 = vld [vmem:[%s7867_s7 + $0x8] sm:$0xff]  ;;  %v4676_v53 = vld [vmem:[%s7867_s7 + $0x440] sm:$0xff] }
0x123c   :  { %6051 = vmatprep.subr.mxu1 %v3913_v60  ;;  %6086 = vmatprep.subr.mxu0 %v3945_v19  ;;  %v3917_v60 = vld [vmem:[%s7867_s7 + $0x108] sm:$0xff]  ;;  %v3900_v19 = vld [vmem:[%s7867_s7 + $0x80] sm:$0xff]  ;;  %v3880_v27 = vmax.f32 %v3805_v3, 0.0  ;;  %v4706_v3 = vld [vmem:[%s7867_s7 + $0x530] sm:$0xff] }
0x123d   :  { %6052 = vmatpush3.msra.mxu1 %v3897_v21  ;;  %6087 = vmatpush3.msra.mxu0 %v3929_v34  ;;  %v3932_v21 = vld [vmem:[%s7867_s7 + $0x180] sm:$0xff]  ;;  %v3882_v28 = vmax.f32 %v3876_v59, 0.0  ;;  %v4689_v59 = vld [vmem:[%s7867_s7 + $0x4a8] sm:$0xff] }
0x123e   :  { %6053 = vmatprep.subr.mxu1 %v3912_v56  ;;  %6088 = vmatprep.subr.mxu0 %v3944_v57  ;;  %v3884_v34 = vld [vmem:[%s7867_s7] sm:$0xff]  ;;  %v4485_v57 = vld [vmem:[%s7864_s28 + $0xc8] sm:$0xf] }
0x123f   :  { %6054 = vmatpush3.msra.mxu1 %v3896_v39  ;;  %6089 = vmatpush3.msra.mxu0 %v3928_v4  ;;  %v3916_v56 = vld [vmem:[%s7867_s7 + $0x100] sm:$0xff]  ;;  %v4487_v39 = vld [vmem:[%s7864_s28 + $0xd8] sm:$0xf] }
0x1240   :  { %6055 = vmatprep.subr.mxu1 %v3911_v6  ;;  %6090 = vmatprep.subr.mxu0 %v3943_v7  ;;  %v4484_v4 = vld [vmem:[%s7864_s28 + $0xc0] sm:$0xf]  ;;  %v4486_v6 = vld [vmem:[%s7864_s28 + $0xd0] sm:$0xf]  ;;  %v4481_v7 = vld [vmem:[%s7864_s28 + $0x48] sm:$0xff] }
0x1241   :  { %6056 = vmatpush3.msra.mxu1 %v3895_v8  ;;  %6091 = vmatpush3.msra.mxu0 %v3927_v10  ;;  %v4483_v8 = vld [vmem:[%s7864_s28 + $0x58] sm:$0xff]  ;;  %v4480_v10 = vld [vmem:[%s7864_s28 + $0x40] sm:$0xff] }
0x1242   :  { %6057 = vmatprep.subr.mxu1 %v3910_v11  ;;  %6092 = vmatprep.subr.mxu0 %v3942_v13  ;;  %v4482_v11 = vld [vmem:[%s7864_s28 + $0x50] sm:$0xff]  ;;  %v4699_v13 = vld [vmem:[%s7867_s7 + $0x4f8] sm:$0xff] }
0x1243   :  { %6058 = vmatpush3.msra.mxu1 %v3894_v14  ;;  %6093 = vmatpush3.msra.mxu0 %v3926_v15  ;;  %v4731_v14 = vld [vmem:[%s7867_s7 + $0x5f8] sm:$0xff] }
0x1244   :  { %6059 = vmatprep.subr.mxu1 %v3909_v16  ;;  %6094 = vmatprep.subr.mxu0 %v3941_v17  ;;  %v4683_v15 = vld [vmem:[%s7867_s7 + $0x478] sm:$0xff]  ;;  %v4698_v17 = vld [vmem:[%s7867_s7 + $0x4f0] sm:$0xff] }
0x1245   :  { %6060 = vmatpush3.msra.mxu1 %v3893_v18  ;;  %6095 = vmatpush3.msra.mxu0 %v3925_v49  ;;  %v4715_v16 = vld [vmem:[%s7867_s7 + $0x578] sm:$0xff]  ;;  %v4730_v18 = vld [vmem:[%s7867_s7 + $0x5f0] sm:$0xff] }
0x1246   :  { %6061 = vmatprep.subr.mxu1 %v3908_v22  ;;  %6096 = vmatprep.subr.mxu0 %v3940_v23  ;;  %v4682_v49 = vld [vmem:[%s7867_s7 + $0x470] sm:$0xff]  ;;  %v4697_v23 = vld [vmem:[%s7867_s7 + $0x4e8] sm:$0xff] }
0x1247   :  { %6062 = vmatpush3.msra.mxu1 %v3892_v24  ;;  %6097 = vmatpush3.msra.mxu0 %v3924_v29  ;;  %v4714_v22 = vld [vmem:[%s7867_s7 + $0x570] sm:$0xff]  ;;  %v4729_v24 = vld [vmem:[%s7867_s7 + $0x5e8] sm:$0xff] }
0x1248   :  { %6063 = vmatprep.subr.mxu1 %v3907_v30  ;;  %6098 = vmatprep.subr.mxu0 %v3939_v31  ;;  %v4681_v29 = vld [vmem:[%s7867_s7 + $0x468] sm:$0xff]  ;;  %v4696_v31 = vld [vmem:[%s7867_s7 + $0x4e0] sm:$0xff] }
0x1249   :  { %6064 = vmatpush3.msra.mxu1 %v3891_v20  ;;  %6099 = vmatpush3.msra.mxu0 %v3923_v32  ;;  %v4713_v30 = vld [vmem:[%s7867_s7 + $0x568] sm:$0xff]  ;;  %v4728_v20 = vld [vmem:[%s7867_s7 + $0x5e0] sm:$0xff] }
0x124a   :  { %6065 = vmatprep.subr.mxu1 %v3906_v35  ;;  %6100 = vmatprep.subr.mxu0 %v3938_v36  ;;  %v4680_v32 = vld [vmem:[%s7867_s7 + $0x460] sm:$0xff]  ;;  %v4695_v36 = vld [vmem:[%s7867_s7 + $0x4d8] sm:$0xff] }
0x124b   :  { %6066 = vmatpush3.msra.mxu1 %v3890_v37  ;;  %6101 = vmatpush3.msra.mxu0 %v3922_v38  ;;  %v4712_v35 = vld [vmem:[%s7867_s7 + $0x560] sm:$0xff]  ;;  %v4727_v37 = vld [vmem:[%s7867_s7 + $0x5d8] sm:$0xff] }
0x124c   :  { %6067 = vmatprep.subr.mxu1 %v3905_v40  ;;  %6102 = vmatprep.subr.mxu0 %v3937_v41  ;;  %v4679_v38 = vld [vmem:[%s7867_s7 + $0x458] sm:$0xff]  ;;  %v4694_v41 = vld [vmem:[%s7867_s7 + $0x4d0] sm:$0xff] }
0x124d   :  { %6068 = vmatpush3.msra.mxu1 %v3889_v42  ;;  %6103 = vmatpush3.msra.mxu0 %v3921_v43  ;;  %v4711_v40 = vld [vmem:[%s7867_s7 + $0x558] sm:$0xff]  ;;  %v4726_v42 = vld [vmem:[%s7867_s7 + $0x5d0] sm:$0xff] }
0x124e   :  { %6069 = vmatprep.subr.mxu1 %v3904_v45  ;;  %6104 = vmatprep.subr.mxu0 %v3936_v9  ;;  %v4678_v43 = vld [vmem:[%s7867_s7 + $0x450] sm:$0xff]  ;;  %v4693_v9 = vld [vmem:[%s7867_s7 + $0x4c8] sm:$0xff] }
0x124f   :  { %6070 = vmatpush3.msra.mxu1 %v3888_v44  ;;  %6105 = vmatpush3.msra.mxu0 %v3920_v46  ;;  %v4710_v45 = vld [vmem:[%s7867_s7 + $0x550] sm:$0xff]  ;;  %v4725_v44 = vld [vmem:[%s7867_s7 + $0x5c8] sm:$0xff] }
0x1250   :  { %6071 = vmatprep.subr.mxu1 %v3903_v47  ;;  %6106 = vmatprep.subr.mxu0 %v3935_v51  ;;  %v4677_v46 = vld [vmem:[%s7867_s7 + $0x448] sm:$0xff]  ;;  %v4692_v51 = vld [vmem:[%s7867_s7 + $0x4c0] sm:$0xff] }
0x1251   :  { %6072 = vmatpush3.msra.mxu1 %v3887_v61  ;;  %6107 = vmatpush3.msra.mxu0 %v3919_v62  ;;  %v4709_v47 = vld [vmem:[%s7867_s7 + $0x548] sm:$0xff]  ;;  %v4708_v61 = vld [vmem:[%s7867_s7 + $0x540] sm:$0xff]  ;;  %v4691_v62 = vld [vmem:[%s7867_s7 + $0x4b8] sm:$0xff] }
0x1252   :  { %6073 = vmatprep.subr.mxu1 %v3902_v63  ;;  %6108 = vmatprep.subr.mxu0 %v3934_v50  ;;  %v4723_v63 = vld [vmem:[%s7867_s7 + $0x5b8] sm:$0xff] }
0x1253   :  { %6074 = vmatpush3.msra.mxu1 %v3886_v0  ;;  %6109 = vmatpush3.msra.mxu0 %v3918_v1  ;;  %v4675_v50 = vld [vmem:[%s7867_s7 + $0x438] sm:$0xff]  ;;  %v4690_v1 = vld [vmem:[%s7867_s7 + $0x4b0] sm:$0xff] }
0x1254   :  { %6075 = vmatprep.subr.mxu1 %v3901_v33  ;;  %6110 = vmatprep.subr.mxu0 %v3933_v2  ;;  %v4707_v0 = vld [vmem:[%s7867_s7 + $0x538] sm:$0xff]  ;;  %v4722_v33 = vld [vmem:[%s7867_s7 + $0x5b0] sm:$0xff] }
0x1255   :  { %6076 = vmatpush3.msra.mxu1 %v3885_v12  ;;  %6111 = vmatpush3.msra.mxu0 %v3917_v60  ;;  %v4674_v2 = vld [vmem:[%s7867_s7 + $0x430] sm:$0xff]  ;;  %v4721_v12 = vld [vmem:[%s7867_s7 + $0x5a8] sm:$0xff] }
0x1256   :  { %6077 = vmatprep.subr.mxu1 %v3900_v19  ;;  %6112 = vmatprep.subr.mxu0 %v3932_v21  ;;  %v4673_v60 = vld [vmem:[%s7867_s7 + $0x428] sm:$0xff]  ;;  %v4688_v21 = vld [vmem:[%s7867_s7 + $0x4a0] sm:$0xff] }
0x1257   :  { %6078 = vmatpush3.msra.mxu1 %v3884_v34  ;;  %6113 = vmatpush3.msra.mxu0 %v3916_v56  ;;  %v4705_v19 = vld [vmem:[%s7867_s7 + $0x528] sm:$0xff]  ;;  %v4720_v34 = vld [vmem:[%s7867_s7 + $0x5a0] sm:$0xff] }
0x1258   :  { %4405 = vmatmul.mubr.f32.vlgmr.msra.gmra.mxu1 %v3880_v27  ;;  %4475 = vmatmul.mubr.f32.vlgmr.msra.gmra.mxu0 %v3882_v28  ;;  %v4672_v56 = vld [vmem:[%s7867_s7 + $0x420] sm:$0xff]  ;;  %v4687_v28 = vld [vmem:[%s7867_s7 + $0x498] sm:$0xff] }
0x1259   :  { %5593 = vmatprep.subr.msk.mxu1 %vm309_vm1, %v4485_v57  ;;  %5596 = vmatprep.subr.msk.mxu0 %vm309_vm1, %v4487_v39  ;;  %v4704_v27 = vld [vmem:[%s7867_s7 + $0x520] sm:$0xff]  ;;  %v4719_v57 = vld [vmem:[%s7867_s7 + $0x598] sm:$0xff] }
0x125a   :  { %5594 = vmatpush1.msk.msra.mxu1 %vm309_vm1, %v4484_v4  ;;  %5597 = vmatpush1.msk.msra.mxu0 %vm309_vm1, %v4486_v6  ;;  %v4671_v39 = vld [vmem:[%s7867_s7 + $0x418] sm:$0xff]  ;;  %v4686_v6 = vld [vmem:[%s7867_s7 + $0x490] sm:$0xff] }
0x125b   :  { %4552 = vmatprep.subr.mxu1 %v4481_v7  ;;  %4623 = vmatprep.subr.mxu0 %v4483_v8  ;;  %v4703_v4 = vld [vmem:[%s7867_s7 + $0x518] sm:$0xff]  ;;  %v4718_v7 = vld [vmem:[%s7867_s7 + $0x590] sm:$0xff] }
0x125c   :  { %4553 = vmatpush1.msra.mxu1 %v4480_v10  ;;  %4586 = vmatprep.mubr.f32.mxu1 %v6553_v25  ;;  %v4670_v8 = vld [vmem:[%s7867_s7 + $0x410] sm:$0xff] }
0x125d   :  { %4624 = vmatpush1.msra.mxu0 %v4482_v11  ;;  %4657 = vmatprep.mubr.f32.mxu0 %v6553_v25  ;;  %v4702_v10 = vld [vmem:[%s7867_s7 + $0x510] sm:$0xff]  ;;  %v4685_v11 = vld [vmem:[%s7867_s7 + $0x488] sm:$0xff] }
0x125e   :  { %5595 = vmatmul.mubr.msk.f32.vlgmr.msra.gmra.mxu1 %vm302_vm2, %v7436_v5  ;;  %5598 = vmatmul.mubr.msk.f32.vlgmr.msra.gmra.mxu0 %vm302_vm2, %v7436_v5 }
0x125f   :  { %6117 = vmatprep.subr.mxu1 %v4699_v13  ;;  %6152 = vmatprep.subr.mxu0 %v4731_v14  ;;  %v4717_v13 = vld [vmem:[%s7867_s7 + $0x588] sm:$0xff] }
0x1260   :  { %6118 = vmatpush3.msra.mxu1 %v4683_v15  ;;  %6153 = vmatpush3.msra.mxu0 %v4715_v16  ;;  %v4669_v14 = vld [vmem:[%s7867_s7 + $0x408] sm:$0xff]  ;;  %v4684_v16 = vld [vmem:[%s7867_s7 + $0x480] sm:$0xff] }
0x1261   :  { %6119 = vmatprep.subr.mxu1 %v4698_v17  ;;  %6154 = vmatprep.subr.mxu0 %v4730_v18  ;;  %v4701_v15 = vld [vmem:[%s7867_s7 + $0x508] sm:$0xff]  ;;  %v4716_v17 = vld [vmem:[%s7867_s7 + $0x580] sm:$0xff] }
0x1262   :  { %6120 = vmatpush3.msra.mxu1 %v4682_v49  ;;  %6155 = vmatpush3.msra.mxu0 %v4714_v22  ;;  %v4668_v18 = vld [vmem:[%s7867_s7 + $0x400] sm:$0xff]  ;;  %v4878_v22 = vld [vmem:[%s7864_s28 + $0xe8] sm:$0xf] }
0x1263   :  { %6121 = vmatprep.subr.mxu1 %v4697_v23  ;;  %6156 = vmatprep.subr.mxu0 %v4729_v24  ;;  %v4700_v49 = vld [vmem:[%s7867_s7 + $0x500] sm:$0xff]  ;;  %v4880_v23 = vld [vmem:[%s7864_s28 + $0xf8] sm:$0xf] }
0x1264   :  { %6122 = vmatpush3.msra.mxu1 %v4681_v29  ;;  %6157 = vmatpush3.msra.mxu0 %v4713_v30 }
0x1265   :  { %6123 = vmatprep.subr.mxu1 %v4696_v31  ;;  %6158 = vmatprep.subr.mxu0 %v4728_v20 }
0x1266   :  { %6124 = vmatpush3.msra.mxu1 %v4680_v32  ;;  %6159 = vmatpush3.msra.mxu0 %v4712_v35 }
0x1267   :  { %6125 = vmatprep.subr.mxu1 %v4695_v36  ;;  %6160 = vmatprep.subr.mxu0 %v4727_v37 }
0x1268   :  { %6126 = vmatpush3.msra.mxu1 %v4679_v38  ;;  %6161 = vmatpush3.msra.mxu0 %v4711_v40  ;;  %v4488_v38 = vld [vmem:[%s7868_s10 + $0x8] sm:$0xf] }
0x1269   :  { %6127 = vmatprep.subr.mxu1 %v4694_v41  ;;  %6162 = vmatprep.subr.mxu0 %v4726_v42 }
0x126a   :  { %6128 = vmatpush3.msra.mxu1 %v4678_v43  ;;  %6163 = vmatpush3.msra.mxu0 %v4710_v45  ;;  %v4493_v45 = vrot.slane %v4488_v38, %v7041_v54 }
0x126b   :  { %6129 = vmatprep.subr.mxu1 %v4693_v9  ;;  %6164 = vmatprep.subr.mxu0 %v4725_v44  ;;  %v4501_v9 = vrot.slane %v4488_v38, %v7044_v55 }
0x126c   :  { %6130 = vmatpush3.msra.mxu1 %v4677_v46  ;;  %6165 = vmatpush3.msra.mxu0 %v4709_v47  ;;  %v4497_v46 = vrot.slane %v4488_v38, %v7051_v26  ;;  %v4505_v47 = vrot.slane %v4488_v38, %v7054_v58  ;;  %v5085_v38 = vld [vmem:[%s7867_s7 + $0x6c0] sm:$0xff] }
0x126d   :  { %6131 = vmatprep.subr.mxu1 %v4692_v51  ;;  %6166 = vmatprep.subr.mxu0 %v4724_v52 }
0x126e   :  { %6132 = vmatpush3.msra.mxu1 %v4676_v53  ;;  %6167 = vmatpush3.msra.mxu0 %v4708_v61 }
0x126f   :  { %6133 = vmatprep.subr.mxu1 %v4691_v62  ;;  %6168 = vmatprep.subr.mxu0 %v4723_v63 }
0x1270   :  { %6134 = vmatpush3.msra.mxu1 %v4675_v50  ;;  %6169 = vmatpush3.msra.mxu0 %v4707_v0 }
0x1271   :  { %6135 = vmatprep.subr.mxu1 %v4690_v1  ;;  %6170 = vmatprep.subr.mxu0 %v4722_v33 }
0x1272   :  { %6136 = vmatpush3.msra.mxu1 %v4674_v2  ;;  %6171 = vmatpush3.msra.mxu0 %v4706_v3 }
0x1273   :  { %6137 = vmatprep.subr.mxu1 %v4689_v59  ;;  %6172 = vmatprep.subr.mxu0 %v4721_v12  ;;  %v4877_v12 = vld [vmem:[%s7864_s28 + $0xe0] sm:$0xf] }
0x1274   :  { %6138 = vmatpush3.msra.mxu1 %v4673_v60  ;;  %6173 = vmatpush3.msra.mxu0 %v4705_v19  ;;  %v4879_v60 = vld [vmem:[%s7864_s28 + $0xf0] sm:$0xf]  ;;  %v4874_v19 = vld [vmem:[%s7864_s28 + $0x68] sm:$0xff] }
0x1275   :  { %6139 = vmatprep.subr.mxu1 %v4688_v21  ;;  %6174 = vmatprep.subr.mxu0 %v4720_v34  ;;  %v4876_v21 = vld [vmem:[%s7864_s28 + $0x78] sm:$0xff]  ;;  %v4873_v34 = vld [vmem:[%s7864_s28 + $0x60] sm:$0xff] }
0x1276   :  { %6140 = vmatpush3.msra.mxu1 %v4672_v56  ;;  %6175 = vmatpush3.msra.mxu0 %v4704_v27  ;;  %v4875_v56 = vld [vmem:[%s7864_s28 + $0x70] sm:$0xff]  ;;  %v5092_v27 = vld [vmem:[%s7867_s7 + $0x6f8] sm:$0xff] }
0x1277   :  { %6141 = vmatprep.subr.mxu1 %v4687_v28  ;;  %6176 = vmatprep.subr.mxu0 %v4719_v57  ;;  %v5124_v28 = vld [vmem:[%s7867_s7 + $0x7f8] sm:$0xff] }
0x1278   :  { %6142 = vmatpush3.msra.mxu1 %v4671_v39  ;;  %6177 = vmatpush3.msra.mxu0 %v4703_v4  ;;  %v5076_v57 = vld [vmem:[%s7867_s7 + $0x678] sm:$0xff]  ;;  %v5091_v4 = vld [vmem:[%s7867_s7 + $0x6f0] sm:$0xff] }
0x1279   :  { %6143 = vmatprep.subr.mxu1 %v4686_v6  ;;  %6178 = vmatprep.subr.mxu0 %v4718_v7  ;;  %v5108_v39 = vld [vmem:[%s7867_s7 + $0x778] sm:$0xff]  ;;  %v5123_v6 = vld [vmem:[%s7867_s7 + $0x7f0] sm:$0xff] }
0x127a   :  { %6144 = vmatpush3.msra.mxu1 %v4670_v8  ;;  %6179 = vmatpush3.msra.mxu0 %v4702_v10  ;;  %v5075_v7 = vld [vmem:[%s7867_s7 + $0x670] sm:$0xff]  ;;  %v5090_v10 = vld [vmem:[%s7867_s7 + $0x6e8] sm:$0xff] }
0x127b   :  { %6145 = vmatprep.subr.mxu1 %v4685_v11  ;;  %6180 = vmatprep.subr.mxu0 %v4717_v13  ;;  %v5107_v8 = vld [vmem:[%s7867_s7 + $0x770] sm:$0xff]  ;;  %v5122_v11 = vld [vmem:[%s7867_s7 + $0x7e8] sm:$0xff] }
0x127c   :  { %6146 = vmatpush3.msra.mxu1 %v4669_v14  ;;  %6181 = vmatpush3.msra.mxu0 %v4701_v15  ;;  %v5074_v13 = vld [vmem:[%s7867_s7 + $0x668] sm:$0xff]  ;;  %v5089_v15 = vld [vmem:[%s7867_s7 + $0x6e0] sm:$0xff] }
0x127d   :  { %6147 = vmatprep.subr.mxu1 %v4684_v16  ;;  %6182 = vmatprep.subr.mxu0 %v4716_v17  ;;  %v5106_v14 = vld [vmem:[%s7867_s7 + $0x768] sm:$0xff]  ;;  %v5121_v16 = vld [vmem:[%s7867_s7 + $0x7e0] sm:$0xff] }
0x127e   :  { %6148 = vmatpush3.msra.mxu1 %v4668_v18  ;;  %6183 = vmatpush3.msra.mxu0 %v4700_v49  ;;  %v5073_v17 = vld [vmem:[%s7867_s7 + $0x660] sm:$0xff]  ;;  %v5088_v49 = vld [vmem:[%s7867_s7 + $0x6d8] sm:$0xff] }
0x127f   :  { %5599 = vmatprep.subr.msk.mxu1 %vm309_vm1, %v4878_v22  ;;  %5602 = vmatprep.subr.msk.mxu0 %vm309_vm1, %v4880_v23  ;;  %v5105_v18 = vld [vmem:[%s7867_s7 + $0x760] sm:$0xff]  ;;  %v5120_v22 = vld [vmem:[%s7867_s7 + $0x7d8] sm:$0xff] }
0x1280   :  { %v5072_v23 = vld [vmem:[%s7867_s7 + $0x658] sm:$0xff] }
0x12f7   :  { %v6009_v24 = vpop.f32.mrf.mxu1  ;;  %v6044_v29 = vpop.f32.mrf.mxu0 }
0x12f9   :  { %v6010_v30 = vpop.f32.mrf.mxu1  ;;  %v6045_v31 = vpop.f32.mrf.mxu0 }
0x12fa   :  { %v6011_v20 = vadd.f32 %v6010_v30, %v6009_v24  ;;  %v6046_v32 = vadd.f32 %v6045_v31, %v6044_v29  ;;  %v5104_v24 = vld [vmem:[%s7867_s7 + $0x758] sm:$0xff]  ;;  %v5087_v29 = vld [vmem:[%s7867_s7 + $0x6d0] sm:$0xff] }
0x12fb   :  { %v5119_v30 = vld [vmem:[%s7867_s7 + $0x7d0] sm:$0xff] }
0x12fc   :  { %v4337_v35 = vadd.f32 %v6046_v32, %v6011_v20  ;;  %v5071_v31 = vld [vmem:[%s7867_s7 + $0x650] sm:$0xff]  ;;  %v5086_v32 = vld [vmem:[%s7867_s7 + $0x6c8] sm:$0xff] }
0x12fd   :  { %v5103_v20 = vld [vmem:[%s7867_s7 + $0x750] sm:$0xff] }
0x1318   :  { %v6079_v36 = vpop.f32.mrf.mxu1  ;;  %v6114_v37 = vpop.f32.mrf.mxu0 }
0x131a   :  { %v6080_v40 = vpop.f32.mrf.mxu1  ;;  %v6115_v41 = vpop.f32.mrf.mxu0 }
0x131b   :  { %v6081_v42 = vadd.f32 %v6080_v40, %v6079_v36  ;;  %v6116_v43 = vadd.f32 %v6115_v41, %v6114_v37  ;;  %v5070_v36 = vld [vmem:[%s7867_s7 + $0x648] sm:$0xff]  ;;  %v5117_v40 = vld [vmem:[%s7867_s7 + $0x7c0] sm:$0xff] }
0x131c   :  { %v5102_v37 = vld [vmem:[%s7867_s7 + $0x748] sm:$0xff]  ;;  %v5069_v41 = vld [vmem:[%s7867_s7 + $0x640] sm:$0xff] }
0x131d   :  { %v4407_v44 = vadd.f32 %v6081_v42, %v4337_v35  ;;  %v5118_v35 = vld [vmem:[%s7867_s7 + $0x7c8] sm:$0xff]  ;;  %v5101_v42 = vld [vmem:[%s7867_s7 + $0x740] sm:$0xff] }
0x131e   :  { %v4588_v51 = vpop.f32.mrf.mxu1  ;;  %v4659_v52 = vpop.f32.mrf.mxu0 }
0x131f   :  { %v7697_v53 = vadd.f32 %v6116_v43, %v4407_v44  ;;  %v4589_v61 = vadd.f32 %v4588_v51, %v4493_v45  ;;  %v4660_v62 = vadd.f32 %v4659_v52, %v4501_v9  ;;  %v5084_v43 = vld [vmem:[%s7867_s7 + $0x6b8] sm:$0xff]  ;;  %v5067_v51 = vld [vmem:[%s7867_s7 + $0x630] sm:$0xff] }
0x1320   :  { %v4590_v63 = vpop.f32.mrf.mxu1  ;;  %v4661_v50 = vpop.f32.mrf.mxu0  ;;  %v5116_v45 = vld [vmem:[%s7867_s7 + $0x7b8] sm:$0xff]  ;;  %v5099_v52 = vld [vmem:[%s7867_s7 + $0x730] sm:$0xff] }
0x1321   :  { %v4591_v0 = vadd.f32 %v4590_v63, %v4497_v46  ;;  %v4662_v1 = vadd.f32 %v4661_v50, %v4505_v47  ;;  %v4664_v3 = vmax.f32 %v4589_v61, 0.0  ;;  %v4666_v59 = vmax.f32 %v4660_v62, 0.0  ;;  %v5068_v9 = vld [vmem:[%s7867_s7 + $0x638] sm:$0xff]  ;;  %v5083_v46 = vld [vmem:[%s7867_s7 + $0x6b0] sm:$0xff]  ;;  %v5082_v61 = vld [vmem:[%s7867_s7 + $0x6a8] sm:$0xff] }
0x1322   :  { %v5100_v44 = vld [vmem:[%s7867_s7 + $0x738] sm:$0xff]  ;;  %v5115_v47 = vld [vmem:[%s7867_s7 + $0x7b0] sm:$0xff]  ;;  %v5114_v62 = vld [vmem:[%s7867_s7 + $0x7a8] sm:$0xff] }
0x1323   :  { %v4665_v33 = vmax.f32 %v4591_v0, 0.0  ;;  %v4667_v2 = vmax.f32 %v4662_v1, 0.0  ;;  %v5066_v63 = vld [vmem:[%s7867_s7 + $0x628] sm:$0xff]  ;;  %v5081_v0 = vld [vmem:[%s7867_s7 + $0x6a0] sm:$0xff] }
0x1324   :  { %v5098_v50 = vld [vmem:[%s7867_s7 + $0x728] sm:$0xff]  ;;  %v5113_v1 = vld [vmem:[%s7867_s7 + $0x7a0] sm:$0xff] }
0x1325   :  { %4796 = vmatprep.mubr.f32.mxu1 %v4665_v33  ;;  %4866 = vmatprep.mubr.f32.mxu0 %v4667_v2  ;;  %v5065_v33 = vld [vmem:[%s7867_s7 + $0x620] sm:$0xff] }
0x1326   :  { %4797 = vmatmul.mubr.f32.vlgmr.msra.gmra.mxu1 %v4664_v3  ;;  %4867 = vmatmul.mubr.f32.vlgmr.msra.gmra.mxu0 %v4666_v59  ;;  %v5097_v2 = vld [vmem:[%s7867_s7 + $0x720] sm:$0xff]  ;;  %v5080_v3 = vld [vmem:[%s7867_s7 + $0x698] sm:$0xff] }
0x1327   :  { %5600 = vmatpush1.msk.msra.mxu1 %vm309_vm1, %v4877_v12  ;;  %5603 = vmatpush1.msk.msra.mxu0 %vm309_vm1, %v4879_v60  ;;  %v5112_v59 = vld [vmem:[%s7867_s7 + $0x798] sm:$0xff] }
0x1328   :  { %4945 = vmatprep.subr.mxu1 %v4874_v19  ;;  %5016 = vmatprep.subr.mxu0 %v4876_v21  ;;  %v5064_v12 = vld [vmem:[%s7867_s7 + $0x618] sm:$0xff]  ;;  %v5079_v19 = vld [vmem:[%s7867_s7 + $0x690] sm:$0xff] }
0x1329   :  { %4946 = vmatpush1.msra.mxu1 %v4873_v34  ;;  %4979 = vmatprep.mubr.f32.mxu1 %v6553_v25  ;;  %v5096_v60 = vld [vmem:[%s7867_s7 + $0x718] sm:$0xff]  ;;  %v5111_v21 = vld [vmem:[%s7867_s7 + $0x790] sm:$0xff] }
0x132a   :  { %5017 = vmatpush1.msra.mxu0 %v4875_v56  ;;  %5050 = vmatprep.mubr.f32.mxu0 %v6553_v25  ;;  %v5063_v34 = vld [vmem:[%s7867_s7 + $0x610] sm:$0xff] }
0x132b   :  { %5601 = vmatmul.mubr.msk.f32.vlgmr.msra.gmra.mxu1 %vm302_vm2, %v7436_v5  ;;  %5604 = vmatmul.mubr.msk.f32.vlgmr.msra.gmra.mxu0 %vm302_vm2, %v7436_v5  ;;  %v5095_v56 = vld [vmem:[%s7867_s7 + $0x710] sm:$0xff] }
0x132c   :  { %6187 = vmatprep.subr.mxu1 %v5092_v27  ;;  %6222 = vmatprep.subr.mxu0 %v5124_v28  ;;  %v5078_v27 = vld [vmem:[%s7867_s7 + $0x688] sm:$0xff] }
0x132d   :  { %6188 = vmatpush3.msra.mxu1 %v5076_v57  ;;  %6223 = vmatpush3.msra.mxu0 %v5108_v39  ;;  %v5110_v28 = vld [vmem:[%s7867_s7 + $0x788] sm:$0xff] }
0x132e   :  { %6189 = vmatprep.subr.mxu1 %v5091_v4  ;;  %6224 = vmatprep.subr.mxu0 %v5123_v6  ;;  %v5062_v57 = vld [vmem:[%s7867_s7 + $0x608] sm:$0xff]  ;;  %v5077_v4 = vld [vmem:[%s7867_s7 + $0x680] sm:$0xff] }
0x132f   :  { %6190 = vmatpush3.msra.mxu1 %v5075_v7  ;;  %6225 = vmatpush3.msra.mxu0 %v5107_v8  ;;  %v5094_v39 = vld [vmem:[%s7867_s7 + $0x708] sm:$0xff]  ;;  %v5109_v6 = vld [vmem:[%s7867_s7 + $0x780] sm:$0xff] }
0x1330   :  { %6191 = vmatprep.subr.mxu1 %v5090_v10  ;;  %6226 = vmatprep.subr.mxu0 %v5122_v11  ;;  %v5061_v7 = vld [vmem:[%s7867_s7 + $0x600] sm:$0xff] }
0x1331   :  { %6192 = vmatpush3.msra.mxu1 %v5074_v13  ;;  %6227 = vmatpush3.msra.mxu0 %v5106_v14  ;;  %v5093_v8 = vld [vmem:[%s7867_s7 + $0x700] sm:$0xff]  ;;  %v4881_v13 = vld [vmem:[%s7868_s10 + $0xc] sm:$0xf] }
0x1332   :  { %6193 = vmatprep.subr.mxu1 %v5089_v15  ;;  %6228 = vmatprep.subr.mxu0 %v5121_v16 }
0x1333   :  { %6194 = vmatpush3.msra.mxu1 %v5073_v17  ;;  %6229 = vmatpush3.msra.mxu0 %v5105_v18  ;;  %v4886_v18 = vrot.slane %v4881_v13, %v7041_v54 }
0x1334   :  { %6195 = vmatprep.subr.mxu1 %v5088_v49  ;;  %6230 = vmatprep.subr.mxu0 %v5120_v22  ;;  %v4894_v49 = vrot.slane %v4881_v13, %v7044_v55  ;;  %v4890_v22 = vrot.slane %v4881_v13, %v7051_v26 }
0x1335   :  { %6196 = vmatpush3.msra.mxu1 %v5072_v23  ;;  %6231 = vmatpush3.msra.mxu0 %v5104_v24  ;;  %v4898_v23 = vrot.slane %v4881_v13, %v7054_v58 }
0x1336   :  { %6197 = vmatprep.subr.mxu1 %v5087_v29  ;;  %6232 = vmatprep.subr.mxu0 %v5119_v30 }
0x1337   :  { %6198 = vmatpush3.msra.mxu1 %v5071_v31  ;;  %6233 = vmatpush3.msra.mxu0 %v5103_v20 }
0x1338   :  { %6199 = vmatprep.subr.mxu1 %v5086_v32  ;;  %6234 = vmatprep.subr.mxu0 %v5118_v35 }
0x1339   :  { %6200 = vmatpush3.msra.mxu1 %v5070_v36  ;;  %6235 = vmatpush3.msra.mxu0 %v5102_v37 }
0x133a   :  { %6201 = vmatprep.subr.mxu1 %v5085_v38  ;;  %6236 = vmatprep.subr.mxu0 %v5117_v40 }
0x133b   :  { %6202 = vmatpush3.msra.mxu1 %v5069_v41  ;;  %6237 = vmatpush3.msra.mxu0 %v5101_v42 }
0x133c   :  { %6203 = vmatprep.subr.mxu1 %v5084_v43  ;;  %6238 = vmatprep.subr.mxu0 %v5116_v45 }
0x133d   :  { %6204 = vmatpush3.msra.mxu1 %v5068_v9  ;;  %6239 = vmatpush3.msra.mxu0 %v5100_v44 }
0x133e   :  { %6205 = vmatprep.subr.mxu1 %v5083_v46  ;;  %6240 = vmatprep.subr.mxu0 %v5115_v47  ;;  %v5605_v46 = vld [vmem:[%s7869_s11] ss:$0 sm:$0xff] }
0x133f   :  { %6206 = vmatpush3.msra.mxu1 %v5067_v51  ;;  %6241 = vmatpush3.msra.mxu0 %v5099_v52 }
0x1340   :  { %6207 = vmatprep.subr.mxu1 %v5082_v61  ;;  %6242 = vmatprep.subr.mxu0 %v5114_v62 }
0x1341   :  { %6208 = vmatpush3.msra.mxu1 %v5066_v63  ;;  %6243 = vmatpush3.msra.mxu0 %v5098_v50 }
0x1342   :  { %6209 = vmatprep.subr.mxu1 %v5081_v0  ;;  %6244 = vmatprep.subr.mxu0 %v5113_v1 }
0x1343   :  { %6210 = vmatpush3.msra.mxu1 %v5065_v33  ;;  %6245 = vmatpush3.msra.mxu0 %v5097_v2  ;;  %v5305_v33 = vld [vmem:[%s6783_s12 + $0x8] sm:$0xf]  ;;  %v5304_v2 = vld [vmem:[%s6783_s12] sm:$0xff]  ;;  %s6557_s12 = smov [#allocation2]  }
0x1344   :  { %6211 = vmatprep.subr.mxu1 %v5080_v3  ;;  %6246 = vmatprep.subr.mxu0 %v5112_v59  ;;  %s5431_s9 = sshll.u32 %s6557_s12, 4  ;;  %s5432_s9 = int_to_ptr.vmem [resolvable:$true] %s5431_s9 }
0x1345   :  { %6212 = vmatpush3.msra.mxu1 %v5064_v12  ;;  %6247 = vmatpush3.msra.mxu0 %v5096_v60  ;;  %v5606_v60 = vld [vmem:[%s7870_s0] ss:$0 sm:$0xff]  ;;  %s6485_s17 = scalar_lea.vmem %s5432_s9, 256  ;;  %p6490_p1 = scmp.lt.s32.totalorder %s5432_s9, %s5432_s9 }
0x1346   :  { %6213 = vmatprep.subr.mxu1 %v5079_v19  ;;  %6248 = vmatprep.subr.mxu0 %v5111_v21  ;;  %v5607_v21 = vld [vmem:[%s7871_s5] ss:$0 sm:$0xff]  ;;  %p6486_p0 = scmp.ne.s32.totalorder %s5432_s9, %s6485_s17  ;;  %p6491_p2 = scmp.lt.s32.totalorder %s6485_s17, %s6485_s17 }
0x1347   :  { %6214 = vmatpush3.msra.mxu1 %v5063_v34  ;;  %6249 = vmatpush3.msra.mxu0 %v5095_v56 }
0x1348   :  { %6215 = vmatprep.subr.mxu1 %v5078_v27  ;;  %6250 = vmatprep.subr.mxu0 %v5110_v28  ;;  %v6556_v27 = vmov 1966171168   ;;  %p6492_p3 = por %p6491_p2, %p6490_p1 }
0x1349   :  { %6216 = vmatpush3.msra.mxu1 %v5062_v57  ;;  %6251 = vmatpush3.msra.mxu0 %v5094_v39  ;;  %v5391_v28 = vunpack.c.l.s4 %v6556_v27  ;;  %v5608_v39 = vld [vmem:[%s6788_s27] ss:$0 sm:$0xff] }
0x134a   :  { %6217 = vmatprep.subr.mxu1 %v5077_v4  ;;  %6252 = vmatprep.subr.mxu0 %v5109_v6  ;;  %p6493_p4 = pnand %p6492_p3, %p6486_p0 }
0x134b   :  { %6218 = vmatpush3.msra.mxu1 %v5061_v7  ;;  %6253 = vmatpush3.msra.mxu0 %v5093_v8  ;;  %v5392_v57 = vunpack.c.0.s8 %v5391_v28 }
0x134c   :  { %6393 = vmatprep.subr.mxu1 %v6553_v25 }
0x13e6   :  { %v6149_v10 = vpop.f32.mrf.mxu1  ;;  %v6184_v11 = vpop.f32.mrf.mxu0 }
0x13e8   :  { %v6150_v14 = vpop.f32.mrf.mxu1  ;;  %v6185_v15 = vpop.f32.mrf.mxu0 }
0x13e9   :  { %v6151_v16 = vadd.f32 %v6150_v14, %v6149_v10  ;;  %v6186_v17 = vadd.f32 %v6185_v15, %v6184_v11 }
0x13eb   :  { %v4869_v24 = vadd.f32 %v6186_v17, %v6151_v16  ;;  %v4981_v29 = vpop.f32.mrf.mxu1  ;;  %v5052_v30 = vpop.f32.mrf.mxu0 }
0x13ec   :  { %v4982_v20 = vadd.f32 %v4981_v29, %v4886_v18  ;;  %v5053_v32 = vadd.f32 %v5052_v30, %v4894_v49 }
0x13ed   :  { %v4872_v31 = vadd.f32 %v4869_v24, %v7697_v53  ;;  %v4983_v35 = vpop.f32.mrf.mxu1  ;;  %v5054_v36 = vpop.f32.mrf.mxu0 }
0x13ee   :  { %v4984_v37 = vadd.f32 %v4983_v35, %v4890_v22  ;;  %v5055_v38 = vadd.f32 %v5054_v36, %v4898_v23  ;;  %v5057_v42 = vmax.f32 %v4982_v20, 0.0  ;;  %v5059_v55 = vmax.f32 %v5053_v32, 0.0 }
0x13f0   :  { %v5058_v40 = vmax.f32 %v4984_v37, 0.0  ;;  %v5060_v41 = vmax.f32 %v5055_v38, 0.0 }
0x13f2   :  { %5189 = vmatprep.mubr.f32.mxu1 %v5058_v40  ;;  %5259 = vmatprep.mubr.f32.mxu0 %v5060_v41 }
0x13f3   :  { %5190 = vmatmul.mubr.f32.vlgmr.msra.gmra.mxu1 %v5057_v42  ;;  %5260 = vmatmul.mubr.f32.vlgmr.msra.gmra.mxu0 %v5059_v55 }
0x13f4   :  { %6397 = vmatprep.mubr.msk.f32.mxu1 %vm6554_vm3, %v6553_v25  ;;  %6394 = vmatpush3.msk.msra.mxu1 %vm309_vm1, %v5305_v33 }
0x13f5   :  { %6395 = vmatprep.subr.mxu1 %v6553_v25  ;;  %v5395_v25 = vsub.s32 %v5392_v57, %v7033_v48 }
0x13f6   :  { %6396 = vmatpush3.msra.mxu1 %v5304_v2 }
0x14b3   :  { %v6219_v26 = vpop.f32.mrf.mxu1  ;;  %v6254_v58 = vpop.f32.mrf.mxu0 }
0x14b5   :  { %v6220_v53 = vpop.f32.mrf.mxu1  ;;  %v6255_v43 = vpop.f32.mrf.mxu0 }
0x14b6   :  { %v6221_v45 = vadd.f32 %v6220_v53, %v6219_v26  ;;  %v6256_v9 = vadd.f32 %v6255_v43, %v6254_v58 }
0x14b8   :  { %v5262_v44 = vadd.f32 %v6256_v9, %v6221_v45 }
0x14ba   :  { %v5265_v47 = vadd.f32 %v5262_v44, %v4872_v31 }
0x14bc   :  { %v5273_v51 = vadd.f32 %v5605_v46, %v5265_v47 }
0x14be   :  { %v5274_v52 = vadd.f32 %v5273_v51, %v7436_v5 }
0x14c0   :  { %v5275_v61 = vsel %vm3466_vm12, %v5274_v52, 0.0 }
0x14c1   :  { %5276 = vadd.xlane.f32.xlu1 %v5275_v61 }
0x154a   :  { %v5277_v62 = vpop.xlane.xlu1 %5276 }
0x154b   :  { %v5278_v63 = vmul.f32 0.083333336, %v5277_v62 }
0x154d   :  { %v5279_v50 = vsub.f32 %v5274_v52, %v5278_v63 }
0x154f   :  { %v5280_v0 = vmul.f32 %v5279_v50, %v5279_v50 }
0x1551   :  { %v5281_v1 = vsel %vm3466_vm12, %v5280_v0, 0.0 }
0x1552   :  { %5282 = vadd.xlane.f32.xlu1 %v5281_v1 }
0x15db   :  { %v5283_v5 = vpop.xlane.xlu1 %5282 }
0x15dc   :  { %v5284_v3 = vmul.f32 0.083333336, %v5283_v5 }
0x15de   :  { %v5285_v59 = vadd.f32 1e-05, %v5284_v3 }
0x15e0   :  { %6483 = vrsqrt.f32 %v5285_v59 }
0x15ed   :  { %v6484_v12 = vpop.eup %6483 }
0x15ee   :  { %v5287_v19 = vmul.f32 %v6484_v12, %v5279_v50 }
0x15f0   :  { %v5295_v34 = vmul.f32 %v5606_v60, %v5287_v19 }
0x15f2   :  { %v5303_v56 = vadd.f32 %v5607_v21, %v5295_v34 }
0x15f4   :  { %6398 = vmatmul.mubr.msk.f32.vlgmr.msra.gmra.mxu1 %vm302_vm2, %v5303_v56 }
0x16b4   :  { %v5385_v4 = vpop.f32.mrf.mxu1 }
0x16b5   :  { %v5386_v6 = vadd.f32 %v5608_v39, %v5385_v4 }
0x16b6   :  { %v6399_v7 = vpop.f32.mrf.mxu1 }
0x16b7   :  { %v5396_v8 = vrot.slane %v5386_v6, %v5395_v25 }
0x16b9   :  { %v5397_v10 = vcombine.high %v5396_v8, %v5396_v8  ;;  %v5404_v11 = vrot.slane %v5396_v8, %v5395_v25 }
0x16bb   :  { %v5411_v13 = vrot.slane %v5397_v10, %v5395_v25  ;;  %v5415_v14 = vrot.slane %v5404_v11, %v7041_v54 }
0x16bd   :  { %v5419_v15 = vrot.slane %v5411_v13, %v7041_v54  ;;  %5422 = vst [vmem:[#allocation2] sm:$0xff] %v5415_v14 }
0x16bf   :  { %5423 = vst [vmem:[#allocation2 + $0x8] sm:$0xff] %v5419_v15 }
0x16c0   :  { %6496 = shalt.err (!%p6493_p4)
}
0x16c1   :  { %s6558_s27 = smov 128   ;;  %s6559_s21 = smov 8  }
0x16c2   :  { %5437 = dma.vmem_to_hbm [thread:$0]  %s5432_s9, 256, %s6793_s4, [#allocation3], %s6558_s27, %s6558_s27, %s6559_s21  }
0x16c3   :  { %6505 = dma.done.wait [#allocation3], 256  }
0x16c4   :  { %6506 = vsyncadd [#allocation3], 4294967040 }
0x16c5   :  { %5445 = vsyncpa [#allocation3], 1 }

</bundles_post_ra>
